<compile_context>
chip_gen: v7x
topology: tpu7x:2x2x1
jax: 0.10.0
libtpu: 0.0.40
codegen_flags: <defaults>
</compile_context>

<pallas_src>
import jax
import jax.numpy as jnp
from jax import lax
from jax.experimental import pallas as pl
from jax.experimental.pallas import tpu as pltpu

NEG_SLOPE = 0.2        # GATConv default negative_slope
NORM_EPS = 1e-12       # F.normalize default eps
MASK_NEG = -1e30       # finite "minus infinity" for masked softmax


def _gat_layer(x_bf16, neigh, w_bf16, att_src, att_dst, bias, head_sel=None):
    """Dense multi-head GATConv over a block of graphs (block-diagonal mask).

    x_bf16   : (BN, F_in) bf16   stacked node features
    neigh    : (BN, BN) bool     neigh[dst, src] = edge present (+ self loops)
    w_bf16   : (F_in, H*F) bf16  linear weight
    att_src  : (H*F, H) f32      block-diag per-head attention (source term)
    att_dst  : (H*F, H) f32      block-diag per-head attention (target term)
    bias     : (1, H*F) f32
    head_sel : (H, H*F) f32      1.0 on head h's output columns (None if H==1)
    returns  : (BN, H*F) f32
    """
    heads = att_src.shape[-1]

    # Feature transform on the MXU (bf16 x bf16 -> f32 accumulate).
    xp = jnp.dot(x_bf16, w_bf16, preferred_element_type=jnp.float32)     # (BN, H*F)

    # Attention logits, each orientation produced directly in the layout it is
    # consumed in (no transposes, no dead half-results):
    #   alpha_dst[:, h] : per-destination term, column vector per head
    #   alpha_src[h, :] : per-source term, row vector per head
    alpha_dst = jnp.dot(xp, att_dst, preferred_element_type=jnp.float32)      # (BN, H)
    alpha_src = lax.dot_general(att_src, xp, (((0,), (1,)), ((), ())),
                                preferred_element_type=jnp.float32)           # (H, BN)

    out = None
    for h in range(heads):
        # e[dst, src] = LeakyReLU(alpha_src[src] + alpha_dst[dst])
        e = alpha_dst[:, h:h + 1] + alpha_src[h:h + 1, :]            # (BN, BN)
        e = jnp.maximum(e, NEG_SLOPE * e)                            # LeakyReLU (slope<1)
        e = jnp.where(neigh, e, jnp.float32(MASK_NEG))
        m = jnp.max(e, axis=-1, keepdims=True)                       # finite (self loops)
        p = jnp.exp(e - m)                                           # masked -> exp(-1e30)=0
        inv = pl.reciprocal(jnp.sum(p, axis=-1, keepdims=True), approx=True)
        a = p * inv                                                  # (BN, BN)
        # TODO(synk): attention dropout (p=0.6) omitted - eval-mode forward.
        # Aggregate against a head-column-selected xp so each head's result
        # lands directly in the lane-dense (BN, H*F) slab (no concat, no
        # narrow masked stores).
        rhs = xp if head_sel is None else xp * head_sel[h:h + 1, :]
        contrib = jnp.dot(a, rhs, preferred_element_type=jnp.float32)
        out = contrib if out is None else out + contrib
    return out + bias


def spgat_kernel(x_ref, mask_ref,
                 w1_ref, as1_ref, ad1_ref, b1_ref, sel1_ref,
                 w2_ref, as2_ref, ad2_ref, b2_ref,
                 out_ref):
    # Boolean neighbourhood predicate computed once, reused by both layers and
    # all heads (mask is never materialised in f32).
    neigh = mask_ref[...] > 0                                        # (BN, BN) bool

    h1 = _gat_layer(x_ref[...], neigh, w1_ref[...], as1_ref[...], ad1_ref[...],
                    b1_ref[...], sel1_ref[...])                      # (BN, 128)
    h2 = _gat_layer(h1.astype(jnp.bfloat16), neigh, w2_ref[...],
                    as2_ref[...], ad2_ref[...], b2_ref[...])         # (BN, outfeat)

    # F.normalize(p=2, dim=-1, eps=1e-12) then ReLU (per node, batch-fold safe).
    ss = jnp.sum(h2 * h2, axis=-1, keepdims=True)
    y = h2 * lax.rsqrt(jnp.maximum(ss, jnp.float32(NORM_EPS * NORM_EPS)))
    out_ref[...] = jnp.maximum(y, 0.0)


def edges_to_mask(edge_index, n):
    """Dense neighbourhood mask: mask[dst, src]=1 for each edge src->dst, plus
    self-loops (GATConv add_self_loops=True). Parallel edges collapse to 1."""
    src, dst = edge_index[0], edge_index[1]
    m = jnp.zeros((n, n), jnp.float32).at[dst, src].max(1.0)
    return jnp.maximum(m, jnp.eye(n, dtype=jnp.float32))


def _head_selector(heads, f_out):
    sel = jnp.zeros((heads, heads * f_out), jnp.float32)
    for h in range(heads):
        sel = sel.at[h, h * f_out:(h + 1) * f_out].set(1.0)
    return sel


def init_params(key, infeat, outfeat, heads=4, hid=32):
    """Synthetic GATConv parameters matching the module's shapes.

    Attention vectors are packed block-diagonally into (H*F, H) slabs (one for
    the source term, one for the target term) so a single matmul per
    orientation yields all heads' scores."""
    ks = jax.random.split(key, 6)
    scale = 0.1
    hf = heads * hid

    w1 = jax.random.normal(ks[0], (infeat, hf), jnp.float32) * scale
    att_src1 = jax.random.normal(ks[1], (heads, hid), jnp.float32) * scale
    att_dst1 = jax.random.normal(ks[2], (heads, hid), jnp.float32) * scale
    as1 = jnp.zeros((hf, heads), jnp.float32)
    ad1 = jnp.zeros((hf, heads), jnp.float32)
    for h in range(heads):
        as1 = as1.at[h * hid:(h + 1) * hid, h].set(att_src1[h])
        ad1 = ad1.at[h * hid:(h + 1) * hid, h].set(att_dst1[h])
    b1 = jnp.zeros((1, hf), jnp.float32)
    sel1 = _head_selector(heads, hid)

    w2 = jax.random.normal(ks[3], (hf, outfeat), jnp.float32) * scale
    as2 = (jax.random.normal(ks[4], (outfeat,), jnp.float32) * scale)[:, None]  # (outfeat,1)
    ad2 = (jax.random.normal(ks[5], (outfeat,), jnp.float32) * scale)[:, None]
    b2 = jnp.zeros((1, outfeat), jnp.float32)

    # Linear weights in bf16 (MXU operands); small att/bias/selector slabs f32.
    return (w1.astype(jnp.bfloat16), as1, ad1, b1, sel1,
            w2.astype(jnp.bfloat16), as2, ad2, b2)


def batched_sp_gat(x, masks, params, *, graphs_per_step=None):
    """x: (B, N, infeat), masks: (B, N, N) 0/1 with self loops on the diagonal.
    Returns (B, N, outfeat) f32.  For B=1 this is the module's (1, N, outfeat)."""
    B, N, f_in = x.shape
    (w1, as1, ad1, b1, sel1, w2, as2, ad2, b2) = params
    out_feat = w2.shape[1]

    # Fold several graphs into one grid step so BN = graphs_per_step*N fills
    # the 128-lane vreg width (and the MXU row dimension).
    if graphs_per_step is None:
        graphs_per_step = max(1, 128 // N)
    gps = graphs_per_step
    pad = (-B) % gps
    if pad:  # pad with empty (self-loop-only) graphs; sliced off the output.
        x = jnp.concatenate([x, jnp.zeros((pad, N, f_in), x.dtype)], axis=0)
        eye = jnp.broadcast_to(jnp.eye(N, dtype=masks.dtype), (pad, N, N))
        masks = jnp.concatenate([masks, eye], axis=0)
    bp = B + pad
    G = bp // gps
    BN = gps * N

    # Stacked node features, bf16 already in the wrapper (halves x DMA bytes).
    xb = x.reshape(G, BN, f_in).astype(jnp.bfloat16)

    # Block-diagonal neighbourhood mask per group of graphs (bf16 0/1 is exact;
    # the kernel only evaluates `mask > 0` once and reuses the predicate).
    m = masks.reshape(G, gps, N, N).astype(jnp.bfloat16)
    blk = jnp.zeros((G, BN, BN), jnp.bfloat16)
    for g in range(gps):
        blk = blk.at[:, g * N:(g + 1) * N, g * N:(g + 1) * N].set(m[:, g])

    const = lambda i: (0, 0)   # weights: same block every step -> VMEM-resident
    grid_spec = pltpu.PrefetchScalarGridSpec(
        num_scalar_prefetch=0,
        grid=(G,),
        in_specs=[
            pl.BlockSpec((None, BN, f_in), lambda i: (i, 0, 0)),
            pl.BlockSpec((None, BN, BN), lambda i: (i, 0, 0)),
            pl.BlockSpec(w1.shape, const),
            pl.BlockSpec(as1.shape, const),
            pl.BlockSpec(ad1.shape, const),
            pl.BlockSpec(b1.shape, const),
            pl.BlockSpec(sel1.shape, const),
            pl.BlockSpec(w2.shape, const),
            pl.BlockSpec(as2.shape, const),
            pl.BlockSpec(ad2.shape, const),
            pl.BlockSpec(b2.shape, const),
        ],
        out_specs=pl.BlockSpec((None, BN, out_feat), lambda i: (i, 0, 0)),
    )

    # Advisory cost estimate for XLA's scheduler.
    hf = w1.shape[1]
    heads = as1.shape[1]
    flops_step = 2 * (BN * f_in * hf + 2 * BN * hf * heads + heads * BN * BN * hf
                      + BN * hf * out_feat + 2 * BN * out_feat + BN * BN * out_feat) \
                 + (heads + 1) * 8 * BN * BN
    trans_step = (heads + 1) * BN * BN
    param_bytes = sum(int(p.size) * p.dtype.itemsize
                      for p in (w1, as1, ad1, b1, sel1, w2, as2, ad2, b2))
    bytes_accessed = int(xb.size) * 2 + int(blk.size) * 2 \
                     + G * BN * out_feat * 4 + param_bytes
    cost = pl.CostEstimate(flops=int(G * flops_step),
                           transcendentals=int(G * trans_step),
                           bytes_accessed=int(bytes_accessed))

    out = pl.pallas_call(
        spgat_kernel,
        out_shape=jax.ShapeDtypeStruct((G, BN, out_feat), jnp.float32),
        grid_spec=grid_spec,
        compiler_params=pltpu.CompilerParams(
            dimension_semantics=("parallel",),        # >=2 steps -> both v7x TCs
            vmem_limit_bytes=32 * 1024 * 1024),       # ample headroom, safe on v5e/v6e/v7x
        cost_estimate=cost,
    )(xb, blk, w1, as1, ad1, b1, sel1, w2, as2, ad2, b2)

    return out.reshape(bp, N, out_feat)[:B]


if __name__ == "__main__":
    # B = 16 small graphs of N = 16 nodes, infeat = 8, gat1 -> 4*32 = 128,
    # outfeat = 128.  8 graphs are folded into each grid step (BN = 128 stacked
    # nodes, block-diagonal mask), so the kernel runs a 2-step "parallel" grid.
    B, N, F_IN, OUT_FEAT, E = 16, 16, 8, 128, 48

    key = jax.random.PRNGKey(0)
    kx, ks, kd, kp = jax.random.split(key, 4)

    # Node features already node-major (the module's x.reshape((x.shape[1], -1))).
    x = jax.random.normal(kx, (B, N, F_IN), jnp.float32)

    # Random COO edge lists per graph: edge_index[b] = (2, E) with rows (src, dst).
    src = jax.random.randint(ks, (B, E), 0, N)
    dst = jax.random.randint(kd, (B, E), 0, N)
    edge_index = jnp.stack([src, dst], axis=1)                     # (B, 2, E)

    # Densify to neighbourhood masks with self-loops.
    masks = jax.vmap(lambda ei: edges_to_mask(ei, N))(edge_index)  # (B, N, N) f32

    params = init_params(kp, F_IN, OUT_FEAT)

    out = batched_sp_gat(x, masks, params)
    jax.block_until_ready(out)

    assert out.shape == (B, N, OUT_FEAT)
    assert bool(jnp.all(jnp.isfinite(out)))
    assert bool(jnp.all(out >= 0.0))          # ReLU output
    print("KERNEL_OK")
</pallas_src>

<mosaic_0001>
module attributes {stable_mosaic.version = 11 : i64} {
  func.func @spgat_kernel(%arg0: i32, %arg1: memref<1x128x8xbf16, #tpu.memory_space<vmem>>, %arg2: memref<1x128x128xbf16, #tpu.memory_space<vmem>>, %arg3: memref<8x128xbf16, #tpu.memory_space<vmem>>, %arg4: memref<128x4xf32, #tpu.memory_space<vmem>>, %arg5: memref<128x4xf32, #tpu.memory_space<vmem>>, %arg6: memref<1x128xf32, #tpu.memory_space<vmem>>, %arg7: memref<4x128xf32, #tpu.memory_space<vmem>>, %arg8: memref<128x128xbf16, #tpu.memory_space<vmem>>, %arg9: memref<128x1xf32, #tpu.memory_space<vmem>>, %arg10: memref<128x1xf32, #tpu.memory_space<vmem>>, %arg11: memref<1x128xf32, #tpu.memory_space<vmem>>, %arg12: memref<1x128x128xf32, #tpu.memory_space<vmem>>) attributes {dimension_semantics = [#tpu.dimension_semantics<parallel>], iteration_bounds = array<i64: 2>, scalar_prefetch = 0 : i64, scratch_operands = 0 : i64, tpu.core_type = #tpu.core_type<tc>, window_params = [{transform_indices = @transform_0, window_bounds = array<i64: 1, 128, 8>}, {transform_indices = @transform_1, window_bounds = array<i64: 1, 128, 128>}, {pipeline_mode = #tpu.pipeline_mode<synchronous>, transform_indices = @transform_2, window_bounds = array<i64: 8, 128>}, {pipeline_mode = #tpu.pipeline_mode<synchronous>, transform_indices = @transform_3, window_bounds = array<i64: 128, 4>}, {pipeline_mode = #tpu.pipeline_mode<synchronous>, transform_indices = @transform_4, window_bounds = array<i64: 128, 4>}, {pipeline_mode = #tpu.pipeline_mode<synchronous>, transform_indices = @transform_5, window_bounds = array<i64: 1, 128>}, {pipeline_mode = #tpu.pipeline_mode<synchronous>, transform_indices = @transform_6, window_bounds = array<i64: 4, 128>}, {pipeline_mode = #tpu.pipeline_mode<synchronous>, transform_indices = @transform_7, window_bounds = array<i64: 128, 128>}, {pipeline_mode = #tpu.pipeline_mode<synchronous>, transform_indices = @transform_8, window_bounds = array<i64: 128, 1>}, {pipeline_mode = #tpu.pipeline_mode<synchronous>, transform_indices = @transform_9, window_bounds = array<i64: 128, 1>}, {pipeline_mode = #tpu.pipeline_mode<synchronous>, transform_indices = @transform_10, window_bounds = array<i64: 1, 128>}, {transform_indices = @transform_11, window_bounds = array<i64: 1, 128, 128>}]} {
    %c0 = arith.constant 0 : index
    %c0_0 = arith.constant 0 : index
    %c0_1 = arith.constant 0 : index
    %0 = vector.load %arg2[%c0, %c0_0, %c0_1] : memref<1x128x128xbf16, #tpu.memory_space<vmem>>, vector<1x128x128xbf16>
    %1 = vector.shape_cast %0 : vector<1x128x128xbf16> to vector<128x128xbf16>
    %cst = arith.constant 0.000000e+00 : bf16
    %2 = vector.broadcast %cst : bf16 to vector<128x128xbf16>
    %3 = arith.cmpf ogt, %1, %2 : vector<128x128xbf16>
    %c0_2 = arith.constant 0 : index
    %c0_3 = arith.constant 0 : index
    %c0_4 = arith.constant 0 : index
    %4 = vector.load %arg1[%c0_2, %c0_3, %c0_4] : memref<1x128x8xbf16, #tpu.memory_space<vmem>>, vector<1x128x8xbf16>
    %5 = vector.shape_cast %4 : vector<1x128x8xbf16> to vector<128x8xbf16>
    %c0_5 = arith.constant 0 : index
    %c0_6 = arith.constant 0 : index
    %6 = vector.load %arg3[%c0_5, %c0_6] : memref<8x128xbf16, #tpu.memory_space<vmem>>, vector<8x128xbf16>
    %c0_7 = arith.constant 0 : index
    %c0_8 = arith.constant 0 : index
    %7 = vector.load %arg4[%c0_7, %c0_8] : memref<128x4xf32, #tpu.memory_space<vmem>>, vector<128x4xf32>
    %c0_9 = arith.constant 0 : index
    %c0_10 = arith.constant 0 : index
    %8 = vector.load %arg5[%c0_9, %c0_10] : memref<128x4xf32, #tpu.memory_space<vmem>>, vector<128x4xf32>
    %c0_11 = arith.constant 0 : index
    %c0_12 = arith.constant 0 : index
    %9 = vector.load %arg6[%c0_11, %c0_12] : memref<1x128xf32, #tpu.memory_space<vmem>>, vector<1x128xf32>
    %c0_13 = arith.constant 0 : index
    %c0_14 = arith.constant 0 : index
    %10 = vector.load %arg7[%c0_13, %c0_14] : memref<4x128xf32, #tpu.memory_space<vmem>>, vector<4x128xf32>
    %cst_15 = arith.constant dense<0.000000e+00> : vector<128x128xf32>
    %11 = tpu.matmul %5, %6, %cst_15 {dimension_numbers = #tpu.dot_dimension_numbers<[1], [0], [0], [1], [0, 0, 1, 1], [], []>} : vector<128x8xbf16>, vector<8x128xbf16>, vector<128x128xf32> -> vector<128x128xf32>
    %cst_16 = arith.constant dense<0.000000e+00> : vector<128x4xf32>
    %12 = tpu.matmul %11, %8, %cst_16 {dimension_numbers = #tpu.dot_dimension_numbers<[1], [0], [0], [1], [0, 0, 1, 1], [], []>} : vector<128x128xf32>, vector<128x4xf32>, vector<128x4xf32> -> vector<128x4xf32>
    %cst_17 = arith.constant dense<0.000000e+00> : vector<4x128xf32>
    %13 = tpu.matmul %7, %11, %cst_17 {dimension_numbers = #tpu.dot_dimension_numbers<[0], [1], [1], [0], [0, 1, 1, 0], [], []>} : vector<128x4xf32>, vector<128x128xf32>, vector<4x128xf32> -> vector<4x128xf32>
    %14 = vector.extract_strided_slice %12 {offsets = [0, 0], sizes = [128, 1], strides = [1, 1]} : vector<128x4xf32> to vector<128x1xf32>
    %15 = vector.extract_strided_slice %13 {offsets = [0, 0], sizes = [1, 128], strides = [1, 1]} : vector<4x128xf32> to vector<1x128xf32>
    %16 = vector.broadcast %14 : vector<128x1xf32> to vector<128x128xf32>
    %17 = vector.broadcast %15 : vector<1x128xf32> to vector<128x128xf32>
    %18 = arith.addf %16, %17 : vector<128x128xf32>
    %cst_18 = arith.constant 2.000000e-01 : f32
    %19 = vector.broadcast %cst_18 : f32 to vector<128x128xf32>
    %20 = arith.mulf %19, %18 : vector<128x128xf32>
    %21 = arith.maximumf %18, %20 : vector<128x128xf32>
    %cst_19 = arith.constant -1.000000e+30 : f32
    %22 = vector.broadcast %cst_19 : f32 to vector<128x128xf32>
    %23 = arith.select %3, %21, %22 : vector<128x128xi1>, vector<128x128xf32>
    %cst_20 = arith.constant dense<0xFF800000> : vector<128xf32>
    %24 = vector.multi_reduction <maximumf>, %23, %cst_20 [1] : vector<128x128xf32> to vector<128xf32>
    %25 = vector.shape_cast %24 : vector<128xf32> to vector<128x1xf32>
    %26 = vector.broadcast %25 : vector<128x1xf32> to vector<128x128xf32>
    %27 = arith.subf %23, %26 : vector<128x128xf32>
    %28 = math.exp %27 : vector<128x128xf32>
    %cst_21 = arith.constant dense<0.000000e+00> : vector<128xf32>
    %29 = vector.multi_reduction <add>, %28, %cst_21 [1] : vector<128x128xf32> to vector<128xf32>
    %30 = vector.shape_cast %29 : vector<128xf32> to vector<128x1xf32>
    %31 = tpu.reciprocal %30 {approx = true} : vector<128x1xf32> -> vector<128x1xf32>
    %32 = vector.broadcast %31 : vector<128x1xf32> to vector<128x128xf32>
    %33 = arith.mulf %28, %32 : vector<128x128xf32>
    %34 = vector.extract_strided_slice %10 {offsets = [0, 0], sizes = [1, 128], strides = [1, 1]} : vector<4x128xf32> to vector<1x128xf32>
    %35 = vector.broadcast %34 : vector<1x128xf32> to vector<128x128xf32>
    %36 = arith.mulf %11, %35 : vector<128x128xf32>
    %cst_22 = arith.constant dense<0.000000e+00> : vector<128x128xf32>
    %37 = tpu.matmul %33, %36, %cst_22 {dimension_numbers = #tpu.dot_dimension_numbers<[1], [0], [0], [1], [0, 0, 1, 1], [], []>} : vector<128x128xf32>, vector<128x128xf32>, vector<128x128xf32> -> vector<128x128xf32>
    %38 = vector.extract_strided_slice %12 {offsets = [0, 1], sizes = [128, 1], strides = [1, 1]} : vector<128x4xf32> to vector<128x1xf32>
    %39 = vector.extract_strided_slice %13 {offsets = [1, 0], sizes = [1, 128], strides = [1, 1]} : vector<4x128xf32> to vector<1x128xf32>
    %40 = vector.broadcast %38 : vector<128x1xf32> to vector<128x128xf32>
    %41 = vector.broadcast %39 : vector<1x128xf32> to vector<128x128xf32>
    %42 = arith.addf %40, %41 : vector<128x128xf32>
    %cst_23 = arith.constant 2.000000e-01 : f32
    %43 = vector.broadcast %cst_23 : f32 to vector<128x128xf32>
    %44 = arith.mulf %43, %42 : vector<128x128xf32>
    %45 = arith.maximumf %42, %44 : vector<128x128xf32>
    %cst_24 = arith.constant -1.000000e+30 : f32
    %46 = vector.broadcast %cst_24 : f32 to vector<128x128xf32>
    %47 = arith.select %3, %45, %46 : vector<128x128xi1>, vector<128x128xf32>
    %cst_25 = arith.constant dense<0xFF800000> : vector<128xf32>
    %48 = vector.multi_reduction <maximumf>, %47, %cst_25 [1] : vector<128x128xf32> to vector<128xf32>
    %49 = vector.shape_cast %48 : vector<128xf32> to vector<128x1xf32>
    %50 = vector.broadcast %49 : vector<128x1xf32> to vector<128x128xf32>
    %51 = arith.subf %47, %50 : vector<128x128xf32>
    %52 = math.exp %51 : vector<128x128xf32>
    %cst_26 = arith.constant dense<0.000000e+00> : vector<128xf32>
    %53 = vector.multi_reduction <add>, %52, %cst_26 [1] : vector<128x128xf32> to vector<128xf32>
    %54 = vector.shape_cast %53 : vector<128xf32> to vector<128x1xf32>
    %55 = tpu.reciprocal %54 {approx = true} : vector<128x1xf32> -> vector<128x1xf32>
    %56 = vector.broadcast %55 : vector<128x1xf32> to vector<128x128xf32>
    %57 = arith.mulf %52, %56 : vector<128x128xf32>
    %58 = vector.extract_strided_slice %10 {offsets = [1, 0], sizes = [1, 128], strides = [1, 1]} : vector<4x128xf32> to vector<1x128xf32>
    %59 = vector.broadcast %58 : vector<1x128xf32> to vector<128x128xf32>
    %60 = arith.mulf %11, %59 : vector<128x128xf32>
    %cst_27 = arith.constant dense<0.000000e+00> : vector<128x128xf32>
    %61 = tpu.matmul %57, %60, %cst_27 {dimension_numbers = #tpu.dot_dimension_numbers<[1], [0], [0], [1], [0, 0, 1, 1], [], []>} : vector<128x128xf32>, vector<128x128xf32>, vector<128x128xf32> -> vector<128x128xf32>
    %62 = arith.addf %37, %61 : vector<128x128xf32>
    %63 = vector.extract_strided_slice %12 {offsets = [0, 2], sizes = [128, 1], strides = [1, 1]} : vector<128x4xf32> to vector<128x1xf32>
    %64 = vector.extract_strided_slice %13 {offsets = [2, 0], sizes = [1, 128], strides = [1, 1]} : vector<4x128xf32> to vector<1x128xf32>
    %65 = vector.broadcast %63 : vector<128x1xf32> to vector<128x128xf32>
    %66 = vector.broadcast %64 : vector<1x128xf32> to vector<128x128xf32>
    %67 = arith.addf %65, %66 : vector<128x128xf32>
    %cst_28 = arith.constant 2.000000e-01 : f32
    %68 = vector.broadcast %cst_28 : f32 to vector<128x128xf32>
    %69 = arith.mulf %68, %67 : vector<128x128xf32>
    %70 = arith.maximumf %67, %69 : vector<128x128xf32>
    %cst_29 = arith.constant -1.000000e+30 : f32
    %71 = vector.broadcast %cst_29 : f32 to vector<128x128xf32>
    %72 = arith.select %3, %70, %71 : vector<128x128xi1>, vector<128x128xf32>
    %cst_30 = arith.constant dense<0xFF800000> : vector<128xf32>
    %73 = vector.multi_reduction <maximumf>, %72, %cst_30 [1] : vector<128x128xf32> to vector<128xf32>
    %74 = vector.shape_cast %73 : vector<128xf32> to vector<128x1xf32>
    %75 = vector.broadcast %74 : vector<128x1xf32> to vector<128x128xf32>
    %76 = arith.subf %72, %75 : vector<128x128xf32>
    %77 = math.exp %76 : vector<128x128xf32>
    %cst_31 = arith.constant dense<0.000000e+00> : vector<128xf32>
    %78 = vector.multi_reduction <add>, %77, %cst_31 [1] : vector<128x128xf32> to vector<128xf32>
    %79 = vector.shape_cast %78 : vector<128xf32> to vector<128x1xf32>
    %80 = tpu.reciprocal %79 {approx = true} : vector<128x1xf32> -> vector<128x1xf32>
    %81 = vector.broadcast %80 : vector<128x1xf32> to vector<128x128xf32>
    %82 = arith.mulf %77, %81 : vector<128x128xf32>
    %83 = vector.extract_strided_slice %10 {offsets = [2, 0], sizes = [1, 128], strides = [1, 1]} : vector<4x128xf32> to vector<1x128xf32>
    %84 = vector.broadcast %83 : vector<1x128xf32> to vector<128x128xf32>
    %85 = arith.mulf %11, %84 : vector<128x128xf32>
    %cst_32 = arith.constant dense<0.000000e+00> : vector<128x128xf32>
    %86 = tpu.matmul %82, %85, %cst_32 {dimension_numbers = #tpu.dot_dimension_numbers<[1], [0], [0], [1], [0, 0, 1, 1], [], []>} : vector<128x128xf32>, vector<128x128xf32>, vector<128x128xf32> -> vector<128x128xf32>
    %87 = arith.addf %62, %86 : vector<128x128xf32>
    %88 = vector.extract_strided_slice %12 {offsets = [0, 3], sizes = [128, 1], strides = [1, 1]} : vector<128x4xf32> to vector<128x1xf32>
    %89 = vector.extract_strided_slice %13 {offsets = [3, 0], sizes = [1, 128], strides = [1, 1]} : vector<4x128xf32> to vector<1x128xf32>
    %90 = vector.broadcast %88 : vector<128x1xf32> to vector<128x128xf32>
    %91 = vector.broadcast %89 : vector<1x128xf32> to vector<128x128xf32>
    %92 = arith.addf %90, %91 : vector<128x128xf32>
    %cst_33 = arith.constant 2.000000e-01 : f32
    %93 = vector.broadcast %cst_33 : f32 to vector<128x128xf32>
    %94 = arith.mulf %93, %92 : vector<128x128xf32>
    %95 = arith.maximumf %92, %94 : vector<128x128xf32>
    %cst_34 = arith.constant -1.000000e+30 : f32
    %96 = vector.broadcast %cst_34 : f32 to vector<128x128xf32>
    %97 = arith.select %3, %95, %96 : vector<128x128xi1>, vector<128x128xf32>
    %cst_35 = arith.constant dense<0xFF800000> : vector<128xf32>
    %98 = vector.multi_reduction <maximumf>, %97, %cst_35 [1] : vector<128x128xf32> to vector<128xf32>
    %99 = vector.shape_cast %98 : vector<128xf32> to vector<128x1xf32>
    %100 = vector.broadcast %99 : vector<128x1xf32> to vector<128x128xf32>
    %101 = arith.subf %97, %100 : vector<128x128xf32>
    %102 = math.exp %101 : vector<128x128xf32>
    %cst_36 = arith.constant dense<0.000000e+00> : vector<128xf32>
    %103 = vector.multi_reduction <add>, %102, %cst_36 [1] : vector<128x128xf32> to vector<128xf32>
    %104 = vector.shape_cast %103 : vector<128xf32> to vector<128x1xf32>
    %105 = tpu.reciprocal %104 {approx = true} : vector<128x1xf32> -> vector<128x1xf32>
    %106 = vector.broadcast %105 : vector<128x1xf32> to vector<128x128xf32>
    %107 = arith.mulf %102, %106 : vector<128x128xf32>
    %108 = vector.extract_strided_slice %10 {offsets = [3, 0], sizes = [1, 128], strides = [1, 1]} : vector<4x128xf32> to vector<1x128xf32>
    %109 = vector.broadcast %108 : vector<1x128xf32> to vector<128x128xf32>
    %110 = arith.mulf %11, %109 : vector<128x128xf32>
    %cst_37 = arith.constant dense<0.000000e+00> : vector<128x128xf32>
    %111 = tpu.matmul %107, %110, %cst_37 {dimension_numbers = #tpu.dot_dimension_numbers<[1], [0], [0], [1], [0, 0, 1, 1], [], []>} : vector<128x128xf32>, vector<128x128xf32>, vector<128x128xf32> -> vector<128x128xf32>
    %112 = arith.addf %87, %111 : vector<128x128xf32>
    %113 = vector.broadcast %9 : vector<1x128xf32> to vector<128x128xf32>
    %114 = arith.addf %112, %113 : vector<128x128xf32>
    %115 = arith.truncf %114 : vector<128x128xf32> to vector<128x128xbf16>
    %c0_38 = arith.constant 0 : index
    %c0_39 = arith.constant 0 : index
    %116 = vector.load %arg8[%c0_38, %c0_39] : memref<128x128xbf16, #tpu.memory_space<vmem>>, vector<128x128xbf16>
    %c0_40 = arith.constant 0 : index
    %c0_41 = arith.constant 0 : index
    %117 = vector.load %arg9[%c0_40, %c0_41] : memref<128x1xf32, #tpu.memory_space<vmem>>, vector<128x1xf32>
    %c0_42 = arith.constant 0 : index
    %c0_43 = arith.constant 0 : index
    %118 = vector.load %arg10[%c0_42, %c0_43] : memref<128x1xf32, #tpu.memory_space<vmem>>, vector<128x1xf32>
    %c0_44 = arith.constant 0 : index
    %c0_45 = arith.constant 0 : index
    %119 = vector.load %arg11[%c0_44, %c0_45] : memref<1x128xf32, #tpu.memory_space<vmem>>, vector<1x128xf32>
    %cst_46 = arith.constant dense<0.000000e+00> : vector<128x128xf32>
    %120 = tpu.matmul %115, %116, %cst_46 {dimension_numbers = #tpu.dot_dimension_numbers<[1], [0], [0], [1], [0, 0, 1, 1], [], []>} : vector<128x128xbf16>, vector<128x128xbf16>, vector<128x128xf32> -> vector<128x128xf32>
    %cst_47 = arith.constant dense<0.000000e+00> : vector<128x1xf32>
    %121 = tpu.matmul %120, %118, %cst_47 {dimension_numbers = #tpu.dot_dimension_numbers<[1], [0], [0], [1], [0, 0, 1, 1], [], []>} : vector<128x128xf32>, vector<128x1xf32>, vector<128x1xf32> -> vector<128x1xf32>
    %cst_48 = arith.constant dense<0.000000e+00> : vector<1x128xf32>
    %122 = tpu.matmul %117, %120, %cst_48 {dimension_numbers = #tpu.dot_dimension_numbers<[0], [1], [1], [0], [0, 1, 1, 0], [], []>} : vector<128x1xf32>, vector<128x128xf32>, vector<1x128xf32> -> vector<1x128xf32>
    %123 = vector.broadcast %121 : vector<128x1xf32> to vector<128x128xf32>
    %124 = vector.broadcast %122 : vector<1x128xf32> to vector<128x128xf32>
    %125 = arith.addf %123, %124 : vector<128x128xf32>
    %cst_49 = arith.constant 2.000000e-01 : f32
    %126 = vector.broadcast %cst_49 : f32 to vector<128x128xf32>
    %127 = arith.mulf %126, %125 : vector<128x128xf32>
    %128 = arith.maximumf %125, %127 : vector<128x128xf32>
    %cst_50 = arith.constant -1.000000e+30 : f32
    %129 = vector.broadcast %cst_50 : f32 to vector<128x128xf32>
    %130 = arith.select %3, %128, %129 : vector<128x128xi1>, vector<128x128xf32>
    %cst_51 = arith.constant dense<0xFF800000> : vector<128xf32>
    %131 = vector.multi_reduction <maximumf>, %130, %cst_51 [1] : vector<128x128xf32> to vector<128xf32>
    %132 = vector.shape_cast %131 : vector<128xf32> to vector<128x1xf32>
    %133 = vector.broadcast %132 : vector<128x1xf32> to vector<128x128xf32>
    %134 = arith.subf %130, %133 : vector<128x128xf32>
    %135 = math.exp %134 : vector<128x128xf32>
    %cst_52 = arith.constant dense<0.000000e+00> : vector<128xf32>
    %136 = vector.multi_reduction <add>, %135, %cst_52 [1] : vector<128x128xf32> to vector<128xf32>
    %137 = vector.shape_cast %136 : vector<128xf32> to vector<128x1xf32>
    %138 = tpu.reciprocal %137 {approx = true} : vector<128x1xf32> -> vector<128x1xf32>
    %139 = vector.broadcast %138 : vector<128x1xf32> to vector<128x128xf32>
    %140 = arith.mulf %135, %139 : vector<128x128xf32>
    %cst_53 = arith.constant dense<0.000000e+00> : vector<128x128xf32>
    %141 = tpu.matmul %140, %120, %cst_53 {dimension_numbers = #tpu.dot_dimension_numbers<[1], [0], [0], [1], [0, 0, 1, 1], [], []>} : vector<128x128xf32>, vector<128x128xf32>, vector<128x128xf32> -> vector<128x128xf32>
    %142 = vector.broadcast %119 : vector<1x128xf32> to vector<128x128xf32>
    %143 = arith.addf %141, %142 : vector<128x128xf32>
    %144 = arith.mulf %143, %143 : vector<128x128xf32>
    %cst_54 = arith.constant dense<0.000000e+00> : vector<128xf32>
    %145 = vector.multi_reduction <add>, %144, %cst_54 [1] : vector<128x128xf32> to vector<128xf32>
    %146 = vector.shape_cast %145 : vector<128xf32> to vector<128x1xf32>
    %cst_55 = arith.constant 1.000000e-24 : f32
    %147 = vector.broadcast %cst_55 : f32 to vector<128x1xf32>
    %148 = arith.maximumf %146, %147 : vector<128x1xf32>
    %149 = math.rsqrt %148 : vector<128x1xf32>
    %150 = vector.broadcast %149 : vector<128x1xf32> to vector<128x128xf32>
    %151 = arith.mulf %143, %150 : vector<128x128xf32>
    %cst_56 = arith.constant 0.000000e+00 : f32
    %152 = vector.broadcast %cst_56 : f32 to vector<128x128xf32>
    %153 = arith.maximumf %151, %152 : vector<128x128xf32>
    %c0_57 = arith.constant 0 : index
    %c0_58 = arith.constant 0 : index
    %c0_59 = arith.constant 0 : index
    %154 = vector.load %arg12[%c0_57, %c0_58, %c0_59] : memref<1x128x128xf32, #tpu.memory_space<vmem>>, vector<1x128x128xf32>
    %155 = vector.shape_cast %154 : vector<1x128x128xf32> to vector<128x128xf32>
    %156 = vector.shape_cast %153 : vector<128x128xf32> to vector<1x128x128xf32>
    tpu.vector_store %arg12[%c0_57, %c0_58, %c0_59], %156 {strides = array<i32>} : memref<1x128x128xf32, #tpu.memory_space<vmem>>, vector<1x128x128xf32>,
    return
  }
  func.func @transform_0(%arg0: i32) -> (i32, i32, i32) {
    %c0_i32 = arith.constant 0 : i32
    %c0_i32_0 = arith.constant 0 : i32
    %c0_i32_1 = arith.constant 0 : i32
    return %arg0, %c0_i32, %c0_i32_0 : i32, i32, i32
  }
  func.func @transform_1(%arg0: i32) -> (i32, i32, i32) {
    %c0_i32 = arith.constant 0 : i32
    %c0_i32_0 = arith.constant 0 : i32
    %c0_i32_1 = arith.constant 0 : i32
    return %arg0, %c0_i32, %c0_i32_0 : i32, i32, i32
  }
  func.func @transform_2(%arg0: i32) -> (i32, i32) {
    %c0_i32 = arith.constant 0 : i32
    %c0_i32_0 = arith.constant 0 : i32
    %c0_i32_1 = arith.constant 0 : i32
    return %c0_i32, %c0_i32_0 : i32, i32
  }
  func.func @transform_3(%arg0: i32) -> (i32, i32) {
    %c0_i32 = arith.constant 0 : i32
    %c0_i32_0 = arith.constant 0 : i32
    %c0_i32_1 = arith.constant 0 : i32
    return %c0_i32, %c0_i32_0 : i32, i32
  }
  func.func @transform_4(%arg0: i32) -> (i32, i32) {
    %c0_i32 = arith.constant 0 : i32
    %c0_i32_0 = arith.constant 0 : i32
    %c0_i32_1 = arith.constant 0 : i32
    return %c0_i32, %c0_i32_0 : i32, i32
  }
  func.func @transform_5(%arg0: i32) -> (i32, i32) {
    %c0_i32 = arith.constant 0 : i32
    %c0_i32_0 = arith.constant 0 : i32
    %c0_i32_1 = arith.constant 0 : i32
    return %c0_i32, %c0_i32_0 : i32, i32
  }
  func.func @transform_6(%arg0: i32) -> (i32, i32) {
    %c0_i32 = arith.constant 0 : i32
    %c0_i32_0 = arith.constant 0 : i32
    %c0_i32_1 = arith.constant 0 : i32
    return %c0_i32, %c0_i32_0 : i32, i32
  }
  func.func @transform_7(%arg0: i32) -> (i32, i32) {
    %c0_i32 = arith.constant 0 : i32
    %c0_i32_0 = arith.constant 0 : i32
    %c0_i32_1 = arith.constant 0 : i32
    return %c0_i32, %c0_i32_0 : i32, i32
  }
  func.func @transform_8(%arg0: i32) -> (i32, i32) {
    %c0_i32 = arith.constant 0 : i32
    %c0_i32_0 = arith.constant 0 : i32
    %c0_i32_1 = arith.constant 0 : i32
    return %c0_i32, %c0_i32_0 : i32, i32
  }
  func.func @transform_9(%arg0: i32) -> (i32, i32) {
    %c0_i32 = arith.constant 0 : i32
    %c0_i32_0 = arith.constant 0 : i32
    %c0_i32_1 = arith.constant 0 : i32
    return %c0_i32, %c0_i32_0 : i32, i32
  }
  func.func @transform_10(%arg0: i32) -> (i32, i32) {
    %c0_i32 = arith.constant 0 : i32
    %c0_i32_0 = arith.constant 0 : i32
    %c0_i32_1 = arith.constant 0 : i32
    return %c0_i32, %c0_i32_0 : i32, i32
  }
  func.func @transform_11(%arg0: i32) -> (i32, i32, i32) {
    %c0_i32 = arith.constant 0 : i32
    %c0_i32_0 = arith.constant 0 : i32
    %c0_i32_1 = arith.constant 0 : i32
    return %arg0, %c0_i32, %c0_i32_0 : i32, i32, i32
  }
}

</mosaic_0001>

<bundles_post_ra>
// kernel: tpu_custom_call.1
= control target key start
LH: loop header
LB: loop body
LE: loop exit
PB: predicated region body
PF: predicated region fallthrough
CT: control target
= control target key end

     0   :  { %s7660_s0 = inlined_call_operand.vmem [shape: bf16[2,128,8], index: 0, kind: input, shape index: {}]   ;;  %s7661_s1 = inlined_call_operand.vmem [shape: bf16[2,128,128], index: 1, kind: input, shape index: {}]   ;;  %s7662_s2 = inlined_call_operand.vmem [shape: bf16[8,128], index: 2, kind: input, shape index: {}]   ;;  %s7663_s3 = inlined_call_operand.vmem [shape: f32[128,4], index: 3, kind: input, shape index: {}]   ;;  %s7664_s4 = inlined_call_operand.vmem [shape: f32[128,4], index: 4, kind: input, shape index: {}]   ;;  %s7665_s5 = inlined_call_operand.vmem [shape: f32[1,128], index: 5, kind: input, shape index: {}]   ;;  %s7666_s6 = inlined_call_operand.vmem [shape: f32[4,128], index: 6, kind: input, shape index: {}]   ;;  %s7667_s7 = inlined_call_operand.vmem [shape: bf16[128,128], index: 7, kind: input, shape index: {}]   ;;  %s7668_s8 = inlined_call_operand.vmem [shape: f32[128,1], index: 8, kind: input, shape index: {}]   ;;  %s7669_s9 = inlined_call_operand.vmem [shape: f32[128,1], index: 9, kind: input, shape index: {}]   ;;  %s7670_s10 = inlined_call_operand.vmem [shape: f32[1,128], index: 10, kind: input, shape index: {}]   ;;  %s7671_s11 = inlined_call_operand.hbm [shape: f32[2,128,128], index: 11, kind: output, shape index: {}]  }
   0x1   :  { %7765 = sst [smem:[#allocation77_spill]] %s7660_s0 }
   0x2   :  { %16 = vsyncpa [#allocation3], 0 }
   0x3   :  { %18 = vsyncpa [#allocation3 + $0x1], 0  ;;  %s5649_s17 = smov 0   ;;  %s5651_s18 = smov 0  }
   0x4   :  { %s5653_s19 = smov 0   ;;  %s5655_s20 = smov 0  }
   0x5 LB: > { %s5670_s21 = sadd.s32 4294967295, %s5577_s20   ;;  %s3894_s22 = sadd.s32 4294967294, %s5577_s20   ;;  %s5577_s20 = sphi %s5655_s20, %s7976_s20   ;;  %s5573_s19 = sphi %s5653_s19, %s7975_s19   ;;  %s5569_s18 = sphi %s5651_s18, %s7974_s18   ;;  %s5565_s17 = sphi %s5649_s17, %s7973_s17  }
   0x6   : > { %s5674_s23 = sadd.s32 1, %s5577_s20   ;;  %s272_s24 = sadd.s32 1, %s5573_s19 }
   0x7   : > { %s269_s25 = ssub.s32 %s5577_s20, %s5674_s23  ;;  %p282_p0 = scmp.ne.s32.totalorder %s5573_s19, %s5569_s18 }
   0x8   : > { %p270_p1 = scmp.eq.s32.totalorder %s269_s25, 0  ;;  %p283_p2 = scmp.eq.s32.totalorder %s5670_s21, 1 }
   0x9   : > { %p288_p3 = scmp.ne.s32.totalorder %s5569_s18, %s5565_s17  ;;  %p289_p4 = scmp.eq.s32.totalorder %s3894_s22, 1 }
   0xa   : > { %s5685_s26 = scalar_select %p270_p1, %s5573_s19, %s272_s24  }
   0xb   : > { %p5687_p5 = por %p283_p2, %p282_p0  ;;  %p5691_p6 = por %p289_p4, %p288_p3 }
   0xc   : > { %p3897_p7 = scmp.ge.s32.totalorder %s5577_s20, 1  ;;  %p350_p8 = scmp.lt.s32.totalorder %s5577_s20, 3 }
   0xe   : > { %p351_p9 = pnand %p3897_p7, %p350_p8 }
  0x10   : > { %354 = sbr.rel (%p351_p9) target bundleno = 2775 (0xad7), region = 64 }
  0x17   : > { %v456_v0 = vld [vmem:[%s7662_s2] sm:$0xf]  ;;  %vm556_vm0 = vcmask 1043456   ;;  %p395_p10 = scmp.lt.s32.totalorder %s5670_s21, 1  ;;  %v474_v3 = vld [vmem:[%s7664_s4 + $0x8] sm:$0xff]  ;;  %v475_v4 = vld [vmem:[%s7664_s4 + $0x10] sm:$0xff]  ;;  %v984_v53 = vlaneseq }
  0x18   : > { %v473_v1 = vld [vmem:[%s7664_s4] sm:$0xff]  ;;  %5052 = vmatprep.subr.msk.bf16.mxu0 %vm556_vm0, %v456_v0  ;;  %v558_v2 = vsel %vm556_vm0, %v456_v0, 0  ;;  %v476_v5 = vld [vmem:[%s7664_s4 + $0x18] sm:$0xff]  ;;  %v478_v9 = vld [vmem:[%s7664_s4 + $0x28] sm:$0xff]  ;;  %s7768_s0 = sld [smem:[#allocation77_spill]]  ;;  %vm531_vm1 = vcmask 64512  }
  0x19   : > { %4221 = vmatpush3.bf16.msra.mxu0 %v558_v2  ;;  %s5714_s29 = scalar_select %p395_p10, %s5670_s21, 1  ;;  %v4732_v6 = vpack.c.bf16 %v474_v3, %v473_v1  ;;  %v4736_v7 = vpack.c.bf16 %v476_v5, %v475_v4  ;;  %v477_v8 = vld [vmem:[%s7664_s4 + $0x20] sm:$0xff]  ;;  %v479_v10 = vld [vmem:[%s7664_s4 + $0x30] sm:$0xff]  ;;  %v480_v11 = vld [vmem:[%s7664_s4 + $0x38] sm:$0xff]  ;;  %v7674_v36 = vmov 0.0|0.0   ;;  %vm7713_vm2 = vmmov 0  }
  0x1a   : > { %v4740_v13 = vpack.c.bf16 %v478_v9, %v477_v8  ;;  %v4744_v16 = vpack.c.bf16 %v480_v11, %v479_v10  ;;  %v481_v17 = vld [vmem:[%s7664_s4 + $0x40] sm:$0xff]  ;;  %v482_v18 = vld [vmem:[%s7664_s4 + $0x48] sm:$0xff]  ;;  %v483_v21 = vld [vmem:[%s7664_s4 + $0x50] sm:$0xff]  ;;  %4764 = vmatprep.subr.bf16.mxu0 %v7674_v36  ;;  %v7673_v51 = vmov 0.0   ;;  %v5582_v52 = vmov 1  }
  0x1b   : > { %s7672_s15 = sshll.u32 %s5714_s29, 6  ;;  %4733 = vmatprep.subr.bf16.mxu1 %v4732_v6  ;;  %v484_v22 = vld [vmem:[%s7664_s4 + $0x58] sm:$0xff]  ;;  %v4748_v23 = vpack.c.bf16 %v482_v18, %v481_v17  ;;  %v485_v25 = vld [vmem:[%s7664_s4 + $0x60] sm:$0xff]  ;;  %v486_v26 = vld [vmem:[%s7664_s4 + $0x68] sm:$0xff]  ;;  %5101 = vset.pattern.permute.xlu1 %v5582_v52  ;;  %v5828_v54 = vshrl.u32 %v984_v53, 7  ;;  %s7794_s25 = sshll.u32 %s5714_s29, 6 }
  0x1c   : > { %4735 = vmatpush3.bf16.msra.mxu1 %v4732_v6  ;;  %v4752_v24 = vpack.c.bf16 %v484_v22, %v483_v21  ;;  %v4756_v29 = vpack.c.bf16 %v486_v26, %v485_v25  ;;  %v487_v31 = vld [vmem:[%s7664_s4 + $0x70] sm:$0xff]  ;;  %v488_v32 = vld [vmem:[%s7664_s4 + $0x78] sm:$0xff]  ;;  %v457_v34 = vld [vmem:[%s7663_s3] sm:$0xff]  ;;  %s6147_s12 = scalar_lea.vmem %s7661_s1, %s7794_s25  ;;  %s392_s25 = sand.u32 1, %s5569_s18  }
  0x1d   : > { %4737 = vmatprep.subr.bf16.mxu1 %v4736_v7  ;;  %v4760_v33 = vpack.c.bf16 %v488_v32, %v487_v31  ;;  %802 = vxpose.xlu0.b32.start [1/16] (narrow) %v457_v34, 8  ;;  %v458_v35 = vld [vmem:[%s7663_s3 + $0x8] sm:$0xff]  ;;  %v459_v37 = vld [vmem:[%s7663_s3 + $0x10] sm:$0xff]  ;;  %v460_v38 = vld [vmem:[%s7663_s3 + $0x18] sm:$0xff]  ;;  %v1330_v55 = vsub.s32 1, %v5828_v54  ;;  %v5832_v56 = vsub.s32 0, %v5828_v54 }
  0x1e   : > { %s5728_s24 = scalar_lea.vmem %s7768_s0, %s7672_s15  ;;  %v461_v39 = vld [vmem:[%s7663_s3 + $0x20] sm:$0xff]  ;;  %v462_v40 = vld [vmem:[%s7663_s3 + $0x28] sm:$0xff]  ;;  %v463_v41 = vld [vmem:[%s7663_s3 + $0x30] sm:$0xff]  ;;  %v7677_v57 = vsub.s32 2, %v5828_v54  ;;  %v7676_v58 = vsub.s32 3, %v5828_v54  ;;  %s3898_s15 = sshll.u32 %s392_s25, 7 }
  0x1f   : > { %v5147_v12 = vld [vmem:[%s5728_s24] sm:$0xff]   ;;  %v5148_v14 = vld [vmem:[%s5728_s24 + $0x8] sm:$0xff]   ;;  %v5149_v15 = vld [vmem:[%s5728_s24 + $0x10] sm:$0xff]   ;;  %7769 = vst [vmem:[#allocation5_spill] sm:$0xff] %v5832_v56  ;;  %s7576_s30 = scalar_lea.vmem [#allocation2], %s3898_s15  ;;  %s5586_s0 = smov [#allocation2]  }
  0x20   : > { %4222 = vmatprep.mubr.msk.bf16.mxu0 %vm531_vm1, %v5147_v12  ;;  %4739 = vmatpush3.bf16.msra.mxu1 %v4736_v7  ;;  %v5150_v19 = vld [vmem:[%s5728_s24 + $0x18] sm:$0xff]   ;;  %v5151_v20 = vld [vmem:[%s5728_s24 + $0x20] sm:$0xff]   ;;  %v5152_v27 = vld [vmem:[%s5728_s24 + $0x28] sm:$0xff]   ;;  %s3820_s29 = sshll.u32 %s7576_s30, 4  ;;  %s5519_s22 = sshll.u32 %s5586_s0, 4  ;;  %s7613_s29 = int_to_ptr.vmem [resolvable:$true] %s3820_s29  ;;  %s5520_s22 = int_to_ptr.vmem [resolvable:$false] %s5519_s22 }
  0x21   : > { %4223 = vmatmul.mubr.msk.bf16.vlgmr.msra.gmra.mrb[0].mxu0 %vm531_vm1, %v5148_v14  ;;  %4741 = vmatprep.subr.bf16.mxu1 %v4740_v13  ;;  %v5153_v28 = vld [vmem:[%s5728_s24 + $0x30] sm:$0xff]   ;;  %v5154_v30 = vld [vmem:[%s5728_s24 + $0x38] sm:$0xff]   ;;  %v465_v43 = vld [vmem:[%s7663_s3 + $0x40] sm:$0xff]  ;;  %s5515_s24 = scalar_lea.vmem %s7613_s29, 2048  ;;  %s5521_s15 = scalar_lea.vmem %s5520_s22, 4096 }
  0x22   : > { %4226 = vmatprep.mubr.msk.bf16.mxu0 %vm531_vm1, %v5149_v15  ;;  %803 = vxpose.xlu0.b32.cont [2/16] (narrow) %v458_v35, 8  ;;  %v464_v42 = vld [vmem:[%s7663_s3 + $0x38] sm:$0xff]  ;;  %v466_v44 = vld [vmem:[%s7663_s3 + $0x48] sm:$0xff]  ;;  %v467_v45 = vld [vmem:[%s7663_s3 + $0x50] sm:$0xff]  ;;  %p5516_p11 = scmp.ne.s32.totalorder %s7613_s29, %s5515_s24  ;;  %p5522_p0 = scmp.lt.s32.totalorder %s7613_s29, %s5520_s22 }
  0x23   : > { %v468_v46 = vld [vmem:[%s7663_s3 + $0x58] sm:$0xff]  ;;  %v469_v47 = vld [vmem:[%s7663_s3 + $0x60] sm:$0xff]  ;;  %v470_v48 = vld [vmem:[%s7663_s3 + $0x68] sm:$0xff]  ;;  %p5523_p1 = scmp.lt.s32.totalorder %s5521_s15, %s5515_s24 }
  0x24   : > { %4743 = vmatpush3.bf16.msra.mxu1 %v4740_v13  ;;  %v471_v49 = vld [vmem:[%s7663_s3 + $0x70] sm:$0xff]  ;;  %v472_v50 = vld [vmem:[%s7663_s3 + $0x78] sm:$0xff]  ;;  %v490_v59 = vld [vmem:[%s7666_s6] sm:$0xf]  ;;  %p5517_p12 = pnand %p5516_p11, %p5687_p5 }
  0x25   : > { %4745 = vmatprep.subr.bf16.mxu1 %v4744_v16  ;;  %v5841_v60 = vrot.slane %v490_v59, %v1330_v55  ;;  %v5844_v61 = vrot.slane %v490_v59, %v5832_v56  ;;  %v5848_v62 = vrot.slane %v490_v59, %v7677_v57  ;;  %v5852_v63 = vrot.slane %v490_v59, %v7676_v58  ;;  %p5524_p2 = por %p5523_p1, %p5522_p0 }
  0x26   : > { %804 = vxpose.xlu0.b32.cont [3/16] (narrow) %v459_v37, 8  ;;  %p5518_p13 = pneg %p5517_p12 }
  0x28   : > { %4747 = vmatpush3.bf16.msra.mxu1 %v4744_v16  ;;  %p5525_p3 = pnand %p5524_p2, %p5518_p13 }
  0x29   : > { %4227 = vmatmul.mubr.msk.bf16.gmra.mrb[4].mxu0 %vm531_vm1, %v5150_v19  ;;  %4749 = vmatprep.subr.bf16.mxu1 %v4748_v23 }
  0x2a   : > { %4230 = vmatprep.mubr.msk.bf16.mxu0 %vm531_vm1, %v5151_v20  ;;  %805 = vxpose.xlu0.b32.cont [4/16] (narrow) %v460_v38, 8 }
  0x2c   : > { %4751 = vmatpush3.bf16.msra.mxu1 %v4748_v23 }
  0x2d   : > { %4753 = vmatprep.subr.bf16.mxu1 %v4752_v24 }
  0x2e   : > { %806 = vxpose.xlu0.b32.cont [5/16] (narrow) %v461_v39, 8 }
  0x30   : > { %4755 = vmatpush3.bf16.msra.mxu1 %v4752_v24 }
  0x31   : > { %4231 = vmatmul.mubr.msk.bf16.gmra.mrb[8].mxu0 %vm531_vm1, %v5152_v27  ;;  %4757 = vmatprep.subr.bf16.mxu1 %v4756_v29 }
  0x32   : > { %4234 = vmatprep.mubr.msk.bf16.mxu0 %vm531_vm1, %v5153_v28  ;;  %807 = vxpose.xlu0.b32.cont [6/16] (narrow) %v462_v40, 8 }
  0x34   : > { %4759 = vmatpush3.bf16.msra.mxu1 %v4756_v29 }
  0x35   : > { %4761 = vmatprep.subr.bf16.mxu1 %v4760_v33 }
  0x36   : > { %808 = vxpose.xlu0.b32.cont [7/16] (narrow) %v463_v41, 8 }
  0x38   : > { %4763 = vmatpush3.bf16.msra.mxu1 %v4760_v33 }
  0x39   : > { %4235 = vmatmul.mubr.msk.bf16.gmra.mrb[12].mxu0 %vm531_vm1, %v5154_v30 }
  0x3a   : > { %809 = vxpose.xlu0.b32.cont [8/16] (narrow) %v464_v42, 8  ;;  %4326 = vmatprep.mubr.msk.f32.mxu0 %vm7713_vm2, %v7673_v51 }
  0x3e   : > { %810 = vxpose.xlu0.b32.cont [9/16] (narrow) %v465_v43, 8 }
  0x42   : > { %811 = vxpose.xlu0.b32.cont [10/16] (narrow) %v466_v44, 8 }
  0x46   : > { %812 = vxpose.xlu0.b32.cont [11/16] (narrow) %v467_v45, 8 }
  0x4a   : > { %813 = vxpose.xlu0.b32.cont [12/16] (narrow) %v468_v46, 8 }
  0x4e   : > { %814 = vxpose.xlu0.b32.cont [13/16] (narrow) %v469_v47, 8 }
  0x52   : > { %815 = vxpose.xlu0.b32.cont [14/16] (narrow) %v470_v48, 8 }
  0x56   : > { %816 = vxpose.xlu0.b32.cont [15/16] (narrow) %v471_v49, 8 }
  0x5a   : > { %817 = vxpose.xlu0.b32.end [16/16] (narrow) %v472_v50, 8 }
  0xf4   : > { %v5854_v0 = vpop.f32.mrb[0].mxu0 }
  0xf5   : > { %v594_v1 = vpop.f32.mrb[1].mxu0  ;;  %v1546_v2 = vmul.f32 %v5854_v0, %v5841_v60  ;;  %v1250_v3 = vmul.f32 %v5854_v0, %v5844_v61  ;;  %v2132_v4 = vmul.f32 %v5854_v0, %v5848_v62  ;;  %v2589_v5 = vmul.f32 %v5854_v0, %v5852_v63 }
  0xf6   : > { %v4225_v6 = vpop.f32.mrb[2].mxu0  ;;  %4270 = vmatprep.mubr.f32.mxu1 %v594_v1  ;;  %v1544_v7 = vmul.f32 %v5841_v60, %v594_v1  ;;  %v1248_v8 = vmul.f32 %v5844_v61, %v594_v1  ;;  %v2130_v9 = vmul.f32 %v5848_v62, %v594_v1  ;;  %v2587_v10 = vmul.f32 %v5852_v63, %v594_v1 }
  0xf7   : > { %v597_v11 = vpop.f32.mrb[3].mxu0  ;;  %v1547_v12 = vmul.f32 %v4225_v6, %v5841_v60  ;;  %v4768_v13 = vpack.c.bf16 %v4225_v6, %v5854_v0  ;;  %v1251_v14 = vmul.f32 %v4225_v6, %v5844_v61  ;;  %v2133_v15 = vmul.f32 %v4225_v6, %v5848_v62 }
  0xf8   : > { %4271 = vmatmul.mubr.f32.vlgmr.msra.gmra.mrb[0].mxu1 %v597_v11  ;;  %v4765_v16 = vpack.c.bf16 %v597_v11, %v594_v1  ;;  %v1545_v17 = vmul.f32 %v5841_v60, %v597_v11  ;;  %v1249_v18 = vmul.f32 %v5844_v61, %v597_v11  ;;  %v2131_v19 = vmul.f32 %v5848_v62, %v597_v11 }
  0xf9   : > { %4273 = vmatprep.mubr.f32.mxu1 %v5854_v0  ;;  %v4792_v20 = vpack.c.bf16 %v1547_v12, %v1546_v2  ;;  %v5876_v21 = vpack.c.bf16 %v1251_v14, %v1250_v3  ;;  %v5878_v22 = vpack.c.bf16 %v2133_v15, %v2132_v4  ;;  %v2588_v23 = vmul.f32 %v5852_v63, %v597_v11 }
  0xfa   : > { %4766 = vmatpush3.bf16.xpose.msra.mxu0 %v4765_v16  ;;  %v4788_v24 = vpack.c.bf16 %v1545_v17, %v1544_v7  ;;  %v5881_v25 = vpack.c.bf16 %v1249_v18, %v1248_v8  ;;  %v5883_v26 = vpack.c.bf16 %v2131_v19, %v2130_v9  ;;  %v2590_v27 = vmul.f32 %v4225_v6, %v5852_v63 }
  0xfb   : > { %7770 = vst [vmem:[#allocation6_spill] sm:$0xff] %v5876_v21  ;;  %7771 = vst [vmem:[#allocation7_spill] sm:$0xff] %v5878_v22  ;;  %4767 = vmatprep.subr.bf16.mxu0 %v7674_v36  ;;  %v5887_v28 = vpack.c.bf16 %v2588_v23, %v2587_v10 }
  0xfc   : > { %7772 = vst [vmem:[#allocation8_spill] sm:$0xff] %v5881_v25  ;;  %7773 = vst [vmem:[#allocation9_spill] sm:$0xff] %v5883_v26  ;;  %v5889_v29 = vpop.f32.mrb[4].mxu0  ;;  %4274 = vmatmul.mubr.f32.gmra.mrb[2].mxu1 %v4225_v6  ;;  %4789 = vmatprep.subr.bf16.mxu1 %v4788_v24  ;;  %v5891_v30 = vpack.c.bf16 %v2590_v27, %v2589_v5 }
  0xfd   : > { %7774 = vst [vmem:[#allocation10_spill] sm:$0xff] %v5887_v28  ;;  %v5893_v31 = vpop.f32.mrb[5].mxu0  ;;  %4791 = vmatpush3.bf16.msra.mxu1 %v4788_v24  ;;  %v1550_v32 = vmul.f32 %v5889_v29, %v5841_v60  ;;  %v1254_v33 = vmul.f32 %v5889_v29, %v5844_v61  ;;  %v2136_v34 = vmul.f32 %v5889_v29, %v5848_v62 }
  0xfe   : > { %7775 = vst [vmem:[#allocation11_spill] sm:$0xff] %v5891_v30  ;;  %v5903_v35 = vmul.f32 %v5889_v29, %v5852_v63  ;;  %v5905_v37 = vpop.f32.mrb[6].mxu0  ;;  %4793 = vmatprep.subr.bf16.mxu1 %v4792_v20  ;;  %v1548_v38 = vmul.f32 %v5841_v60, %v5893_v31  ;;  %4276 = vmatprep.mubr.f32.mxu1 %v5893_v31 }
  0xff   : > { %v1252_v39 = vmul.f32 %v5844_v61, %v5893_v31  ;;  %v2134_v40 = vmul.f32 %v5848_v62, %v5893_v31  ;;  %v613_v41 = vpop.f32.mrb[7].mxu0  ;;  %v1551_v42 = vmul.f32 %v5905_v37, %v5841_v60  ;;  %v4774_v43 = vpack.c.bf16 %v5905_v37, %v5889_v29 }
 0x100   : > { %v1255_v44 = vmul.f32 %v5905_v37, %v5844_v61  ;;  %v2137_v45 = vmul.f32 %v5905_v37, %v5848_v62  ;;  %v1549_v46 = vmul.f32 %v5841_v60, %v613_v41  ;;  %4277 = vmatmul.mubr.f32.gmra.mrb[4].mxu1 %v613_v41  ;;  %v4771_v47 = vpack.c.bf16 %v613_v41, %v5893_v31 }
 0x101   : > { %v1253_v48 = vmul.f32 %v5844_v61, %v613_v41  ;;  %v2135_v49 = vmul.f32 %v5848_v62, %v613_v41  ;;  %4795 = vmatpush3.bf16.msra.mxu1 %v4792_v20  ;;  %v4800_v50 = vpack.c.bf16 %v1551_v42, %v1550_v32  ;;  %4279 = vmatprep.mubr.f32.mxu1 %v5889_v29 }
 0x102   : > { %v5927_v53 = vpack.c.bf16 %v1255_v44, %v1254_v33  ;;  %v5929_v59 = vpack.c.bf16 %v2137_v45, %v2136_v34  ;;  %4769 = vmatpush3.bf16.xpose.msra.mxu0 %v4768_v13  ;;  %v4796_v0 = vpack.c.bf16 %v1549_v46, %v1548_v38  ;;  %v2591_v3 = vmul.f32 %v5852_v63, %v5893_v31 }
 0x103   : > { %v5931_v1 = vpack.c.bf16 %v1253_v48, %v1252_v39  ;;  %v5933_v2 = vpack.c.bf16 %v2135_v49, %v2134_v40  ;;  %4770 = vmatprep.subr.bf16.mxu0 %v7674_v36  ;;  %v2592_v4 = vmul.f32 %v5852_v63, %v613_v41  ;;  %v2594_v5 = vmul.f32 %v5905_v37, %v5852_v63 }
 0x104   : > { %7776 = vst [vmem:[#allocation12_spill] sm:$0xff] %v5927_v53  ;;  %7777 = vst [vmem:[#allocation13_spill] sm:$0xff] %v5929_v59  ;;  %v5941_v6 = vpop.f32.mrb[8].mxu0  ;;  %4797 = vmatprep.subr.bf16.mxu1 %v4796_v0  ;;  %4280 = vmatmul.mubr.f32.gmra.mrb[6].mxu1 %v5905_v37 }
 0x105   : > { %7778 = vst [vmem:[#allocation14_spill] sm:$0xff] %v5931_v1  ;;  %7779 = vst [vmem:[#allocation15_spill] sm:$0xff] %v5933_v2  ;;  %v5944_v7 = vpop.f32.mrb[9].mxu0  ;;  %4799 = vmatpush3.bf16.msra.mxu1 %v4796_v0  ;;  %v1554_v8 = vmul.f32 %v5941_v6, %v5841_v60  ;;  %v1258_v9 = vmul.f32 %v5941_v6, %v5844_v61  ;;  %v2140_v10 = vmul.f32 %v5941_v6, %v5848_v62 }
 0x106   : > { %v5952_v11 = vpack.c.bf16 %v2592_v4, %v2591_v3  ;;  %v5954_v12 = vpop.f32.mrb[10].mxu0  ;;  %4801 = vmatprep.subr.bf16.mxu1 %v4800_v50  ;;  %v1552_v13 = vmul.f32 %v5841_v60, %v5944_v7  ;;  %4282 = vmatprep.mubr.f32.mxu1 %v5944_v7  ;;  %v1256_v14 = vmul.f32 %v5844_v61, %v5944_v7 }
 0x107   : > { %v2138_v15 = vmul.f32 %v5848_v62, %v5944_v7  ;;  %v5963_v16 = vpop.f32.mrb[11].mxu0  ;;  %v1555_v17 = vmul.f32 %v5954_v12, %v5841_v60  ;;  %v4780_v18 = vpack.c.bf16 %v5954_v12, %v5941_v6  ;;  %v1259_v19 = vmul.f32 %v5954_v12, %v5844_v61 }
 0x108   : > { %7780 = vst [vmem:[#allocation16_spill] sm:$0xff] %v5952_v11  ;;  %v2141_v20 = vmul.f32 %v5954_v12, %v5848_v62  ;;  %v1553_v23 = vmul.f32 %v5841_v60, %v5963_v16  ;;  %4283 = vmatmul.mubr.f32.gmra.mrb[8].mxu1 %v5963_v16  ;;  %v4777_v24 = vpack.c.bf16 %v5963_v16, %v5944_v7 }
 0x109   : > { %v1257_v27 = vmul.f32 %v5844_v61, %v5963_v16  ;;  %v2139_v31 = vmul.f32 %v5848_v62, %v5963_v16  ;;  %4803 = vmatpush3.bf16.msra.mxu1 %v4800_v50  ;;  %v4808_v32 = vpack.c.bf16 %v1555_v17, %v1554_v8  ;;  %4285 = vmatprep.mubr.f32.mxu1 %v5941_v6 }
 0x10a   : > { %v5983_v33 = vpack.c.bf16 %v1259_v19, %v1258_v9  ;;  %v5985_v34 = vpack.c.bf16 %v2141_v20, %v2140_v10  ;;  %v4804_v38 = vpack.c.bf16 %v1553_v23, %v1552_v13  ;;  %4772 = vmatpush3.bf16.xpose.msra.mxu0 %v4771_v47  ;;  %v5992_v41 = vpack.c.bf16 %v2594_v5, %v5903_v35 }
 0x10b   : > { %v5987_v39 = vpack.c.bf16 %v1257_v27, %v1256_v14  ;;  %v5989_v40 = vpack.c.bf16 %v2139_v31, %v2138_v15  ;;  %4773 = vmatprep.subr.bf16.mxu0 %v7674_v36  ;;  %v2595_v42 = vmul.f32 %v5852_v63, %v5944_v7  ;;  %v2596_v44 = vmul.f32 %v5852_v63, %v5963_v16 }
 0x10c   : > { %7781 = vst [vmem:[#allocation17_spill] sm:$0xff] %v5983_v33  ;;  %7782 = vst [vmem:[#allocation18_spill] sm:$0xff] %v5985_v34  ;;  %v2597_v45 = vmul.f32 %v5941_v6, %v5852_v63  ;;  %v2598_v46 = vmul.f32 %v5954_v12, %v5852_v63  ;;  %v4236_v47 = vpop.f32.mrb[12].mxu0  ;;  %4805 = vmatprep.subr.bf16.mxu1 %v4804_v38  ;;  %4286 = vmatmul.mubr.f32.gmra.mrb[10].mxu1 %v5954_v12  ;;  %v5584_v12 = vmov 2  }
 0x10d   : > { %7783 = vst [vmem:[#allocation19_spill] sm:$0xff] %v5987_v39  ;;  %7784 = vst [vmem:[#allocation20_spill] sm:$0xff] %v5989_v40  ;;  %v642_v35 = vpop.f32.mrb[13].mxu0  ;;  %4807 = vmatpush3.bf16.msra.mxu1 %v4804_v38  ;;  %v1558_v48 = vmul.f32 %v4236_v47, %v5841_v60  ;;  %v1262_v49 = vmul.f32 %v4236_v47, %v5844_v61  ;;  %v2144_v50 = vmul.f32 %v4236_v47, %v5848_v62  ;;  %v410_v40 = vld [vmem:[%s6147_s12 + $0x8] sm:$0xf] }
 0x10e   : > { %7785 = vst [vmem:[#allocation21_spill] sm:$0xff] %v5992_v41  ;;  %v6007_v0 = vpack.c.bf16 %v2596_v44, %v2595_v42  ;;  %v4237_v3 = vpop.f32.mrb[14].mxu0  ;;  %4809 = vmatprep.subr.bf16.mxu1 %v4808_v32  ;;  %v1556_v4 = vmul.f32 %v5841_v60, %v642_v35  ;;  %4288 = vmatprep.mubr.f32.mxu1 %v642_v35  ;;  %vm426_vm15 = vcmp.gt.bf16.partialorder %v410_v40, 0 }
 0x10f   : > { %v1260_v5 = vmul.f32 %v5844_v61, %v642_v35  ;;  %v2142_v8 = vmul.f32 %v5848_v62, %v642_v35  ;;  %v645_v9 = vpop.f32.mrb[15].mxu0  ;;  %v1559_v10 = vmul.f32 %v4237_v3, %v5841_v60  ;;  %v4786_v13 = vpack.c.bf16 %v4237_v3, %v4236_v47 }
 0x110   : > { %7786 = vst [vmem:[#allocation22_spill] sm:$0xff] %v6007_v0  ;;  %v1263_v14 = vmul.f32 %v4237_v3, %v5844_v61  ;;  %v2145_v15 = vmul.f32 %v4237_v3, %v5848_v62  ;;  %v1557_v17 = vmul.f32 %v5841_v60, %v645_v9  ;;  %4289 = vmatmul.mubr.f32.gmra.mrb[12].mxu1 %v645_v9 }
 0x111   : > { %v4783_v19 = vpack.c.bf16 %v645_v9, %v642_v35  ;;  %v1261_v20 = vmul.f32 %v5844_v61, %v645_v9  ;;  %v2143_v23 = vmul.f32 %v5848_v62, %v645_v9  ;;  %4811 = vmatpush3.bf16.msra.mxu1 %v4808_v32  ;;  %v4816_v27 = vpack.c.bf16 %v1559_v10, %v1558_v48 }
 0x112   : > { %4291 = vmatprep.mubr.f32.mxu1 %v4236_v47  ;;  %v6018_v31 = vpack.c.bf16 %v1263_v14, %v1262_v49  ;;  %v6020_v38 = vpack.c.bf16 %v2145_v15, %v2144_v50  ;;  %v4812_v42 = vpack.c.bf16 %v1557_v17, %v1556_v4  ;;  %4775 = vmatpush3.bf16.xpose.msra.mxu0 %v4774_v43  ;;  %v7686_v43 = vmov 0   ;;  %v409_v15 = vld [vmem:[%s6147_s12 + $0x4] sm:$0xf]  ;;  %v408_v17 = vld [vmem:[%s6147_s12] sm:$0xf] }
 0x113   : > { %v6025_v44 = vpack.c.bf16 %v1261_v20, %v1260_v5  ;;  %v6027_v60 = vpack.c.bf16 %v2143_v23, %v2142_v8  ;;  %v6029_v51 = vpack.c.bf16 %v2598_v46, %v2597_v45  ;;  %4776 = vmatprep.subr.bf16.mxu0 %v7674_v36  ;;  %v2599_v61 = vmul.f32 %v5852_v63, %v642_v35 }
 0x114   : > { %7787 = vst [vmem:[#allocation23_spill] sm:$0xff] %v6018_v31  ;;  %7788 = vst [vmem:[#allocation24_spill] sm:$0xff] %v6020_v38  ;;  %v2600_v62 = vmul.f32 %v5852_v63, %v645_v9  ;;  %v2601_v32 = vmul.f32 %v4236_v47, %v5852_v63  ;;  %v2602_v48 = vmul.f32 %v4237_v3, %v5852_v63  ;;  %4813 = vmatprep.subr.bf16.mxu1 %v4812_v42  ;;  %v818_v63 = vpop.trf.xlu0  ;;  %v5585_v46 = vmov 3   ;;  %v414_v31 = vld [vmem:[%s6147_s12 + $0x18] sm:$0xf] }
 0x115   : > { %7789 = vst [vmem:[#allocation25_spill] sm:$0xff] %v6025_v44  ;;  %7790 = vst [vmem:[#allocation26_spill] sm:$0xff] %v6027_v60  ;;  %4292 = vmatmul.mubr.f32.gmra.mrb[14].mxu1 %v4237_v3  ;;  %5105 = vset.pattern.permute.xlu0 %v7686_v43  ;;  %vm425_vm3 = vcmp.gt.bf16.partialorder %v409_v15, 0  ;;  %vm424_vm4 = vcmp.gt.bf16.partialorder %v408_v17, 0  ;;  %v7814_v60 = vmov 0 }
 0x116   : > { %7791 = vst [vmem:[#allocation27_spill] sm:$0xff] %v6029_v51  ;;  %4815 = vmatpush3.bf16.msra.mxu1 %v4812_v42  ;;  %v6036_v29 = vpack.c.bf16 %v2600_v62, %v2599_v61  ;;  %v6038_v37 = vpack.c.bf16 %v2602_v48, %v2601_v32  ;;  %v1037_v20 = vsel %vm425_vm3, 65537, %v7686_v43  ;;  %v1036_v32 = vsel %vm424_vm4, 65537, %v7686_v43 }
 0x117   : > { %4817 = vmatprep.subr.bf16.mxu1 %v4816_v27  ;;  %v1053_v42 = vunpack.c.l.b16 %v1037_v20  ;;  %vm430_vm3 = vcmp.gt.bf16.partialorder %v414_v31, 0 }
 0x118   : > { %7792 = vst [vmem:[#allocation28_spill] sm:$0xff] %v6036_v29  ;;  %7793 = vst [vmem:[#allocation29_spill] sm:$0xff] %v6038_v37 }
 0x119   : > { %vm6170_vm5 = vcmp.ne.s32.totalorder %v1053_v42, 0 }
 0x11a   : > { %4819 = vmatpush3.bf16.msra.mxu1 %v4816_v27  ;;  %4778 = vmatpush3.bf16.xpose.msra.mxu0 %v4777_v24 }
 0x11b   : > { %4821 = vmatprep.subr.bf16.mxu1 %v5881_v25  ;;  %4779 = vmatprep.subr.bf16.mxu0 %v7674_v36 }
 0x122   : > { %4781 = vmatpush3.bf16.xpose.msra.mxu0 %v4780_v18 }
 0x123   : > { %4782 = vmatprep.subr.bf16.mxu0 %v7674_v36 }
 0x12a   : > { %4784 = vmatpush3.bf16.xpose.msra.mxu0 %v4783_v19 }
 0x12b   : > { %4785 = vmatprep.subr.bf16.mxu0 %v7674_v36 }
 0x132   : > { %4787 = vmatpush3.bf16.xpose.msra.mxu0 %v4786_v13 }
 0x139   : > { %4327 = vmatmul.mubr.f32.vlgmr.msra.gmra.mrb[16].mxu0 %v818_v63 }
 0x1cb   : > { %v6051_v45 = vpop.f32.mrb[0].mxu1 }
 0x1cc   : > { %1269 = vperm.xlu1 %5101, %v6051_v45   ;;  %v723_v7 = vpop.f32.mrb[1].mxu1 }
 0x1cd   : > { %906 = vperm.xlu0 %5105, %v723_v7  }
 0x1cf   : > { %v6054_v16 = vpop.f32.mrb[2].mxu1 }
 0x1d0   : > { %5102 = vset.pattern.permute.xlu1 %v7686_v43  ;;  %v733_v6 = vpop.f32.mrb[3].mxu1 }
 0x1d1   : > { %911 = vperm.xlu1 %5102, %v6051_v45   ;;  %5106 = vset.pattern.permute.xlu0 %v5584_v12 }
 0x1d2   : > { %1851 = vperm.xlu0 %5106, %v723_v7  }
 0x1d3   : > { %v6059_v18 = vpop.f32.mrb[4].mxu1 }
 0x1d4   : > { %v6061_v24 = vpop.f32.mrb[5].mxu1 }
 0x1d5   : > { %5103 = vset.pattern.permute.xlu1 %v5584_v12 }
 0x1d6   : > { %1855 = vperm.xlu1 %5103, %v6051_v45   ;;  %5107 = vset.pattern.permute.xlu0 %v5585_v46 }
 0x1d7   : > { %2308 = vperm.xlu0 %5107, %v723_v7   ;;  %v6066_v47 = vpop.f32.mrb[6].mxu1 }
 0x1d8   : > { %v6068_v35 = vpop.f32.mrb[7].mxu1 }
 0x1da   : > { %5104 = vset.pattern.permute.xlu1 %v5582_v52 }
 0x1db   : > { %5109 = vset.pattern.permute.xlu0 %v5584_v12  ;;  %1265 = vperm.xlu1 %5104, %v723_v7   ;;  %v6072_v49 = vpop.f32.mrb[8].mxu1  ;;  %v7795_v7 = vmov 0 }
 0x1dc   : > { %1863 = vperm.xlu0 %5109, %v6054_v16   ;;  %v6075_v50 = vpop.f32.mrb[9].mxu1  ;;  %v7796_v7 = vsel %vm6170_vm5, 4294967295, %v7795_v7 }
 0x1dd   : > { %7797 = vst [vmem:[#allocation30_spill] sm:$0xff] %v7796_v7 }
 0x1df   : > { %1277 = vperm.xlu1 %5104, %v6054_v16   ;;  %v6078_v3 = vpop.f32.mrb[10].mxu1 }
 0x1e0   : > { %5113 = vset.pattern.permute.xlu0 %v5585_v46  ;;  %v6081_v4 = vpop.f32.mrb[11].mxu1 }
 0x1e1   : > { %2316 = vperm.xlu0 %5113, %v733_v6  }
 0x1e3   : > { %5108 = vset.pattern.permute.xlu1 %v7686_v43  ;;  %v6084_v5 = vpop.f32.mrb[12].mxu1 }
 0x1e4   : > { %921 = vperm.xlu1 %5108, %v6054_v16   ;;  %v6087_v8 = vpop.f32.mrb[13].mxu1 }
 0x1e5   : > { %5116 = vset.pattern.permute.xlu0 %v5584_v12 }
 0x1e6   : > { %1871 = vperm.xlu0 %5116, %v6059_v18  }
 0x1e8   : > { %v6091_v9 = vpop.f32.mrb[14].mxu1  ;;  %5110 = vset.pattern.permute.xlu1 %v5582_v52 }
 0x1e9   : > { %v6094_v10 = vpop.f32.mrb[15].mxu1  ;;  %1273 = vperm.xlu1 %5110, %v733_v6  }
 0x1ea   : > { %1867 = vperm.xlu0 %5116, %v6061_v24  }
 0x1ed   : > { %5111 = vset.pattern.permute.xlu1 %v7686_v43 }
 0x1ee   : > { %916 = vperm.xlu1 %5111, %v733_v6   ;;  %1879 = vperm.xlu0 %5116, %v6066_v47  }
 0x1f2   : > { %5112 = vset.pattern.permute.xlu1 %v5584_v12  ;;  %1883 = vperm.xlu0 %5116, %v6075_v50  }
 0x1f3   : > { %1859 = vperm.xlu1 %5112, %v733_v6   ;;  %v1052_v6 = vunpack.c.l.b16 %v1036_v32  ;;  %v411_v32 = vld [vmem:[%s6147_s12 + $0xc] sm:$0xf] }
 0x1f4   : > { %vm427_vm7 = vcmp.gt.bf16.partialorder %v411_v32, 0  ;;  %v7802_v32 = vmov 0 }
 0x1f5   : > { %vm6183_vm6 = vcmp.ne.s32.totalorder %v1052_v6, 0 }
 0x1f6   : > { %1895 = vperm.xlu0 %5116, %v6078_v3  }
 0x1f7   : > { %5114 = vset.pattern.permute.xlu1 %v5582_v52 }
 0x1f8   : > { %1285 = vperm.xlu1 %5114, %v6059_v18  }
 0x1fa   : > { %1891 = vperm.xlu0 %5116, %v6081_v4  }
 0x1fc   : > { %5115 = vset.pattern.permute.xlu1 %v7686_v43 }
 0x1fd   : > { %931 = vperm.xlu1 %5115, %v6059_v18  }
 0x1fe   : > { %1903 = vperm.xlu0 %5116, %v6084_v5  }
 0x201   : > { %5117 = vset.pattern.permute.xlu1 %v5582_v52 }
 0x202   : > { %1281 = vperm.xlu1 %5117, %v6061_v24   ;;  %5136 = vset.pattern.permute.xlu0 %v7686_v43 }
 0x203   : > { %966 = vperm.xlu0 %5136, %v6087_v8  }
 0x206   : > { %5118 = vset.pattern.permute.xlu1 %v7686_v43 }
 0x207   : > { %926 = vperm.xlu1 %5118, %v6061_v24   ;;  %976 = vperm.xlu0 %5136, %v6094_v10  }
 0x20b   : > { %5119 = vset.pattern.permute.xlu1 %v5582_v52  ;;  %5142 = vset.pattern.permute.xlu0 %v5584_v12 }
 0x20c   : > { %1293 = vperm.xlu1 %5119, %v6066_v47   ;;  %1907 = vperm.xlu0 %5142, %v6094_v10   ;;  %v6119_v13 = vpop.f32.mrb[16].mxu0 }
 0x20d   : > { %v4328_v14 = vpop.f32.mrb[17].mxu0  ;;  %v6158_v19 = vrot.slane %v6119_v13, %v1330_v55  ;;  %v6163_v23 = vrot.slane %v6119_v13, %v5832_v56 }
 0x210   : > { %5120 = vset.pattern.permute.xlu1 %v7686_v43  ;;  %5144 = vset.pattern.permute.xlu0 %v5585_v46 }
 0x211   : > { %941 = vperm.xlu1 %5120, %v6066_v47  }
 0x215   : > { %5121 = vset.pattern.permute.xlu1 %v5582_v52 }
 0x216   : > { %1289 = vperm.xlu1 %5121, %v6068_v35  }
 0x21a   : > { %5122 = vset.pattern.permute.xlu1 %v7686_v43 }
 0x21b   : > { %936 = vperm.xlu1 %5122, %v6068_v35  }
 0x21f   : > { %5123 = vset.pattern.permute.xlu1 %v5584_v12 }
 0x220   : > { %1875 = vperm.xlu1 %5123, %v6068_v35  }
 0x224   : > { %5124 = vset.pattern.permute.xlu1 %v5582_v52 }
 0x225   : > { %1301 = vperm.xlu1 %5124, %v6072_v49  }
 0x229   : > { %5125 = vset.pattern.permute.xlu1 %v7686_v43 }
 0x22a   : > { %951 = vperm.xlu1 %5125, %v6072_v49  }
 0x22e   : > { %5126 = vset.pattern.permute.xlu1 %v5584_v12 }
 0x22f   : > { %1887 = vperm.xlu1 %5126, %v6072_v49  }
 0x233   : > { %5127 = vset.pattern.permute.xlu1 %v5582_v52 }
 0x234   : > { %1297 = vperm.xlu1 %5127, %v6075_v50  }
 0x238   : > { %5128 = vset.pattern.permute.xlu1 %v7686_v43 }
 0x239   : > { %946 = vperm.xlu1 %5128, %v6075_v50  }
 0x23d   : > { %5129 = vset.pattern.permute.xlu1 %v5582_v52 }
 0x23e   : > { %1309 = vperm.xlu1 %5129, %v6078_v3  }
 0x242   : > { %5130 = vset.pattern.permute.xlu1 %v7686_v43 }
 0x243   : > { %961 = vperm.xlu1 %5130, %v6078_v3  }
 0x247   : > { %5131 = vset.pattern.permute.xlu1 %v5582_v52 }
 0x248   : > { %1305 = vperm.xlu1 %5131, %v6081_v4  }
 0x24b   : > { %v1270_v27 = vpop.permute.xlu1 %1269 }
 0x24c   : > { %v1333_v61 = vadd.f32 %v6158_v19, %v1270_v27  ;;  %v907_v62 = vpop.permute.xlu0 %906  ;;  %5132 = vset.pattern.permute.xlu1 %v7686_v43  ;;  %v7798_v27 = vmov 0 }
 0x24d   : > { %v988_v48 = vadd.f32 %v6163_v23, %v907_v62  ;;  %956 = vperm.xlu1 %5132, %v6081_v4   ;;  %v7799_v27 = vsel %vm6183_vm6, 4294967295, %v7798_v27 }
 0x24e   : > { %v1349_v55 = vmul.f32 0.2, %v1333_v61  ;;  %7800 = vst [vmem:[#allocation31_spill] sm:$0xff] %v7799_v27 }
 0x24f   : > { %v1004_v63 = vmul.f32 0.2, %v988_v48 }
 0x250   : > { %v6174_v14 = vpop.permute.xlu1 %911  ;;  %v1365_v15 = vmax.f32 %v1333_v61, %v1349_v55  ;;  %v1039_v55 = vsel %vm427_vm7, 65537, %v7686_v43 }
 0x251   : > { %5133 = vset.pattern.permute.xlu1 %v5582_v52  ;;  %v1020_v20 = vmax.f32 %v988_v48, %v1004_v63 }
 0x252   : > { %1317 = vperm.xlu1 %5133, %v6084_v5   ;;  %v6180_v17 = vsel %vm6170_vm5, %v1365_v15, -1e+30  ;;  %v1055_v15 = vunpack.c.l.b16 %v1039_v55 }
 0x253   : > { %1398 = vmax.xlane.f32.xlu0 %v6180_v17  ;;  %v6192_v61 = vsel %vm6183_vm6, %v1020_v20, -1e+30 }
 0x254   : > { %7801 = vst [vmem:[#allocation32_spill] sm:$0xff] %v6192_v61  ;;  %vm6209_vm8 = vcmp.ne.s32.totalorder %v1055_v15, 0  ;;  %v413_v15 = vld [vmem:[%s6147_s12 + $0x14] sm:$0xf] }
 0x255   : > { %v6187_v42 = vpop.permute.xlu1 %1855  ;;  %v7803_v32 = vsel %vm6209_vm8, 4294967295, %v7802_v32  ;;  %vm429_vm9 = vcmp.gt.bf16.partialorder %v413_v15, 0  ;;  %v7806_v15 = vmov 0 }
 0x256   : > { %5134 = vset.pattern.permute.xlu1 %v7686_v43  ;;  %7804 = vst [vmem:[#allocation33_spill] sm:$0xff] %v7803_v32  ;;  %v1041_v57 = vsel %vm429_vm9, 65537, %v7686_v43 }
 0x257   : > { %971 = vperm.xlu1 %5134, %v6084_v5   ;;  %1100 = vmax.xlane.f32.xlu0 %v6192_v61  ;;  %v1057_v37 = vunpack.c.l.b16 %v1041_v57 }
 0x259   : > { %vm6237_vm11 = vcmp.ne.s32.totalorder %v1057_v37, 0 }
 0x25a   : > { %v1266_v62 = vpop.permute.xlu1 %1265  ;;  %v7807_v15 = vsel %vm6237_vm11, 4294967295, %v7806_v15 }
 0x25b   : > { %5135 = vset.pattern.permute.xlu1 %v5582_v52  ;;  %7808 = vst [vmem:[#allocation35_spill] sm:$0xff] %v7807_v15 }
 0x25c   : > { %1313 = vperm.xlu1 %5135, %v6087_v8  }
 0x25e   : > { %v6199_v48 = vpop.permute.xlu1 %1277 }
 0x260   : > { %5137 = vset.pattern.permute.xlu1 %v5584_v12 }
 0x261   : > { %1899 = vperm.xlu1 %5137, %v6087_v8  }
 0x263   : > { %v922_v63 = vpop.permute.xlu1 %921 }
 0x264   : > { %v991_v6 = vadd.f32 %v6163_v23, %v922_v63 }
 0x265   : > { %5138 = vset.pattern.permute.xlu1 %v5582_v52 }
 0x266   : > { %v1007_v20 = vmul.f32 0.2, %v991_v6  ;;  %1325 = vperm.xlu1 %5138, %v6091_v9  }
 0x268   : > { %v6207_v36 = vpop.permute.xlu1 %1273  ;;  %v1023_v58 = vmax.f32 %v991_v6, %v1007_v20 }
 0x26a   : > { %5139 = vset.pattern.permute.xlu1 %v7686_v43  ;;  %v6216_v63 = vsel %vm6209_vm8, %v1023_v58, -1e+30  ;;  %v412_v58 = vld [vmem:[%s6147_s12 + $0x10] sm:$0xf] }
 0x26b   : > { %7805 = vst [vmem:[#allocation34_spill] sm:$0xff] %v6216_v63  ;;  %981 = vperm.xlu1 %5139, %v6091_v9   ;;  %1106 = vmax.xlane.f32.xlu0 %v6216_v63  ;;  %vm428_vm10 = vcmp.gt.bf16.partialorder %v412_v58, 0 }
 0x26d   : > { %v6220_v55 = vpop.permute.xlu1 %916 }
 0x26e   : > { %v990_v40 = vadd.f32 %v6163_v23, %v6220_v55 }
 0x26f   : > { %5140 = vset.pattern.permute.xlu1 %v5584_v12 }
 0x270   : > { %1911 = vperm.xlu1 %5140, %v6091_v9  }
 0x272   : > { %v6224_v6 = vpop.permute.xlu1 %1859 }
 0x274   : > { %5141 = vset.pattern.permute.xlu1 %v5582_v52  ;;  %v1040_v52 = vsel %vm428_vm10, 65537, %v7686_v43  ;;  %v7810_v43 = vmov 0 }
 0x275   : > { %1321 = vperm.xlu1 %5141, %v6094_v10   ;;  %v1056_v11 = vunpack.c.l.b16 %v1040_v52 }
 0x277   : > { %v6229_v20 = vpop.permute.xlu1 %1285  ;;  %vm6247_vm12 = vcmp.ne.s32.totalorder %v1056_v11, 0 }
 0x278   : > { %v7811_v43 = vsel %vm6247_vm12, 4294967295, %v7810_v43 }
 0x279   : > { %5143 = vset.pattern.permute.xlu1 %v5585_v46  ;;  %7812 = vst [vmem:[#allocation37_spill] sm:$0xff] %v7811_v43 }
 0x27c   : > { %v932_v56 = vpop.permute.xlu1 %931 }
 0x27d   : > { %v993_v12 = vadd.f32 %v6163_v23, %v932_v56  ;;  %v415_v56 = vld [vmem:[%s6147_s12 + $0x1c] sm:$0xf] }
 0x27e   : > { %vm431_vm13 = vcmp.gt.bf16.partialorder %v415_v56, 0  ;;  %v1332_v56 = vadd.f32 %v6158_v19, %v1266_v62 }
 0x27f   : > { %v1009_v29 = vmul.f32 0.2, %v993_v12 }
 0x281   : > { %v1282_v51 = vpop.permute.xlu1 %1281  ;;  %v1025_v0 = vmax.f32 %v993_v12, %v1009_v29  ;;  %v989_v12 = vadd.f32 %v6163_v23, %v6174_v14 }
 0x282   : > { %v1336_v41 = vadd.f32 %v6158_v19, %v1282_v51 }
 0x283   : > { %v6243_v46 = vsel %vm6237_vm11, %v1025_v0, -1e+30  ;;  %v7813_v0 = vmov 0   ;;  %v1005_v52 = vmul.f32 0.2, %v989_v12 }
 0x284   : > { %7809 = vst [vmem:[#allocation36_spill] sm:$0xff] %v6243_v46  ;;  %v1352_v30 = vmul.f32 0.2, %v1336_v41  ;;  %1110 = vmax.xlane.f32.xlu0 %v6243_v46  ;;  %v1043_v29 = vsel %vm431_vm13, 65537, %v7813_v0  ;;  %v7841_v46 = vmov 0 }
 0x285   : > { %v1059_v11 = vunpack.c.l.b16 %v1043_v29  ;;  %v1348_v29 = vmul.f32 0.2, %v1332_v56  ;;  %v1021_v62 = vmax.f32 %v989_v12, %v1005_v52  ;;  %v1038_v52 = vsel %vm426_vm15, 65537, %v7813_v0 }
 0x286   : > { %v927_v57 = vpop.permute.xlu1 %926  ;;  %v1368_v58 = vmax.f32 %v1336_v41, %v1352_v30 }
 0x287   : > { %vm6262_vm14 = vcmp.ne.s32.totalorder %v1059_v11, 0  ;;  %v6283_v59 = vsel %vm6170_vm5, %v1021_v62, -1e+30 }
 0x288   : > { %v6253_v51 = vsel %vm6247_vm12, %v1368_v58, -1e+30  ;;  %v7815_v60 = vsel %vm6262_vm14, 4294967295, %v7814_v60  ;;  %7818 = vst [vmem:[#allocation40_spill] sm:$0xff] %v6283_v59 }
 0x289   : > { %1404 = vmax.xlane.f32.xlu0 %v6253_v51  ;;  %7816 = vst [vmem:[#allocation38_spill] sm:$0xff] %v7815_v60 }
 0x28b   : > { %v1294_v37 = vpop.permute.xlu1 %1293 }
 0x28c   : > { %v1339_v30 = vadd.f32 %v6158_v19, %v1294_v37  ;;  %v1335_v37 = vadd.f32 %v6158_v19, %v6199_v48  ;;  %v1364_v48 = vmax.f32 %v1332_v56, %v1348_v29  ;;  %v1054_v56 = vunpack.c.l.b16 %v1038_v52 }
 0x28d   : > { %v1006_v29 = vmul.f32 0.2, %v990_v40 }
 0x28e   : > { %v1355_v41 = vmul.f32 0.2, %v1339_v30  ;;  %v1351_v11 = vmul.f32 0.2, %v1335_v37  ;;  %vm6305_vm0 = vcmp.ne.s32.totalorder %v1054_v56, 0 }
 0x290   : > { %v942_v28 = vpop.permute.xlu1 %941  ;;  %v1371_v38 = vmax.f32 %v1339_v30, %v1355_v41 }
 0x291   : > { %v995_v58 = vadd.f32 %v6163_v23, %v942_v28 }
 0x292   : > { %v6268_v34 = vsel %vm6262_vm14, %v1371_v38, -1e+30  ;;  %v1334_v38 = vadd.f32 %v6158_v19, %v6207_v36  ;;  %v6291_v36 = vsel %vm6183_vm6, %v1364_v48, -1e+30  ;;  %v417_v48 = vld [vmem:[%s6147_s12 + $0x24] sm:$0xf] }
 0x293   : > { %v1011_v14 = vmul.f32 0.2, %v995_v58  ;;  %1410 = vmax.xlane.f32.xlu0 %v6268_v34  ;;  %vm433_vm1 = vcmp.gt.bf16.partialorder %v417_v48, 0 }
 0x294   : > { %v1045_v56 = vsel %vm433_vm1, 65537, %v7813_v0 }
 0x295   : > { %v1290_v30 = vpop.permute.xlu1 %1289  ;;  %v1027_v41 = vmax.f32 %v995_v58, %v1011_v14  ;;  %v1350_v58 = vmul.f32 0.2, %v1334_v38  ;;  %v1367_v14 = vmax.f32 %v1335_v37, %v1351_v11  ;;  %v992_v37 = vadd.f32 %v6163_v23, %v927_v57 }
 0x296   : > { %v7819_v11 = vmov 0 }
 0x297   : > { %v6276_v28 = vsel %vm6262_vm14, %v1027_v41, -1e+30  ;;  %v1337_v41 = vadd.f32 %v6158_v19, %v6229_v20  ;;  %v6300_v2 = vsel %vm6209_vm8, %v1367_v14, -1e+30  ;;  %v1366_v55 = vmax.f32 %v1334_v38, %v1350_v58 }
 0x298   : > { %7817 = vst [vmem:[#allocation39_spill] sm:$0xff] %v6276_v28  ;;  %1114 = vmax.xlane.f32.xlu0 %v6276_v28  ;;  %v7820_v11 = vsel %vm6305_vm0, 4294967295, %v7819_v11  ;;  %v1022_v20 = vmax.f32 %v990_v40, %v1006_v29  ;;  %v1008_v38 = vmul.f32 0.2, %v992_v37  ;;  %v1338_v58 = vadd.f32 %v6158_v19, %v1290_v30 }
 0x299   : > { %1102 = vmax.xlane.f32.xlu1 %v6283_v59  ;;  %7821 = vst [vmem:[#allocation41_spill] sm:$0xff] %v7820_v11  ;;  %v1353_v22 = vmul.f32 0.2, %v1337_v41  ;;  %v6311_v26 = vsel %vm6305_vm0, %v1366_v55, -1e+30  ;;  %v1042_v29 = vsel %vm430_vm3, 65537, %v7813_v0  ;;  %v1061_v55 = vunpack.c.l.b16 %v1045_v56 }
 0x29a   : > { %v937_v12 = vpop.permute.xlu1 %936  ;;  %v6318_v57 = vsel %vm6305_vm0, %v1022_v20, -1e+30  ;;  %v1024_v48 = vmax.f32 %v992_v37, %v1008_v38  ;;  %v1354_v33 = vmul.f32 0.2, %v1338_v58 }
 0x29b   : > { %7822 = vst [vmem:[#allocation42_spill] sm:$0xff] %v6318_v57  ;;  %v1369_v14 = vmax.f32 %v1337_v41, %v1353_v22  ;;  %v994_v31 = vadd.f32 %v6163_v23, %v937_v12  ;;  %v1058_v22 = vunpack.c.l.b16 %v1042_v29  ;;  %vm6332_vm4 = vcmp.ne.s32.totalorder %v1061_v55, 0  ;;  %v416_v29 = vld [vmem:[%s6147_s12 + $0x20] sm:$0xf] }
 0x29c   : > { %v6338_v37 = vsel %vm6247_vm12, %v1024_v48, -1e+30  ;;  %v1370_v56 = vmax.f32 %v1338_v58, %v1354_v33  ;;  %vm432_vm9 = vcmp.gt.bf16.partialorder %v416_v29, 0 }
 0x29d   : > { %1396 = vmax.xlane.f32.xlu1 %v6291_v36  ;;  %v6327_v20 = vsel %vm6237_vm11, %v1369_v14, -1e+30  ;;  %7826 = vst [vmem:[#allocation44_spill] sm:$0xff] %v6338_v37  ;;  %v1010_v12 = vmul.f32 0.2, %v994_v31  ;;  %vm6347_vm7 = vcmp.ne.s32.totalorder %v1058_v22, 0 }
 0x29e   : > { %v1044_v1 = vsel %vm432_vm9, 65537, %v7813_v0 }
 0x29f   : > { %v6294_v62 = vpop.permute.xlu1 %1875  ;;  %v1060_v21 = vunpack.c.l.b16 %v1044_v1 }
 0x2a1   : > { %1402 = vmax.xlane.f32.xlu1 %v6300_v2  ;;  %vm6372_vm13 = vcmp.ne.s32.totalorder %v1060_v21, 0 }
 0x2a4   : > { %v1302_v52 = vpop.permute.xlu1 %1301 }
 0x2a5   : > { %1400 = vmax.xlane.f32.xlu1 %v6311_v26  ;;  %v1341_v38 = vadd.f32 %v6158_v19, %v1302_v52  ;;  %v6355_v52 = vsel %vm6347_vm7, %v1370_v56, -1e+30  ;;  %v419_v56 = vld [vmem:[%s6147_s12 + $0x2c] sm:$0xf] }
 0x2a6   : > { %vm435_vm10 = vcmp.gt.bf16.partialorder %v419_v56, 0 }
 0x2a7   : > { %v1357_v48 = vmul.f32 0.2, %v1341_v38 }
 0x2a9   : > { %v952_v44 = vpop.permute.xlu1 %951  ;;  %1104 = vmax.xlane.f32.xlu1 %v6318_v57  ;;  %v1373_v53 = vmax.f32 %v1341_v38, %v1357_v48  ;;  %v7833_v48 = vmov 0 }
 0x2aa   : > { %v997_v40 = vadd.f32 %v6163_v23, %v952_v44  ;;  %v7823_v44 = vmov 0  ;;  %v7834_v48 = vsel %vm6372_vm13, 4294967295, %v7833_v48 }
 0x2ab   : > { %v7824_v44 = vsel %vm6332_vm4, 4294967295, %v7823_v44  ;;  %7835 = vst [vmem:[#allocation49_spill] sm:$0xff] %v7834_v48 }
 0x2ac   : > { %v1013_v30 = vmul.f32 0.2, %v997_v40  ;;  %7825 = vst [vmem:[#allocation43_spill] sm:$0xff] %v7824_v44 }
 0x2ad   : > { %1406 = vmax.xlane.f32.xlu1 %v6327_v20 }
 0x2ae   : > { %v6330_v41 = vpop.permute.xlu1 %1887  ;;  %v1029_v39 = vmax.f32 %v997_v40, %v1013_v30  ;;  %v7828_v40 = vmov 0 }
 0x2af   : > { %v7829_v40 = vsel %vm6347_vm7, 4294967295, %v7828_v40 }
 0x2b0   : > { %v6343_v14 = vsel %vm6332_vm4, %v1029_v39, -1e+30  ;;  %7830 = vst [vmem:[#allocation46_spill] sm:$0xff] %v7829_v40  ;;  %v1026_v39 = vmax.f32 %v994_v31, %v1010_v12  ;;  %v6368_v12 = vsel %vm6332_vm4, %v1373_v53, -1e+30  ;;  %v1047_v53 = vsel %vm435_vm10, 65537, %v7813_v0 }
 0x2b1   : > { %7827 = vst [vmem:[#allocation45_spill] sm:$0xff] %v6343_v14  ;;  %1118 = vmax.xlane.f32.xlu0 %v6343_v14  ;;  %1108 = vmax.xlane.f32.xlu1 %v6338_v37  ;;  %7832 = vst [vmem:[#allocation48_spill] sm:$0xff] %v6368_v12 }
 0x2b2   : > { %v6360_v22 = vsel %vm6347_vm7, %v1026_v39, -1e+30  ;;  %v418_v39 = vld [vmem:[%s6147_s12 + $0x28] sm:$0xf] }
 0x2b3   : > { %v1298_v55 = vpop.permute.xlu1 %1297  ;;  %7831 = vst [vmem:[#allocation47_spill] sm:$0xff] %v6360_v22  ;;  %vm434_vm15 = vcmp.gt.bf16.partialorder %v418_v39, 0  ;;  %v421_v39 = vld [vmem:[%s6147_s12 + $0x34] sm:$0xf] }
 0x2b4   : > { %v1340_v30 = vadd.f32 %v6158_v19, %v1298_v55  ;;  %v1046_v56 = vsel %vm434_vm15, 65537, %v7813_v0  ;;  %vm437_vm9 = vcmp.gt.bf16.partialorder %v421_v39, 0 }
 0x2b5   : > { %1408 = vmax.xlane.f32.xlu1 %v6355_v52 }
 0x2b6   : > { %v1356_v33 = vmul.f32 0.2, %v1340_v30 }
 0x2b8   : > { %v947_v58 = vpop.permute.xlu1 %946  ;;  %v1372_v29 = vmax.f32 %v1340_v30, %v1356_v33  ;;  %v1063_v33 = vunpack.c.l.b16 %v1047_v53 }
 0x2b9   : > { %v996_v55 = vadd.f32 %v6163_v23, %v947_v58  ;;  %1112 = vmax.xlane.f32.xlu1 %v6360_v22 }
 0x2ba   : > { %v6379_v1 = vsel %vm6372_vm13, %v1372_v29, -1e+30  ;;  %vm6389_vm1 = vcmp.ne.s32.totalorder %v1063_v33, 0 }
 0x2bb   : > { %v1012_v31 = vmul.f32 0.2, %v996_v55 }
 0x2bd   : > { %v1310_v25 = vpop.permute.xlu1 %1309  ;;  %1414 = vmax.xlane.f32.xlu1 %v6368_v12  ;;  %v1028_v14 = vmax.f32 %v996_v55, %v1012_v31  ;;  %v7837_v55 = vmov 0 }
 0x2be   : > { %v1343_v38 = vadd.f32 %v6158_v19, %v1310_v25  ;;  %v7838_v55 = vsel %vm6389_vm1, 4294967295, %v7837_v55 }
 0x2bf   : > { %v6385_v21 = vsel %vm6372_vm13, %v1028_v14, -1e+30  ;;  %7839 = vst [vmem:[#allocation51_spill] sm:$0xff] %v7838_v55  ;;  %v1062_v14 = vunpack.c.l.b16 %v1046_v56  ;;  %v1049_v56 = vsel %vm437_vm9, 65537, %v7813_v0 }
 0x2c0   : > { %v1359_v58 = vmul.f32 0.2, %v1343_v38  ;;  %7836 = vst [vmem:[#allocation50_spill] sm:$0xff] %v6385_v21 }
 0x2c1   : > { %1412 = vmax.xlane.f32.xlu1 %v6379_v1  ;;  %vm6400_vm3 = vcmp.ne.s32.totalorder %v1062_v14, 0 }
 0x2c2   : > { %v962_v30 = vpop.permute.xlu1 %961  ;;  %v1375_v25 = vmax.f32 %v1343_v38, %v1359_v58  ;;  %v7842_v46 = vsel %vm6400_vm3, 4294967295, %v7841_v46 }
 0x2c3   : > { %7843 = vst [vmem:[#allocation53_spill] sm:$0xff] %v7842_v46  ;;  %v7893_v46 = vld [vmem:[#allocation40_spill] sm:$0xff] }
 0x2c4   : > { %v6396_v53 = vsel %vm6389_vm1, %v1375_v25, -1e+30  ;;  %v999_v25 = vadd.f32 %v6163_v23, %v962_v30 }
 0x2c5   : > { %1116 = vmax.xlane.f32.xlu1 %v6385_v21  ;;  %7840 = vst [vmem:[#allocation52_spill] sm:$0xff] %v6396_v53  ;;  %v420_v21 = vld [vmem:[%s6147_s12 + $0x30] sm:$0xf] }
 0x2c6   : > { %v1015_v14 = vmul.f32 0.2, %v999_v25  ;;  %vm436_vm15 = vcmp.gt.bf16.partialorder %v420_v21, 0 }
 0x2c7   : > { %v1306_v29 = vpop.permute.xlu1 %1305 }
 0x2c8   : > { %v1342_v31 = vadd.f32 %v6158_v19, %v1306_v29  ;;  %v1031_v59 = vmax.f32 %v999_v25, %v1015_v14  ;;  %v7850_v14 = vmov 0 }
 0x2c9   : > { %1418 = vmax.xlane.f32.xlu1 %v6396_v53 }
 0x2ca   : > { %v1358_v38 = vmul.f32 0.2, %v1342_v31 }
 0x2cc   : > { %v957_v58 = vpop.permute.xlu1 %956  ;;  %v1374_v28 = vmax.f32 %v1342_v31, %v1358_v38  ;;  %v1065_v31 = vunpack.c.l.b16 %v1049_v56  ;;  %v1048_v56 = vsel %vm436_vm15, 65537, %v7813_v0  ;;  %v7885_v43 = vld [vmem:[#allocation52_spill] sm:$0xff] }
 0x2cd   : > { %v1064_v21 = vunpack.c.l.b16 %v1048_v56  ;;  %v998_v56 = vadd.f32 %v6163_v23, %v957_v58  ;;  %v422_v58 = vld [vmem:[%s6147_s12 + $0x38] sm:$0xf] }
 0x2ce   : > { %v6406_v33 = vsel %vm6400_vm3, %v1374_v28, -1e+30  ;;  %vm6415_vm10 = vcmp.ne.s32.totalorder %v1065_v31, 0  ;;  %v7845_v28 = vmov 0  ;;  %v423_v31 = vld [vmem:[%s6147_s12 + $0x3c] sm:$0xf] }
 0x2cf   : > { %7844 = vst [vmem:[#allocation54_spill] sm:$0xff] %v6406_v33  ;;  %1416 = vmax.xlane.f32.xlu0 %v6406_v33  ;;  %v7846_v28 = vsel %vm6415_vm10, 4294967295, %v7845_v28  ;;  %vm439_vm9 = vcmp.gt.bf16.partialorder %v423_v31, 0  ;;  %vm6434_vm2 = vcmp.ne.s32.totalorder %v1064_v21, 0  ;;  %s3936_s12 = sshll.u32 %s5670_s21, 11  ;;  %s7619_s21 = scalar_lea.sflag [#allocation3], %s392_s25 }
 0x2d0   : > { %7847 = vst [vmem:[#allocation55_spill] sm:$0xff] %v7846_v28  ;;  %v7851_v14 = vsel %vm6434_vm2, 4294967295, %v7850_v14  ;;  %s7611_s16 = scalar_lea.hbm %s7671_s11, %s3936_s12 }
 0x2d1   : > { %v1318_v29 = vpop.permute.xlu1 %1317  ;;  %7852 = vst [vmem:[#allocation58_spill] sm:$0xff] %v7851_v14 }
 0x2d2   : > { %v1345_v63 = vadd.f32 %v6158_v19, %v1318_v29 }
 0x2d4   : > { %v1361_v38 = vmul.f32 0.2, %v1345_v63 }
 0x2d6   : > { %v6413_v22 = vpop.permute.xlu1 %971  ;;  %v1377_v39 = vmax.f32 %v1345_v63, %v1361_v38  ;;  %v6428_v63 = vsel %vm6389_vm1, %v1031_v59, -1e+30  ;;  %v1051_v59 = vsel %vm439_vm9, 65537, %v7813_v0  ;;  %vm438_vm9 = vcmp.gt.bf16.partialorder %v422_v58, 0 }
 0x2d7   : > { %7849 = vst [vmem:[#allocation57_spill] sm:$0xff] %v6428_v63  ;;  %v1067_v31 = vunpack.c.l.b16 %v1051_v59  ;;  %v1852_v59 = vpop.permute.xlu0 %1851 }
 0x2d8   : > { %v6421_v30 = vsel %vm6415_vm10, %v1377_v39, -1e+30 }
 0x2d9   : > { %7848 = vst [vmem:[#allocation56_spill] sm:$0xff] %v6421_v30  ;;  %1422 = vmax.xlane.f32.xlu0 %v6421_v30  ;;  %vm6446_vm15 = vcmp.ne.s32.totalorder %v1067_v31, 0 }
 0x2db   : > { %v1314_v29 = vpop.permute.xlu1 %1313 }
 0x2dc   : > { %v1344_v37 = vadd.f32 %v6158_v19, %v1314_v29 }
 0x2dd   : > { %1122 = vmax.xlane.f32.xlu0 %v6428_v63 }
 0x2de   : > { %v1360_v38 = vmul.f32 0.2, %v1344_v37 }
 0x2e0   : > { %v6432_v39 = vpop.permute.xlu1 %1899  ;;  %v1376_v25 = vmax.f32 %v1344_v37, %v1360_v38  ;;  %v1014_v37 = vmul.f32 0.2, %v998_v56  ;;  %v7854_v38 = vmov 0 }
 0x2e1   : > { %v7855_v38 = vsel %vm6446_vm15, 4294967295, %v7854_v38 }
 0x2e2   : > { %v6440_v29 = vsel %vm6434_vm2, %v1376_v25, -1e+30  ;;  %7856 = vst [vmem:[#allocation60_spill] sm:$0xff] %v7855_v38  ;;  %v1030_v53 = vmax.f32 %v998_v56, %v1014_v37  ;;  %v6465_v37 = vpop.permute.xlu0 %2308 }
 0x2e3   : > { %7853 = vst [vmem:[#allocation59_spill] sm:$0xff] %v6440_v29  ;;  %1420 = vmax.xlane.f32.xlu1 %v6440_v29  ;;  %v7859_v29 = vmov 0 }
 0x2e5   : > { %v1326_v63 = vpop.permute.xlu1 %1325 }
 0x2e6   : > { %v1347_v57 = vadd.f32 %v6158_v19, %v1326_v63  ;;  %v6460_v63 = vsel %vm6400_vm3, %v1030_v53, -1e+30  ;;  %v1864_v58 = vpop.permute.xlu0 %1863 }
 0x2e7   : > { %7858 = vst [vmem:[#allocation62_spill] sm:$0xff] %v6460_v63 }
 0x2e8   : > { %v1363_v21 = vmul.f32 0.2, %v1347_v57 }
 0x2ea   : > { %v982_v30 = vpop.permute.xlu1 %981  ;;  %v1379_v61 = vmax.f32 %v1347_v57, %v1363_v21  ;;  %v1050_v57 = vsel %vm438_vm9, 65537, %v7813_v0  ;;  %vm7871_vm9 = vnez %v7838_v55 }
 0x2eb   : > { %v1066_v21 = vunpack.c.l.b16 %v1050_v57 }
 0x2ec   : > { %v6452_v25 = vsel %vm6446_vm15, %v1379_v61, -1e+30 }
 0x2ed   : > { %7857 = vst [vmem:[#allocation61_spill] sm:$0xff] %v6452_v25  ;;  %1426 = vmax.xlane.f32.xlu1 %v6452_v25  ;;  %vm6467_vm1 = vcmp.ne.s32.totalorder %v1066_v21, 0  ;;  %v7864_v21 = vsub.s32 2, %v5828_v54 }
 0x2ee   : > { %v7860_v29 = vsel %vm6467_vm1, 4294967295, %v7859_v29 }
 0x2ef   : > { %v6456_v12 = vpop.permute.xlu1 %1911  ;;  %7861 = vst [vmem:[#allocation63_spill] sm:$0xff] %v7860_v29 }
 0x2f1   : > { %1120 = vmax.xlane.f32.xlu1 %v6460_v63  ;;  %v6477_v63 = vpop.permute.xlu0 %2316 }
 0x2f4   : > { %v1322_v31 = vpop.permute.xlu1 %1321 }
 0x2f5   : > { %v1346_v61 = vadd.f32 %v6158_v19, %v1322_v31  ;;  %v1872_v19 = vpop.permute.xlu0 %1871 }
 0x2f7   : > { %v1362_v56 = vmul.f32 0.2, %v1346_v61 }
 0x2f9   : > { %v1378_v25 = vmax.f32 %v1346_v61, %v1362_v56  ;;  %v1868_v57 = vpop.permute.xlu0 %1867  ;;  %v6513_v56 = vrot.slane %v6119_v13, %v7864_v21 }
 0x2fb   : > { %v6473_v53 = vsel %vm6467_vm1, %v1378_v25, -1e+30 }
 0x2fc   : > { %7862 = vst [vmem:[#allocation64_spill] sm:$0xff] %v6473_v53  ;;  %1424 = vmax.xlane.f32.xlu0 %v6473_v53  ;;  %v1921_v53 = vadd.f32 %v6513_v56, %v1864_v58 }
 0x2fd   : > { %v1880_v25 = vpop.permute.xlu0 %1879 }
 0x302   : > { %2312 = vperm.xlu1 %5143, %v6051_v45   ;;  %v6486_v45 = vpop.permute.xlu0 %1883 }
 0x306   : > { %2324 = vperm.xlu1 %5143, %v6061_v24   ;;  %v6490_v24 = vpop.permute.xlu0 %1895 }
 0x30a   : > { %2332 = vperm.xlu1 %5143, %v6068_v35  }
 0x30e   : > { %2340 = vperm.xlu1 %5143, %v6075_v50  }
 0x312   : > { %2348 = vperm.xlu1 %5143, %v6081_v4   ;;  %2320 = vperm.xlu0 %5144, %v6054_v16   ;;  %v6495_v16 = vpop.permute.xlu0 %1891 }
 0x316   : > { %2356 = vperm.xlu1 %5143, %v6087_v8   ;;  %2328 = vperm.xlu0 %5144, %v6059_v18   ;;  %v6498_v35 = vpop.permute.xlu0 %1903 }
 0x31a   : > { %2364 = vperm.xlu1 %5143, %v6094_v10   ;;  %2336 = vperm.xlu0 %5144, %v6066_v47   ;;  %v967_v50 = vpop.permute.xlu0 %966 }
 0x31b   : > { %v1000_v4 = vadd.f32 %v6163_v23, %v967_v50  ;;  %v1919_v50 = vadd.f32 %v6513_v56, %v6187_v42 }
 0x31d   : > { %v1016_v8 = vmul.f32 0.2, %v1000_v4  ;;  %v1935_v21 = vmul.f32 0.2, %v1919_v50 }
 0x31e   : > { %2344 = vperm.xlu0 %5144, %v6072_v49   ;;  %5145 = vset.pattern.permute.xlu1 %v7813_v0  ;;  %v977_v49 = vpop.permute.xlu0 %976 }
 0x31f   : > { %v1002_v10 = vadd.f32 %v6163_v23, %v977_v49  ;;  %v1032_v61 = vmax.f32 %v1000_v4, %v1016_v8  ;;  %v1918_v4 = vadd.f32 %v6513_v56, %v1852_v59  ;;  %v1923_v59 = vadd.f32 %v6513_v56, %v1872_v19 }
 0x320   : > { %v1951_v33 = vmax.f32 %v1919_v50, %v1935_v21 }
 0x321   : > { %v1018_v31 = vmul.f32 0.2, %v1002_v10  ;;  %v1939_v19 = vmul.f32 0.2, %v1923_v59 }
 0x322   : > { %2352 = vperm.xlu0 %5144, %v6078_v3   ;;  %v6556_v50 = vsel %vm6170_vm5, %v1951_v33, -1e+30 }
 0x326   : > { %2360 = vperm.xlu0 %5144, %v6084_v5   ;;  %v6500_v18 = vpop.xlane.xlu1 %1102  ;;  %v1003_v5 = vadd.f32 %v6163_v23, %v982_v30  ;;  %v1034_v30 = vmax.f32 %v1002_v10, %v1018_v31  ;;  %v1920_v10 = vadd.f32 %v6513_v56, %v6224_v6 }
 0x327   : > { %7863 = vst [vmem:[#allocation65_spill] sm:$0xff] %v6500_v18  ;;  %v6523_v18 = vsel %vm6434_vm2, %v1032_v61, -1e+30  ;;  %v1934_v61 = vmul.f32 0.2, %v1918_v4 }
 0x328   : > { %v1019_v49 = vmul.f32 0.2, %v1003_v5  ;;  %7865 = vst [vmem:[#allocation66_spill] sm:$0xff] %v6523_v18 }
 0x32a   : > { %2368 = vperm.xlu0 %5144, %v6091_v9   ;;  %v6503_v47 = vpop.xlane.xlu1 %1396  ;;  %v1001_v9 = vadd.f32 %v6163_v23, %v6413_v22  ;;  %v6530_v23 = vsel %vm6467_vm1, %v1034_v30, -1e+30  ;;  %v1035_v22 = vmax.f32 %v1003_v5, %v1019_v49  ;;  %v6543_v5 = vpop.permute.xlu0 %1907  ;;  %v1922_v49 = vadd.f32 %v6513_v56, %v1868_v57 }
 0x32b   : > { %7866 = vst [vmem:[#allocation67_spill] sm:$0xff] %v6530_v23  ;;  %v1936_v30 = vmul.f32 0.2, %v1920_v10 }
 0x32c   : > { %v1017_v8 = vmul.f32 0.2, %v1001_v9  ;;  %v6540_v58 = vsel %vm6446_vm15, %v1035_v22, -1e+30  ;;  %v1938_v22 = vmul.f32 0.2, %v1922_v49 }
 0x32d   : > { %7867 = vst [vmem:[#allocation68_spill] sm:$0xff] %v6540_v58 }
 0x32e   : > { %v6507_v3 = vpop.xlane.xlu1 %1402  ;;  %v1033_v31 = vmax.f32 %v1001_v9, %v1017_v8  ;;  %v1950_v9 = vmax.f32 %v1918_v4, %v1934_v61  ;;  %v1925_v8 = vadd.f32 %v6513_v56, %v1880_v25  ;;  %v1399_v57 = vpop.xlane.xlu0 %1398  ;;  %v1952_v61 = vmax.f32 %v1920_v10, %v1936_v30 }
 0x32f   : > { %v1926_v10 = vadd.f32 %v6513_v56, %v6486_v45  ;;  %v1428_v45 = vsub.f32 %v6291_v36, %v6503_v47 }
 0x330   : > { %v6550_v6 = vsel %vm6415_vm10, %v1033_v31, -1e+30  ;;  %v6563_v4 = vsel %vm6183_vm6, %v1950_v9, -1e+30  ;;  %v1941_v25 = vmul.f32 0.2, %v1925_v8  ;;  %v1927_v31 = vadd.f32 %v6513_v56, %v6330_v41 }
 0x331   : > { %7868 = vst [vmem:[#allocation69_spill] sm:$0xff] %v6563_v4  ;;  %v6580_v41 = vsel %vm6305_vm0, %v1952_v61, -1e+30  ;;  %v1954_v9 = vmax.f32 %v1922_v49, %v1938_v22  ;;  %v1942_v49 = vmul.f32 0.2, %v1926_v10 }
 0x332   : > { %v6517_v0 = vpop.xlane.xlu1 %1400  ;;  %7870 = vst [vmem:[#allocation71_spill] sm:$0xff] %v6580_v41 }
 0x333   : > { %v6600_v61 = vsel %vm6247_vm12, %v1954_v9, -1e+30 }
 0x336   : > { %v6532_v42 = vpop.xlane.xlu1 %1104 }
 0x33e   : > { %1124 = vmax.xlane.f32.xlu1 %v6523_v18  ;;  %v1937_v18 = vmul.f32 0.2, %v1921_v53 }
 0x340   : > { %v1953_v21 = vmax.f32 %v1921_v53, %v1937_v18  ;;  %v1955_v53 = vmax.f32 %v1923_v59, %v1939_v19  ;;  %v6584_v59 = vpop.xlane.xlu0 %1100  ;;  %v1957_v19 = vmax.f32 %v1925_v8, %v1941_v25  ;;  %v1444_v8 = vmul.f32 1.442695, %v1428_v45 }
 0x342   : > { %1128 = vmax.xlane.f32.xlu1 %v6530_v23  ;;  %v6546_v23 = vpop.xlane.xlu1 %1406  ;;  %v6570_v33 = vsel %vm6209_vm8, %v1953_v21, -1e+30  ;;  %v1929_v21 = vadd.f32 %v6513_v56, %v6490_v24  ;;  %v1928_v24 = vadd.f32 %v6513_v56, %v6495_v16  ;;  %v6607_v36 = vsel %vm6262_vm14, %v1957_v19, -1e+30 }
 0x343   : > { %7869 = vst [vmem:[#allocation70_spill] sm:$0xff] %v6570_v33  ;;  %v1431_v16 = vsub.f32 %v6300_v2, %v6507_v3  ;;  %v1430_v2 = vsub.f32 %v6311_v26, %v6517_v0 }
 0x344   : > { %v1944_v25 = vmul.f32 0.2, %v1928_v24 }
 0x345   : > { %v1448_v26 = vmul.f32 1.442695, %v1430_v2 }
 0x346   : > { %1130 = vmax.xlane.f32.xlu1 %v6540_v58  ;;  %v1924_v58 = vadd.f32 %v6513_v56, %v6294_v62  ;;  %v6572_v18 = vpop.xlane.xlu1 %1108  ;;  %v1429_v62 = vsub.f32 %v6180_v17, %v1399_v57  ;;  %v6589_v17 = vsel %vm6237_vm11, %v1955_v53, -1e+30  ;;  %v1945_v53 = vmul.f32 0.2, %v1929_v21 }
 0x347   : > { %v1960_v19 = vmax.f32 %v1928_v24, %v1944_v25  ;;  %v1932_v25 = vadd.f32 %v6513_v56, %v6543_v5 }
 0x348   : > { %v1940_v30 = vmul.f32 0.2, %v1924_v58  ;;  %v1446_v57 = vmul.f32 1.442695, %v1429_v62  ;;  %v1958_v62 = vmax.f32 %v1926_v10, %v1942_v49  ;;  %v1450_v10 = vmul.f32 1.442695, %v1431_v16 }
 0x349   : > { %1126 = vmax.xlane.f32.xlu0 %v6550_v6  ;;  %v6648_v24 = vsel %vm6400_vm3, %v1960_v19, -1e+30  ;;  %v1948_v19 = vmul.f32 0.2, %v1932_v25 }
 0x34a   : > { %1984 = vmax.xlane.f32.xlu1 %v6556_v50  ;;  %v6596_v22 = vpop.xlane.xlu1 %1408  ;;  %5163 = vpow2.f32 %v1446_v57 }
 0x34b   : > { %5165 = vpow2.f32 %v1444_v8 }
 0x34c   : > { %5167 = vpow2.f32 %v1450_v10 }
 0x34d   : > { %1982 = vmax.xlane.f32.xlu0 %v6563_v4  ;;  %v1943_v4 = vmul.f32 0.2, %v1927_v31  ;;  %5169 = vpow2.f32 %v1448_v26 }
 0x34e   : > { %1988 = vmax.xlane.f32.xlu1 %v6570_v33  ;;  %v6602_v33 = vpop.xlane.xlu0 %1106  ;;  %v6627_v3 = vpop.xlane.xlu1 %1112 }
 0x34f   : > { %v1959_v47 = vmax.f32 %v1927_v31, %v1943_v4  ;;  %v1961_v31 = vmax.f32 %v1929_v21, %v1945_v53 }
 0x351   : > { %1986 = vmax.xlane.f32.xlu0 %v6580_v41  ;;  %v1956_v41 = vmax.f32 %v1924_v58, %v1940_v30  ;;  %v1931_v30 = vadd.f32 %v6513_v56, %v6498_v35  ;;  %v6623_v4 = vsel %vm6332_vm4, %v1959_v47, -1e+30  ;;  %v1930_v35 = vadd.f32 %v6513_v56, %v6432_v39 }
 0x352   : > { %1992 = vmax.xlane.f32.xlu1 %v6589_v17  ;;  %v6618_v9 = vpop.xlane.xlu0 %1110  ;;  %v6639_v21 = vsel %vm7871_vm9, %v1961_v31, -1e+30  ;;  %v1433_v39 = vsub.f32 %v6327_v20, %v6546_v23  ;;  %v6644_v49 = vpop.xlane.xlu1 %1414  ;;  %v1933_v47 = vadd.f32 %v6513_v56, %v6456_v12 }
 0x353   : > { %v6614_v58 = vsel %vm6347_vm7, %v1956_v41, -1e+30  ;;  %v6634_v41 = vsel %vm6372_vm13, %v1958_v62, -1e+30  ;;  %v1947_v45 = vmul.f32 0.2, %v1931_v30 }
 0x354   : > { %v1946_v57 = vmul.f32 0.2, %v1930_v35  ;;  %v6650_v53 = vpop.eup %5163  ;;  %v1454_v20 = vmul.f32 1.442695, %v1433_v39  ;;  %v1949_v31 = vmul.f32 0.2, %v1933_v47 }
 0x355   : > { %1990 = vmax.xlane.f32.xlu0 %v6600_v61  ;;  %v1963_v8 = vmax.f32 %v1931_v30, %v1947_v45  ;;  %v6657_v23 = vpop.eup %5165  ;;  %v1434_v45 = vsub.f32 %v6355_v52, %v6596_v22 }
 0x356   : > { %1996 = vmax.xlane.f32.xlu1 %v6607_v36  ;;  %v1405_v0 = vpop.xlane.xlu0 %1404  ;;  %v1962_v62 = vmax.f32 %v1930_v35, %v1946_v57  ;;  %v1413_v2 = vpop.xlane.xlu1 %1412  ;;  %5171 = vpow2.f32 %v1454_v20  ;;  %v1965_v35 = vmax.f32 %v1933_v47, %v1949_v31 }
 0x357   : > { %v1432_v16 = vsub.f32 %v6253_v51, %v1405_v0  ;;  %v6664_v12 = vsel %vm6415_vm10, %v1963_v8, -1e+30  ;;  %v7872_v51 = vsub.s32 3, %v5828_v54  ;;  %v6676_v5 = vpop.eup %5167  ;;  %v1964_v0 = vmax.f32 %v1932_v25, %v1948_v19 }
 0x358   : > { %v6674_v56 = vsel %vm6434_vm2, %v1962_v62, -1e+30  ;;  %v6682_v54 = vpop.eup %5169  ;;  %v6691_v39 = vsel %vm6446_vm15, %v1965_v35, -1e+30  ;;  %v1456_v47 = vmul.f32 1.442695, %v1434_v45 }
 0x359   : > { %1994 = vmax.xlane.f32.xlu0 %v6614_v58  ;;  %v1452_v30 = vmul.f32 1.442695, %v1432_v16  ;;  %v6670_v10 = vrot.slane %v6119_v13, %v7872_v51  ;;  %v6696_v22 = vsel %vm6467_vm1, %v1964_v0, -1e+30 }
 0x35a   : > { %2000 = vmax.xlane.f32.xlu1 %v6623_v4  ;;  %v6686_v26 = vpop.xlane.xlu1 %1116  ;;  %v1411_v57 = vpop.xlane.xlu0 %1410 }
 0x35b   : > { %5173 = vpow2.f32 %v1452_v30  ;;  %v2375_v13 = vadd.f32 %v6670_v10, %v6465_v37  ;;  %v1436_v37 = vsub.f32 %v6379_v1, %v1413_v2  ;;  %v2377_v25 = vadd.f32 %v6670_v10, %v6477_v63 }
 0x35c   : > { %5175 = vpow2.f32 %v1456_v47  ;;  %v1435_v63 = vsub.f32 %v6268_v34, %v1411_v57 }
 0x35d   : > { %1998 = vmax.xlane.f32.xlu0 %v6634_v41  ;;  %v2391_v52 = vmul.f32 0.2, %v2375_v13  ;;  %v1460_v30 = vmul.f32 1.442695, %v1436_v37  ;;  %v2393_v19 = vmul.f32 0.2, %v2377_v25 }
 0x35e   : > { %2004 = vmax.xlane.f32.xlu1 %v6639_v21  ;;  %v6702_v16 = vpop.xlane.xlu1 %1418  ;;  %v6709_v62 = vpop.xlane.xlu0 %1114  ;;  %v7876_v37 = vld [vmem:[#allocation54_spill] sm:$0xff] }
 0x35f   : > { %v2407_v31 = vmax.f32 %v2375_v13, %v2391_v52  ;;  %5177 = vpow2.f32 %v1460_v30  ;;  %v2409_v0 = vmax.f32 %v2377_v25, %v2393_v19  ;;  %v1458_v52 = vmul.f32 1.442695, %v1435_v63 }
 0x360   : > { %v6698_v8 = vpop.eup %5171 }
 0x361   : > { %2002 = vmax.xlane.f32.xlu0 %v6648_v24  ;;  %7873 = vst [vmem:[#allocation72_spill] sm:$0xff] %v6698_v8  ;;  %v6716_v1 = vsel %vm6183_vm6, %v2407_v31, -1e+30  ;;  %v6730_v31 = vsel %vm6305_vm0, %v2409_v0, -1e+30  ;;  %5179 = vpow2.f32 %v1458_v52  ;;  %v7881_v52 = vld [vmem:[#allocation48_spill] sm:$0xff] }
 0x362   : > { %1478 = vadd.xlane.f32.xlu1 %v6650_v53  ;;  %v6712_v35 = vpop.xlane.xlu0 %1118  ;;  %7877 = vst [vmem:[#allocation54_spill] sm:$0xff] %v6730_v31 }
 0x365   : > { %1476 = vadd.xlane.f32.xlu0 %v6657_v23  ;;  %v6705_v20 = vpop.eup %5173 }
 0x366   : > { %2008 = vmax.xlane.f32.xlu1 %v6664_v12  ;;  %7874 = vst [vmem:[#allocation73_spill] sm:$0xff] %v6705_v20  ;;  %v6722_v45 = vpop.eup %5175  ;;  %v1417_v13 = vpop.xlane.xlu0 %1416 }
 0x367   : > { %7875 = vst [vmem:[#allocation74_spill] sm:$0xff] %v6722_v45  ;;  %v1438_v27 = vsub.f32 %v7876_v37, %v1417_v13  ;;  %v7879_v13 = vld [vmem:[#allocation59_spill] sm:$0xff] }
 0x369   : > { %2006 = vmax.xlane.f32.xlu0 %v6674_v56  ;;  %v1464_v57 = vmul.f32 1.442695, %v1438_v27  ;;  %v6736_v19 = vpop.eup %5177 }
 0x36a   : > { %1482 = vadd.xlane.f32.xlu1 %v6676_v5  ;;  %v6733_v30 = vpop.xlane.xlu0 %1422  ;;  %7878 = vst [vmem:[#allocation75_spill] sm:$0xff] %v6736_v19 }
 0x36b   : > { %5181 = vpow2.f32 %v1464_v57 }
 0x36d   : > { %1480 = vadd.xlane.f32.xlu0 %v6682_v54 }
 0x36e   : > { %2012 = vmax.xlane.f32.xlu1 %v6691_v39 }
 0x370   : > { %v1421_v51 = vpop.xlane.xlu1 %1420 }
 0x371   : > { %2010 = vmax.xlane.f32.xlu0 %v6696_v22  ;;  %v1440_v37 = vsub.f32 %v7879_v13, %v1421_v51 }
 0x372   : > { %1486 = vadd.xlane.f32.xlu1 %v6698_v8  ;;  %v6741_v8 = vpop.xlane.xlu0 %1122 }
 0x375   : > { %1484 = vadd.xlane.f32.xlu0 %v6705_v20 }
 0x379   : > { %2439 = vmax.xlane.f32.xlu0 %v6716_v1 }
 0x37a   : > { %v6719_v2 = vpop.xlane.xlu1 %1426 }
 0x37d   : > { %1488 = vadd.xlane.f32.xlu0 %v6722_v45 }
 0x37e   : > { %v6725_v47 = vpop.xlane.xlu1 %1120 }
 0x381   : > { %2443 = vmax.xlane.f32.xlu0 %v6730_v31  ;;  %v1468_v31 = vmul.f32 1.442695, %v1440_v37 }
 0x382   : > { %v2313_v34 = vpop.permute.xlu1 %2312 }
 0x383   : > { %v2376_v25 = vadd.f32 %v6670_v10, %v2313_v34  ;;  %v1437_v34 = vsub.f32 %v7881_v52, %v6644_v49  ;;  %5183 = vpow2.f32 %v1468_v31  ;;  %v7884_v52 = vld [vmem:[#allocation64_spill] sm:$0xff] }
 0x385   : > { %v2392_v45 = vmul.f32 0.2, %v2376_v25  ;;  %1492 = vadd.xlane.f32.xlu0 %v6736_v19 }
 0x386   : > { %v2325_v63 = vpop.permute.xlu1 %2324 }
 0x387   : > { %v2379_v0 = vadd.f32 %v6670_v10, %v2325_v63  ;;  %v2408_v11 = vmax.f32 %v2376_v25, %v2392_v45  ;;  %v6751_v63 = vpop.eup %5179 }
 0x388   : > { %7882 = vst [vmem:[#allocation48_spill] sm:$0xff] %v6751_v63  ;;  %v6760_v7 = vpop.eup %5181 }
 0x389   : > { %v2395_v20 = vmul.f32 0.2, %v2379_v0  ;;  %v6745_v27 = vsel %vm6170_vm5, %v2408_v11, -1e+30  ;;  %v1425_v13 = vpop.xlane.xlu0 %1424  ;;  %v1462_v11 = vmul.f32 1.442695, %v1437_v34 }
 0x38a   : > { %7880 = vst [vmem:[#allocation59_spill] sm:$0xff] %v6745_v27  ;;  %2441 = vmax.xlane.f32.xlu1 %v6745_v27  ;;  %v2333_v19 = vpop.permute.xlu1 %2332  ;;  %v1442_v37 = vsub.f32 %v7884_v52, %v1425_v13 }
 0x38b   : > { %v2381_v57 = vadd.f32 %v6670_v10, %v2333_v19  ;;  %v2411_v51 = vmax.f32 %v2379_v0, %v2395_v20  ;;  %5185 = vpow2.f32 %v1462_v11 }
 0x38d   : > { %v2397_v45 = vmul.f32 0.2, %v2381_v57  ;;  %v6755_v25 = vsel %vm6247_vm12, %v2411_v51, -1e+30  ;;  %v1439_v51 = vsub.f32 %v7885_v43, %v6702_v16  ;;  %v7886_v43 = vld [vmem:[#allocation32_spill] sm:$0xff] }
 0x38e   : > { %7883 = vst [vmem:[#allocation76_spill] sm:$0xff] %v6755_v25  ;;  %1490 = vadd.xlane.f32.xlu1 %v6751_v63  ;;  %2447 = vmax.xlane.f32.xlu0 %v6755_v25  ;;  %v2341_v49 = vpop.permute.xlu1 %2340  ;;  %v1472_v63 = vmul.f32 1.442695, %v1442_v37  ;;  %v1132_v16 = vsub.f32 %v7886_v43, %v6584_v59 }
 0x38f   : > { %v2383_v20 = vadd.f32 %v6670_v10, %v2341_v49  ;;  %v2413_v0 = vmax.f32 %v2381_v57, %v2397_v45  ;;  %v1466_v52 = vmul.f32 1.442695, %v1439_v51 }
 0x390   : > { %5187 = vpow2.f32 %v1472_v63  ;;  %v1148_v59 = vmul.f32 1.442695, %v1132_v16 }
 0x391   : > { %v2321_v19 = vpop.permute.xlu0 %2320  ;;  %v2399_v27 = vmul.f32 0.2, %v2383_v20  ;;  %v6769_v13 = vsel %vm6347_vm7, %v2413_v0, -1e+30  ;;  %5189 = vpow2.f32 %v1466_v52 }
 0x392   : > { %v2378_v34 = vadd.f32 %v6670_v10, %v2321_v19  ;;  %1496 = vadd.xlane.f32.xlu0 %v6760_v7  ;;  %v2349_v49 = vpop.permute.xlu1 %2348  ;;  %v6779_v19 = vpop.eup %5183  ;;  %5191 = vpow2.f32 %v1148_v59 }
 0x393   : > { %v2385_v0 = vadd.f32 %v6670_v10, %v2349_v49 }
 0x394   : > { %v2394_v25 = vmul.f32 0.2, %v2378_v34 }
 0x395   : > { %v2329_v31 = vpop.permute.xlu0 %2328  ;;  %v6786_v63 = vpop.eup %5185  ;;  %v2401_v40 = vmul.f32 0.2, %v2385_v0 }
 0x396   : > { %v2380_v57 = vadd.f32 %v6670_v10, %v2329_v31  ;;  %2451 = vmax.xlane.f32.xlu0 %v6769_v13  ;;  %v2410_v45 = vmax.f32 %v2378_v34, %v2394_v25  ;;  %v2415_v31 = vmax.f32 %v2383_v20, %v2399_v27  ;;  %v7887_v25 = vld [vmem:[#allocation56_spill] sm:$0xff]  ;;  %v2357_v20 = vpop.permute.xlu1 %2356 }
 0x397   : > { %v1441_v34 = vsub.f32 %v7887_v25, %v6733_v30  ;;  %v7888_v30 = vld [vmem:[#allocation42_spill] sm:$0xff] }
 0x398   : > { %v2396_v11 = vmul.f32 0.2, %v2380_v57  ;;  %v6777_v37 = vsel %vm6209_vm8, %v2410_v45, -1e+30  ;;  %v6792_v49 = vsel %vm6372_vm13, %v2415_v31, -1e+30  ;;  %v1134_v52 = vsub.f32 %v7888_v30, %v6532_v42 }
 0x399   : > { %v2337_v51 = vpop.permute.xlu0 %2336  ;;  %2445 = vmax.xlane.f32.xlu1 %v6777_v37  ;;  %v1470_v27 = vmul.f32 1.442695, %v1441_v34  ;;  %v2417_v31 = vmax.f32 %v2385_v0, %v2401_v40  ;;  %v7890_v34 = vld [vmem:[#allocation61_spill] sm:$0xff] }
 0x39a   : > { %1500 = vadd.xlane.f32.xlu0 %v6779_v19  ;;  %v2382_v45 = vadd.f32 %v6670_v10, %v2337_v51  ;;  %v2412_v43 = vmax.f32 %v2380_v57, %v2396_v11  ;;  %v6801_v57 = vpop.eup %5187  ;;  %v2387_v11 = vadd.f32 %v6670_v10, %v2357_v20  ;;  %v1443_v59 = vsub.f32 %v7890_v34, %v6719_v2  ;;  %v2365_v0 = vpop.permute.xlu1 %2364  ;;  %v7891_v2 = vld [vmem:[#allocation44_spill] sm:$0xff] }
 0x39b   : > { %7889 = vst [vmem:[#allocation64_spill] sm:$0xff] %v6801_v57  ;;  %5193 = vpow2.f32 %v1470_v27  ;;  %v1152_v42 = vmul.f32 1.442695, %v1134_v52  ;;  %v6808_v30 = vpop.eup %5189  ;;  %v6814_v20 = vsel %vm6400_vm3, %v2417_v31, -1e+30  ;;  %v1136_v27 = vsub.f32 %v7891_v2, %v6572_v18 }
 0x39c   : > { %v2398_v16 = vmul.f32 0.2, %v2382_v45  ;;  %v6799_v51 = vsel %vm6237_vm11, %v2412_v43, -1e+30  ;;  %v2403_v15 = vmul.f32 0.2, %v2387_v11 }
 0x39d   : > { %1494 = vadd.xlane.f32.xlu1 %v6786_v63  ;;  %v2345_v25 = vpop.permute.xlu0 %2344  ;;  %v1474_v40 = vmul.f32 1.442695, %v1443_v59  ;;  %5195 = vpow2.f32 %v1152_v42  ;;  %v7892_v59 = vld [vmem:[#allocation65_spill] sm:$0xff]  ;;  %v1156_v18 = vmul.f32 1.442695, %v1136_v27  ;;  %v7894_v42 = vld [vmem:[#allocation47_spill] sm:$0xff] }
 0x39e   : > { %2455 = vmax.xlane.f32.xlu0 %v6792_v49  ;;  %v2384_v43 = vadd.f32 %v6670_v10, %v2345_v25  ;;  %v2414_v48 = vmax.f32 %v2382_v45, %v2398_v16  ;;  %v6823_v45 = vpop.eup %5191  ;;  %v2389_v16 = vadd.f32 %v6670_v10, %v2365_v0  ;;  %v2419_v31 = vmax.f32 %v2387_v11, %v2403_v15 }
 0x39f   : > { %v1133_v32 = vsub.f32 %v7893_v46, %v7892_v59  ;;  %5197 = vpow2.f32 %v1474_v40  ;;  %v1138_v2 = vsub.f32 %v7894_v42, %v6627_v3  ;;  %v7895_v40 = vld [vmem:[#allocation50_spill] sm:$0xff] }
 0x3a0   : > { %v2400_v52 = vmul.f32 0.2, %v2384_v43  ;;  %v6821_v25 = vsel %vm6262_vm14, %v2414_v48, -1e+30  ;;  %v2405_v0 = vmul.f32 0.2, %v2389_v16  ;;  %5199 = vpow2.f32 %v1156_v18 }
 0x3a1   : > { %2449 = vmax.xlane.f32.xlu1 %v6799_v51  ;;  %v2353_v34 = vpop.permute.xlu0 %2352  ;;  %v6838_v15 = vsel %vm6434_vm2, %v2419_v31, -1e+30  ;;  %v1150_v46 = vmul.f32 1.442695, %v1133_v32  ;;  %v1160_v11 = vmul.f32 1.442695, %v1138_v2  ;;  %v1140_v3 = vsub.f32 %v7895_v40, %v6686_v26 }
 0x3a2   : > { %1504 = vadd.xlane.f32.xlu0 %v6801_v57  ;;  %v2386_v60 = vadd.f32 %v6670_v10, %v2353_v34  ;;  %v2416_v57 = vmax.f32 %v2384_v43, %v2400_v52  ;;  %v2421_v31 = vmax.f32 %v2389_v16, %v2405_v0  ;;  %v7896_v32 = vld [vmem:[#allocation34_spill] sm:$0xff] }
 0x3a3   : > { %v1135_v59 = vsub.f32 %v7896_v32, %v6602_v33  ;;  %5201 = vpow2.f32 %v1150_v46  ;;  %v1164_v18 = vmul.f32 1.442695, %v1140_v3  ;;  %v7897_v26 = vld [vmem:[#allocation62_spill] sm:$0xff] }
 0x3a4   : > { %v2402_v27 = vmul.f32 0.2, %v2386_v60  ;;  %v6845_v34 = vsel %vm6332_vm4, %v2416_v57, -1e+30  ;;  %5203 = vpow2.f32 %v1160_v11  ;;  %v1142_v42 = vsub.f32 %v7897_v26, %v6725_v47  ;;  %v7899_v26 = vld [vmem:[#allocation39_spill] sm:$0xff] }
 0x3a5   : > { %1498 = vadd.xlane.f32.xlu1 %v6808_v30  ;;  %v6832_v48 = vpop.eup %5193  ;;  %v2361_v52 = vpop.permute.xlu0 %2360  ;;  %v6861_v16 = vsel %vm6467_vm1, %v2421_v31, -1e+30  ;;  %v1154_v33 = vmul.f32 1.442695, %v1135_v59  ;;  %5205 = vpow2.f32 %v1164_v18 }
 0x3a6   : > { %2459 = vmax.xlane.f32.xlu0 %v6814_v20  ;;  %v2388_v57 = vadd.f32 %v6670_v10, %v2361_v52  ;;  %v2418_v40 = vmax.f32 %v2386_v60, %v2402_v27  ;;  %v1168_v0 = vmul.f32 1.442695, %v1142_v42  ;;  %v7898_v60 = vld [vmem:[#allocation36_spill] sm:$0xff]  ;;  %v1139_v42 = vsub.f32 %v7899_v26, %v6709_v62 }
 0x3a7   : > { %v6847_v43 = vpop.eup %5195  ;;  %5207 = vpow2.f32 %v1154_v33  ;;  %v1137_v27 = vsub.f32 %v7898_v60, %v6618_v9 }
 0x3a8   : > { %v2404_v46 = vmul.f32 0.2, %v2388_v57  ;;  %v6866_v47 = vsel %vm7871_vm9, %v2418_v40, -1e+30  ;;  %5209 = vpow2.f32 %v1168_v0 }
 0x3a9   : > { %2453 = vmax.xlane.f32.xlu1 %v6821_v25  ;;  %v6855_v2 = vpop.eup %5197  ;;  %v2369_v3 = vpop.permute.xlu0 %2368  ;;  %v1158_v18 = vmul.f32 1.442695, %v1137_v27  ;;  %v7901_v27 = vld [vmem:[#allocation57_spill] sm:$0xff] }
 0x3aa   : > { %1180 = vadd.xlane.f32.xlu0 %v6823_v45  ;;  %v6868_v11 = vpop.eup %5199  ;;  %v2390_v31 = vadd.f32 %v6670_v10, %v2369_v3  ;;  %v2420_v32 = vmax.f32 %v2388_v57, %v2404_v46  ;;  %v1162_v10 = vmul.f32 1.442695, %v1139_v42  ;;  %v7900_v57 = vld [vmem:[#allocation45_spill] sm:$0xff]  ;;  %v7902_v42 = vld [vmem:[#allocation66_spill] sm:$0xff] }
 0x3ab   : > { %5211 = vpow2.f32 %v1158_v18  ;;  %v1141_v0 = vsub.f32 %v7900_v57, %v6712_v35 }
 0x3ac   : > { %v2406_v40 = vmul.f32 0.2, %v2390_v31  ;;  %v6885_v9 = vsel %vm6415_vm10, %v2420_v32, -1e+30  ;;  %5213 = vpow2.f32 %v1162_v10  ;;  %v1143_v32 = vsub.f32 %v7901_v27, %v6741_v8 }
 0x3ad   : > { %1502 = vadd.xlane.f32.xlu1 %v6832_v48  ;;  %v6874_v52 = vpop.eup %5201  ;;  %v1166_v60 = vmul.f32 1.442695, %v1141_v0  ;;  %v7903_v0 = vld [vmem:[#allocation67_spill] sm:$0xff] }
 0x3ae   : > { %2463 = vmax.xlane.f32.xlu0 %v6838_v15  ;;  %v6877_v59 = vpop.eup %5203  ;;  %v2422_v62 = vmax.f32 %v2390_v31, %v2406_v40  ;;  %v1170_v35 = vmul.f32 1.442695, %v1143_v32 }
 0x3af   : > { %v6887_v33 = vpop.eup %5205  ;;  %5215 = vpow2.f32 %v1166_v60 }
 0x3b0   : > { %v6903_v18 = vsel %vm6446_vm15, %v2422_v62, -1e+30  ;;  %5217 = vpow2.f32 %v1170_v35  ;;  %vm7954_vm15 = vmmov 0  }
 0x3b1   : > { %2457 = vmax.xlane.f32.xlu1 %v6845_v34  ;;  %v6893_v46 = vpop.eup %5207 }
 0x3b2   : > { %1184 = vadd.xlane.f32.xlu0 %v6847_v43  ;;  %v6895_v3 = vpop.eup %5209 }
 0x3b5   : > { %1506 = vadd.xlane.f32.xlu1 %v6855_v2  ;;  %v6906_v26 = vpop.eup %5211 }
 0x3b6   : > { %2467 = vmax.xlane.f32.xlu0 %v6861_v16  ;;  %v6910_v57 = vpop.eup %5213 }
 0x3b9   : > { %2461 = vmax.xlane.f32.xlu1 %v6866_v47  ;;  %v6914_v32 = vpop.eup %5215 }
 0x3ba   : > { %1188 = vadd.xlane.f32.xlu0 %v6868_v11  ;;  %v6919_v29 = vpop.eup %5217 }
 0x3bb   : > { %7905 = vst [vmem:[#allocation52_spill] sm:$0xff] %v6919_v29 }
 0x3bd   : > { %1182 = vadd.xlane.f32.xlu1 %v6874_v52 }
 0x3be   : > { %1192 = vadd.xlane.f32.xlu0 %v6877_v59 }
 0x3c1   : > { %2465 = vmax.xlane.f32.xlu1 %v6885_v9 }
 0x3c2   : > { %1196 = vadd.xlane.f32.xlu0 %v6887_v33 }
 0x3c5   : > { %1186 = vadd.xlane.f32.xlu1 %v6893_v46 }
 0x3c6   : > { %1200 = vadd.xlane.f32.xlu0 %v6895_v3 }
 0x3c9   : > { %2469 = vmax.xlane.f32.xlu1 %v6903_v18 }
 0x3cb   : > { %v1125_v31 = vpop.xlane.xlu1 %1124 }
 0x3cc   : > { %v1144_v40 = vsub.f32 %v7902_v42, %v1125_v31  ;;  %v7904_v31 = vld [vmem:[#allocation68_spill] sm:$0xff] }
 0x3cd   : > { %1190 = vadd.xlane.f32.xlu1 %v6906_v26 }
 0x3ce   : > { %v1172_v10 = vmul.f32 1.442695, %v1144_v40 }
 0x3cf   : > { %v1129_v8 = vpop.xlane.xlu1 %1128 }
 0x3d0   : > { %5219 = vpow2.f32 %v1172_v10  ;;  %v1146_v62 = vsub.f32 %v7903_v0, %v1129_v8 }
 0x3d1   : > { %1194 = vadd.xlane.f32.xlu1 %v6910_v57 }
 0x3d2   : > { %v1176_v27 = vmul.f32 1.442695, %v1146_v62 }
 0x3d3   : > { %v1131_v60 = vpop.xlane.xlu1 %1130 }
 0x3d4   : > { %5221 = vpow2.f32 %v1176_v27  ;;  %v1147_v42 = vsub.f32 %v7904_v31, %v1131_v60  ;;  %v7906_v27 = vld [vmem:[#allocation69_spill] sm:$0xff] }
 0x3d5   : > { %1198 = vadd.xlane.f32.xlu1 %v6914_v32 }
 0x3d6   : > { %v1127_v38 = vpop.xlane.xlu0 %1126  ;;  %v1178_v0 = vmul.f32 1.442695, %v1147_v42 }
 0x3d7   : > { %v1145_v35 = vsub.f32 %v6550_v6, %v1127_v38  ;;  %v1985_v40 = vpop.xlane.xlu1 %1984 }
 0x3d8   : > { %v2015_v62 = vsub.f32 %v6556_v50, %v1985_v40 }
 0x3d9   : > { %v1174_v10 = vmul.f32 1.442695, %v1145_v35  ;;  %1202 = vadd.xlane.f32.xlu1 %v6919_v29  ;;  %v7907_v35 = vld [vmem:[#allocation70_spill] sm:$0xff]  ;;  %v7908_v29 = vld [vmem:[#allocation71_spill] sm:$0xff] }
 0x3da   : > { %v6922_v8 = vpop.eup %5219  ;;  %v1983_v28 = vpop.xlane.xlu0 %1982  ;;  %v2032_v6 = vmul.f32 1.442695, %v2015_v62 }
 0x3db   : > { %5223 = vpow2.f32 %v1174_v10  ;;  %v2014_v14 = vsub.f32 %v7906_v27, %v1983_v28  ;;  %1204 = vadd.xlane.f32.xlu0 %v6922_v8  ;;  %v1989_v60 = vpop.xlane.xlu1 %1988 }
 0x3dc   : > { %5225 = vpow2.f32 %v1178_v0  ;;  %v2017_v55 = vsub.f32 %v7907_v35, %v1989_v60 }
 0x3dd   : > { %v2030_v31 = vmul.f32 1.442695, %v2014_v14 }
 0x3de   : > { %v6927_v38 = vpop.eup %5221  ;;  %v1987_v44 = vpop.xlane.xlu0 %1986  ;;  %v2036_v28 = vmul.f32 1.442695, %v2017_v55 }
 0x3df   : > { %5227 = vpow2.f32 %v2030_v31  ;;  %v2016_v42 = vsub.f32 %v7908_v29, %v1987_v44  ;;  %1208 = vadd.xlane.f32.xlu0 %v6927_v38  ;;  %v1993_v50 = vpop.xlane.xlu1 %1992 }
 0x3e0   : > { %5229 = vpow2.f32 %v2032_v6  ;;  %v2019_v10 = vsub.f32 %v6589_v17, %v1993_v50 }
 0x3e1   : > { %v2034_v40 = vmul.f32 1.442695, %v2016_v42 }
 0x3e2   : > { %v1991_v27 = vpop.xlane.xlu0 %1990  ;;  %v2040_v31 = vmul.f32 1.442695, %v2019_v10 }
 0x3e3   : > { %5231 = vpow2.f32 %v2034_v40  ;;  %v2018_v14 = vsub.f32 %v6600_v61, %v1991_v27  ;;  %v1997_v0 = vpop.xlane.xlu1 %1996 }
 0x3e4   : > { %5233 = vpow2.f32 %v2036_v28  ;;  %v2021_v44 = vsub.f32 %v6607_v36, %v1997_v0 }
 0x3e5   : > { %v6934_v62 = vpop.eup %5223  ;;  %v2038_v60 = vmul.f32 1.442695, %v2018_v14 }
 0x3e6   : > { %v1995_v29 = vpop.xlane.xlu0 %1994  ;;  %1206 = vadd.xlane.f32.xlu1 %v6934_v62  ;;  %v6939_v17 = vpop.eup %5225  ;;  %v2044_v50 = vmul.f32 1.442695, %v2021_v44 }
 0x3e7   : > { %5235 = vpow2.f32 %v2038_v60  ;;  %v2020_v55 = vsub.f32 %v6614_v58, %v1995_v29  ;;  %v2001_v6 = vpop.xlane.xlu1 %2000 }
 0x3e8   : > { %v2023_v42 = vsub.f32 %v6623_v4, %v2001_v6  ;;  %5237 = vpow2.f32 %v2040_v31 }
 0x3e9   : > { %v6941_v35 = vpop.eup %5227  ;;  %v2042_v61 = vmul.f32 1.442695, %v2020_v55 }
 0x3ea   : > { %v1999_v40 = vpop.xlane.xlu0 %1998  ;;  %2062 = vadd.xlane.f32.xlu0 %v6941_v35  ;;  %1210 = vadd.xlane.f32.xlu1 %v6939_v17  ;;  %v6947_v58 = vpop.eup %5229  ;;  %v2048_v27 = vmul.f32 1.442695, %v2023_v42 }
 0x3eb   : > { %5239 = vpow2.f32 %v2042_v61  ;;  %v2022_v36 = vsub.f32 %v6634_v41, %v1999_v40  ;;  %v2005_v28 = vpop.xlane.xlu1 %2004 }
 0x3ec   : > { %5241 = vpow2.f32 %v2044_v50  ;;  %v2025_v4 = vsub.f32 %v6639_v21, %v2005_v28 }
 0x3ed   : > { %v6949_v10 = vpop.eup %5231  ;;  %v2046_v14 = vmul.f32 1.442695, %v2022_v36 }
 0x3ee   : > { %v2003_v0 = vpop.xlane.xlu0 %2002  ;;  %2066 = vadd.xlane.f32.xlu0 %v6949_v10  ;;  %2064 = vadd.xlane.f32.xlu1 %v6947_v58  ;;  %v6955_v41 = vpop.eup %5233  ;;  %v2052_v6 = vmul.f32 1.442695, %v2025_v4 }
 0x3ef   : > { %5243 = vpow2.f32 %v2046_v14  ;;  %v2024_v60 = vsub.f32 %v6648_v24, %v2003_v0  ;;  %v1479_v31 = vpop.xlane.xlu1 %1478 }
 0x3f0   : > { %5245 = vpow2.f32 %v2048_v27 }
 0x3f1   : > { %v6957_v44 = vpop.eup %5235  ;;  %v2050_v29 = vmul.f32 1.442695, %v2024_v60  ;;  %5247 = vrcp.f32 %v1479_v31 }
 0x3f2   : > { %v1477_v55 = vpop.xlane.xlu0 %1476  ;;  %2070 = vadd.xlane.f32.xlu0 %v6957_v44  ;;  %2068 = vadd.xlane.f32.xlu1 %v6955_v41  ;;  %v6961_v42 = vpop.eup %5237 }
 0x3f3   : > { %5249 = vpow2.f32 %v2050_v29  ;;  %v2009_v61 = vpop.xlane.xlu1 %2008 }
 0x3f4   : > { %5251 = vrcp.f32 %v1477_v55  ;;  %v2027_v21 = vsub.f32 %v6664_v12, %v2009_v61 }
 0x3f5   : > { %v6964_v24 = vpop.eup %5239  ;;  %5253 = vpow2.f32 %v2052_v6 }
 0x3f6   : > { %v2056_v50 = vmul.f32 1.442695, %v2027_v21  ;;  %v2007_v40 = vpop.xlane.xlu0 %2006  ;;  %2074 = vadd.xlane.f32.xlu0 %v6964_v24  ;;  %2072 = vadd.xlane.f32.xlu1 %v6961_v42  ;;  %v6969_v27 = vpop.eup %5241 }
 0x3f7   : > { %v2026_v36 = vsub.f32 %v6674_v56, %v2007_v40  ;;  %v1483_v28 = vpop.xlane.xlu1 %1482 }
 0x3f8   : > { %5255 = vpow2.f32 %v2056_v50 }
 0x3f9   : > { %v6971_v14 = vpop.eup %5243  ;;  %v2054_v0 = vmul.f32 1.442695, %v2026_v36  ;;  %5257 = vrcp.f32 %v1483_v28 }
 0x3fa   : > { %v1481_v12 = vpop.xlane.xlu0 %1480  ;;  %2078 = vadd.xlane.f32.xlu0 %v6971_v14  ;;  %2076 = vadd.xlane.f32.xlu1 %v6969_v27  ;;  %v6975_v4 = vpop.eup %5245 }
 0x3fb   : > { %5259 = vpow2.f32 %v2054_v0  ;;  %v2013_v60 = vpop.xlane.xlu1 %2012  ;;  %v5248_v31 = vpop.eup %5247 }
 0x3fc   : > { %5261 = vrcp.f32 %v1481_v12  ;;  %v2029_v56 = vsub.f32 %v6691_v39, %v2013_v60  ;;  %v1525_v36 = vmul.f32 %v5248_v31, %v6650_v53  ;;  %v7909_v60 = vld [vmem:[#allocation8_spill] sm:$0xff] }
 0x3fd   : > { %v6978_v29 = vpop.eup %5249 }
 0x3fe   : > { %v5252_v55 = vpop.eup %5251  ;;  %v2060_v6 = vmul.f32 1.442695, %v2029_v56  ;;  %v2011_v61 = vpop.xlane.xlu0 %2010  ;;  %2082 = vadd.xlane.f32.xlu0 %v6978_v29  ;;  %2080 = vadd.xlane.f32.xlu1 %v6975_v4 }
 0x3ff   : > { %v2028_v21 = vsub.f32 %v6696_v22, %v2011_v61  ;;  %v1487_v50 = vpop.xlane.xlu1 %1486  ;;  %v1524_v40 = vmul.f32 %v5252_v55, %v6657_v23  ;;  %v6985_v28 = vpop.eup %5253  ;;  %v7910_v23 = vld [vmem:[#allocation6_spill] sm:$0xff] }
 0x400   : > { %5263 = vpow2.f32 %v2060_v6  ;;  %v7911_v61 = vld [vmem:[#allocation14_spill] sm:$0xff] }
 0x401   : > { %v2058_v39 = vmul.f32 1.442695, %v2028_v21  ;;  %4361 = vmatprep.mubr.f32.mxu1 %v1524_v40  ;;  %5265 = vrcp.f32 %v1487_v50 }
 0x402   : > { %4362 = vmatmul.mubr.f32.vlgmr.msra.gmra.mrb[16].mxu1 %v1525_v36  ;;  %v1485_v0 = vpop.xlane.xlu0 %1484  ;;  %2084 = vadd.xlane.f32.xlu1 %v6985_v28  ;;  %v6988_v12 = vpop.eup %5255 }
 0x403   : > { %5267 = vpow2.f32 %v2058_v39  ;;  %4823 = vmatpush3.bf16.msra.mxu1 %v7909_v60  ;;  %v5258_v22 = vpop.eup %5257 }
 0x404   : > { %5269 = vrcp.f32 %v1485_v0  ;;  %4825 = vmatprep.subr.bf16.mxu1 %v7910_v23  ;;  %v1527_v21 = vmul.f32 %v5258_v22, %v6676_v5  ;;  %v7915_v5 = vld [vmem:[#allocation54_spill] sm:$0xff] }
 0x405   : > { %v6992_v56 = vpop.eup %5259 }
 0x406   : > { %v5262_v53 = vpop.eup %5261  ;;  %v2440_v31 = vpop.xlane.xlu0 %2439  ;;  %2086 = vadd.xlane.f32.xlu0 %v6992_v56  ;;  %2088 = vadd.xlane.f32.xlu1 %v6988_v12 }
 0x407   : > { %4827 = vmatpush3.bf16.msra.mxu1 %v7910_v23  ;;  %v2471_v55 = vsub.f32 %v6716_v1, %v2440_v31  ;;  %v1526_v6 = vmul.f32 %v5262_v53, %v6682_v54  ;;  %v7913_v1 = vld [vmem:[#allocation12_spill] sm:$0xff]  ;;  %v7916_v23 = vld [vmem:[#allocation73_spill] sm:$0xff]  ;;  %v7917_v31 = vld [vmem:[#allocation19_spill] sm:$0xff] }
 0x408   : > { %4829 = vmatprep.subr.bf16.mxu1 %v7911_v61 }
 0x409   : > { %v2487_v50 = vmul.f32 1.442695, %v2471_v55  ;;  %4364 = vmatprep.mubr.f32.mxu1 %v1526_v6  ;;  %v7918_v55 = vld [vmem:[#allocation72_spill] sm:$0xff] }
 0x40a   : > { %v7001_v40 = vpop.eup %5263  ;;  %4365 = vmatmul.mubr.f32.gmra.mrb[18].mxu1 %v1527_v21  ;;  %v1489_v36 = vpop.xlane.xlu0 %1488  ;;  %v7919_v21 = vld [vmem:[#allocation17_spill] sm:$0xff] }
 0x40b   : > { %7912 = vst [vmem:[#allocation32_spill] sm:$0xff] %v7001_v40  ;;  %5271 = vpow2.f32 %v2487_v50  ;;  %4831 = vmatpush3.bf16.msra.mxu1 %v7911_v61  ;;  %2092 = vadd.xlane.f32.xlu1 %v7001_v40  ;;  %v5266_v39 = vpop.eup %5265 }
 0x40c   : > { %5273 = vrcp.f32 %v1489_v36  ;;  %4833 = vmatprep.subr.bf16.mxu1 %v7913_v1  ;;  %v1529_v6 = vmul.f32 %v5266_v39, %v7918_v55  ;;  %v7922_v39 = vld [vmem:[#allocation25_spill] sm:$0xff] }
 0x40d   : > { %v7006_v54 = vpop.eup %5267 }
 0x40e   : > { %7914 = vst [vmem:[#allocation56_spill] sm:$0xff] %v7006_v54  ;;  %v5270_v0 = vpop.eup %5269  ;;  %v2444_v60 = vpop.xlane.xlu0 %2443  ;;  %2090 = vadd.xlane.f32.xlu0 %v7006_v54 }
 0x40f   : > { %4835 = vmatpush3.bf16.msra.mxu1 %v7913_v1  ;;  %v2473_v22 = vsub.f32 %v7915_v5, %v2444_v60  ;;  %v1528_v53 = vmul.f32 %v5270_v0, %v7916_v23  ;;  %v7921_v60 = vld [vmem:[#allocation74_spill] sm:$0xff] }
 0x410   : > { %4837 = vmatprep.subr.bf16.mxu1 %v7917_v31 }
 0x411   : > { %v2491_v61 = vmul.f32 1.442695, %v2473_v22  ;;  %4367 = vmatprep.mubr.f32.mxu1 %v1528_v53  ;;  %v7923_v22 = vld [vmem:[#allocation59_spill] sm:$0xff] }
 0x412   : > { %4368 = vmatmul.mubr.f32.gmra.mrb[20].mxu1 %v1529_v6  ;;  %v1493_v1 = vpop.xlane.xlu0 %1492  ;;  %v7924_v6 = vld [vmem:[#allocation23_spill] sm:$0xff] }
 0x413   : > { %5275 = vpow2.f32 %v2491_v61  ;;  %4839 = vmatpush3.bf16.msra.mxu1 %v7917_v31  ;;  %v7925_v61 = vld [vmem:[#allocation76_spill] sm:$0xff] }
 0x414   : > { %4841 = vmatprep.subr.bf16.mxu1 %v7919_v21  ;;  %5277 = vrcp.f32 %v1493_v1  ;;  %v7927_v1 = vld [vmem:[#allocation9_spill] sm:$0xff] }
 0x415   : > { %v7016_v50 = vpop.eup %5271 }
 0x416   : > { %7920 = vst [vmem:[#allocation42_spill] sm:$0xff] %v7016_v50  ;;  %v5274_v36 = vpop.eup %5273  ;;  %2519 = vadd.xlane.f32.xlu0 %v7016_v50 }
 0x417   : > { %4843 = vmatpush3.bf16.msra.mxu1 %v7919_v21  ;;  %v2442_v0 = vpop.xlane.xlu1 %2441  ;;  %v1530_v5 = vmul.f32 %v5274_v36, %v7921_v60 }
 0x418   : > { %4845 = vmatprep.subr.bf16.mxu1 %v7922_v39  ;;  %v2472_v23 = vsub.f32 %v7923_v22, %v2442_v0 }
 0x419   : > { %4370 = vmatprep.mubr.f32.mxu1 %v1530_v5 }
 0x41a   : > { %v2489_v53 = vmul.f32 1.442695, %v2472_v23 }
 0x41b   : > { %4847 = vmatpush3.bf16.msra.mxu1 %v7922_v39  ;;  %v2448_v31 = vpop.xlane.xlu0 %2447  ;;  %v1491_v55 = vpop.xlane.xlu1 %1490 }
 0x41c   : > { %5279 = vpow2.f32 %v2489_v53  ;;  %4849 = vmatprep.subr.bf16.mxu1 %v7924_v6  ;;  %v2475_v50 = vsub.f32 %v7925_v61, %v2448_v31 }
 0x41d   : > { %v7026_v21 = vpop.eup %5275  ;;  %5281 = vrcp.f32 %v1491_v55 }
 0x41e   : > { %7926 = vst [vmem:[#allocation61_spill] sm:$0xff] %v7026_v21  ;;  %v2495_v36 = vmul.f32 1.442695, %v2475_v50  ;;  %2523 = vadd.xlane.f32.xlu0 %v7026_v21  ;;  %v5278_v39 = vpop.eup %5277  ;;  %v7929_v21 = vld [vmem:[#allocation75_spill] sm:$0xff] }
 0x41f   : > { %4851 = vmatpush3.bf16.msra.mxu1 %v7924_v6  ;;  %v1497_v0 = vpop.xlane.xlu0 %1496  ;;  %v7928_v6 = vld [vmem:[#allocation48_spill] sm:$0xff]  ;;  %v1532_v40 = vmul.f32 %v5278_v39, %v7929_v21 }
 0x420   : > { %5283 = vpow2.f32 %v2495_v36  ;;  %4853 = vmatprep.subr.bf16.mxu1 %v7927_v1 }
 0x423   : > { %v2452_v60 = vpop.xlane.xlu0 %2451 }
 0x424   : > { %v2477_v5 = vsub.f32 %v6769_v13, %v2452_v60 }
 0x426   : > { %v7032_v22 = vpop.eup %5279  ;;  %v2499_v23 = vmul.f32 1.442695, %v2477_v5  ;;  %v2446_v53 = vpop.xlane.xlu1 %2445 }
 0x427   : > { %v5282_v31 = vpop.eup %5281  ;;  %v2474_v55 = vsub.f32 %v6777_v37, %v2446_v53  ;;  %v1501_v50 = vpop.xlane.xlu0 %1500  ;;  %2521 = vadd.xlane.f32.xlu1 %v7032_v22 }
 0x428   : > { %5285 = vpow2.f32 %v2499_v23  ;;  %v1531_v61 = vmul.f32 %v5282_v31, %v7928_v6 }
 0x429   : > { %v2493_v36 = vmul.f32 1.442695, %v2474_v55  ;;  %5287 = vrcp.f32 %v1497_v0 }
 0x42a   : > { %v7038_v54 = vpop.eup %5283  ;;  %4371 = vmatmul.mubr.f32.gmra.mrb[22].mxu1 %v1531_v61  ;;  %v1495_v13 = vpop.xlane.xlu1 %1494 }
 0x42b   : > { %5289 = vpow2.f32 %v2493_v36  ;;  %4373 = vmatprep.mubr.f32.mxu1 %v1532_v40  ;;  %v2456_v60 = vpop.xlane.xlu0 %2455  ;;  %2527 = vadd.xlane.f32.xlu0 %v7038_v54 }
 0x42c   : > { %5291 = vrcp.f32 %v1495_v13  ;;  %v2479_v37 = vsub.f32 %v6792_v49, %v2456_v60 }
 0x42e   : > { %v2503_v5 = vmul.f32 1.442695, %v2479_v37  ;;  %v2450_v23 = vpop.xlane.xlu1 %2449 }
 0x42f   : > { %v2476_v53 = vsub.f32 %v6799_v51, %v2450_v23  ;;  %v1505_v31 = vpop.xlane.xlu0 %1504 }
 0x430   : > { %5293 = vpow2.f32 %v2503_v5 }
 0x431   : > { %v2497_v21 = vmul.f32 1.442695, %v2476_v53  ;;  %5295 = vrcp.f32 %v1501_v50 }
 0x432   : > { %v7043_v39 = vpop.eup %5285  ;;  %v1499_v0 = vpop.xlane.xlu1 %1498 }
 0x433   : > { %5297 = vpow2.f32 %v2497_v21  ;;  %v2460_v55 = vpop.xlane.xlu0 %2459  ;;  %2531 = vadd.xlane.f32.xlu0 %v7043_v39  ;;  %v5288_v40 = vpop.eup %5287 }
 0x434   : > { %5299 = vrcp.f32 %v1499_v0  ;;  %v2481_v6 = vsub.f32 %v6814_v20, %v2460_v55  ;;  %v1534_v37 = vmul.f32 %v5288_v40, %v6760_v7 }
 0x435   : > { %v7047_v49 = vpop.eup %5289 }
 0x436   : > { %v5292_v61 = vpop.eup %5291  ;;  %v2507_v36 = vmul.f32 1.442695, %v2481_v6  ;;  %2525 = vadd.xlane.f32.xlu1 %v7047_v49  ;;  %v2454_v51 = vpop.xlane.xlu1 %2453 }
 0x437   : > { %v2478_v13 = vsub.f32 %v6821_v25, %v2454_v51  ;;  %v1181_v60 = vpop.xlane.xlu0 %1180  ;;  %v1533_v50 = vmul.f32 %v5292_v61, %v6786_v63 }
 0x438   : > { %5301 = vpow2.f32 %v2507_v36 }
 0x439   : > { %v2501_v5 = vmul.f32 1.442695, %v2478_v13  ;;  %4374 = vmatmul.mubr.f32.gmra.mrb[24].mxu1 %v1533_v50  ;;  %5303 = vrcp.f32 %v1505_v31 }
 0x43a   : > { %v7053_v23 = vpop.eup %5293  ;;  %4376 = vmatprep.mubr.f32.mxu1 %v1534_v37  ;;  %v1503_v20 = vpop.xlane.xlu1 %1502 }
 0x43b   : > { %5305 = vpow2.f32 %v2501_v5  ;;  %v2464_v53 = vpop.xlane.xlu0 %2463  ;;  %2535 = vadd.xlane.f32.xlu0 %v7053_v23  ;;  %v5296_v21 = vpop.eup %5295 }
 0x43c   : > { %5307 = vrcp.f32 %v1503_v20  ;;  %v2483_v25 = vsub.f32 %v6838_v15, %v2464_v53  ;;  %v1536_v61 = vmul.f32 %v5296_v21, %v6779_v19  ;;  %v7930_v53 = vld [vmem:[#allocation64_spill] sm:$0xff] }
 0x43d   : > { %v7057_v0 = vpop.eup %5297 }
 0x43e   : > { %v5300_v63 = vpop.eup %5299  ;;  %v2511_v55 = vmul.f32 1.442695, %v2483_v25  ;;  %2529 = vadd.xlane.f32.xlu1 %v7057_v0  ;;  %v2458_v7 = vpop.xlane.xlu1 %2457 }
 0x43f   : > { %v2480_v40 = vsub.f32 %v6845_v34, %v2458_v7  ;;  %v1185_v31 = vpop.xlane.xlu0 %1184  ;;  %v1535_v6 = vmul.f32 %v5300_v63, %v6808_v30 }
 0x440   : > { %5309 = vpow2.f32 %v2511_v55 }
 0x441   : > { %v2505_v36 = vmul.f32 1.442695, %v2480_v40  ;;  %4377 = vmatmul.mubr.f32.gmra.mrb[26].mxu1 %v1535_v6  ;;  %5311 = vrcp.f32 %v1181_v60 }
 0x442   : > { %v7063_v51 = vpop.eup %5301  ;;  %4379 = vmatprep.mubr.f32.mxu1 %v1536_v61  ;;  %v1507_v15 = vpop.xlane.xlu1 %1506 }
 0x443   : > { %5313 = vpow2.f32 %v2505_v36  ;;  %v2468_v13 = vpop.xlane.xlu0 %2467  ;;  %2539 = vadd.xlane.f32.xlu0 %v7063_v51  ;;  %v5304_v50 = vpop.eup %5303 }
 0x444   : > { %5315 = vrcp.f32 %v1507_v15  ;;  %v2485_v34 = vsub.f32 %v6861_v16, %v2468_v13  ;;  %v1538_v21 = vmul.f32 %v5304_v50, %v7930_v53 }
 0x445   : > { %v7067_v37 = vpop.eup %5305 }
 0x446   : > { %v5308_v30 = vpop.eup %5307  ;;  %v2515_v5 = vmul.f32 1.442695, %v2485_v34  ;;  %2533 = vadd.xlane.f32.xlu1 %v7067_v37  ;;  %v2462_v19 = vpop.xlane.xlu1 %2461 }
 0x447   : > { %v2482_v20 = vsub.f32 %v6866_v47, %v2462_v19  ;;  %v1537_v60 = vmul.f32 %v5308_v30, %v6832_v48  ;;  %v1189_v47 = vpop.xlane.xlu0 %1188 }
 0x448   : > { %5317 = vpow2.f32 %v2515_v5 }
 0x449   : > { %v2509_v25 = vmul.f32 1.442695, %v2482_v20  ;;  %4380 = vmatmul.mubr.f32.gmra.mrb[28].mxu1 %v1537_v60  ;;  %5319 = vrcp.f32 %v1185_v31 }
 0x44a   : > { %v7073_v63 = vpop.eup %5309  ;;  %4382 = vmatprep.mubr.f32.mxu1 %v1538_v21  ;;  %v1183_v16 = vpop.xlane.xlu1 %1182  ;;  %v7931_v21 = vld [vmem:[#allocation7_spill] sm:$0xff] }
 0x44b   : > { %5321 = vpow2.f32 %v2509_v25  ;;  %2543 = vadd.xlane.f32.xlu0 %v7073_v63  ;;  %v5312_v55 = vpop.eup %5311  ;;  %v1193_v50 = vpop.xlane.xlu0 %1192 }
 0x44c   : > { %5323 = vrcp.f32 %v1183_v16  ;;  %v1228_v31 = vmul.f32 %v5312_v55, %v6823_v45  ;;  %v7932_v55 = vld [vmem:[#allocation15_spill] sm:$0xff] }
 0x44d   : > { %v7076_v7 = vpop.eup %5313  ;;  %5325 = vrcp.f32 %v1189_v47 }
 0x44e   : > { %v5316_v40 = vpop.eup %5315  ;;  %2537 = vadd.xlane.f32.xlu1 %v7076_v7  ;;  %v2466_v48 = vpop.xlane.xlu1 %2465 }
 0x44f   : > { %v2484_v6 = vsub.f32 %v6885_v9, %v2466_v48  ;;  %v1539_v61 = vmul.f32 %v5316_v40, %v6855_v2  ;;  %v1197_v20 = vpop.xlane.xlu0 %1196  ;;  %v7933_v48 = vld [vmem:[#allocation13_spill] sm:$0xff] }
 0x451   : > { %v2513_v36 = vmul.f32 1.442695, %v2484_v6  ;;  %4383 = vmatmul.mubr.f32.gmra.mrb[30].mxu1 %v1539_v61 }
 0x452   : > { %v7082_v15 = vpop.eup %5317  ;;  %4417 = vmatprep.mubr.f32.mxu1 %v1228_v31  ;;  %v1187_v13 = vpop.xlane.xlu1 %1186 }
 0x453   : > { %5327 = vpow2.f32 %v2513_v36  ;;  %2547 = vadd.xlane.f32.xlu0 %v7082_v15  ;;  %v5320_v34 = vpop.eup %5319  ;;  %v7934_v36 = vld [vmem:[#allocation20_spill] sm:$0xff] }
 0x454   : > { %5329 = vrcp.f32 %v1187_v13  ;;  %v1230_v19 = vmul.f32 %v5320_v34, %v6847_v43 }
 0x455   : > { %v7085_v30 = vpop.eup %5321  ;;  %5331 = vrcp.f32 %v1193_v50 }
 0x456   : > { %v5324_v9 = vpop.eup %5323  ;;  %2541 = vadd.xlane.f32.xlu1 %v7085_v30  ;;  %v2470_v2 = vpop.xlane.xlu1 %2469 }
 0x457   : > { %v2486_v45 = vsub.f32 %v6903_v18, %v2470_v2  ;;  %v1229_v5 = vmul.f32 %v5324_v9, %v6874_v52  ;;  %v5326_v25 = vpop.eup %5325  ;;  %v1201_v52 = vpop.xlane.xlu0 %1200 }
 0x458   : > { %v1232_v47 = vmul.f32 %v5326_v25, %v6868_v11 }
 0x459   : > { %v2517_v60 = vmul.f32 1.442695, %v2486_v45  ;;  %4418 = vmatmul.mubr.f32.vlgmr.msra.gmra.mrb[16].mxu1 %v1229_v5  ;;  %v7935_v45 = vld [vmem:[#allocation18_spill] sm:$0xff] }
 0x45a   : > { %4855 = vmatpush3.bf16.msra.mxu1 %v7927_v1  ;;  %4420 = vmatprep.mubr.f32.mxu1 %v1230_v19  ;;  %v1191_v53 = vpop.xlane.xlu1 %1190 }
 0x45b   : > { %5333 = vpow2.f32 %v2517_v60  ;;  %4857 = vmatprep.subr.bf16.mxu1 %v7931_v21 }
 0x45c   : > { %5335 = vrcp.f32 %v1191_v53 }
 0x45d   : > { %v7093_v16 = vpop.eup %5327  ;;  %5337 = vrcp.f32 %v1197_v20 }
 0x45e   : > { %v5330_v18 = vpop.eup %5329  ;;  %4859 = vmatpush3.bf16.msra.mxu1 %v7931_v21  ;;  %2545 = vadd.xlane.f32.xlu1 %v7093_v16  ;;  %v1195_v43 = vpop.xlane.xlu1 %1194 }
 0x45f   : > { %4861 = vmatprep.subr.bf16.mxu1 %v7932_v55  ;;  %5339 = vrcp.f32 %v1195_v43  ;;  %v1231_v1 = vmul.f32 %v5330_v18, %v6893_v46  ;;  %v5332_v6 = vpop.eup %5331  ;;  %v7938_v18 = vld [vmem:[#allocation24_spill] sm:$0xff] }
 0x460   : > { %5341 = vrcp.f32 %v1201_v52  ;;  %v1234_v34 = vmul.f32 %v5332_v6, %v6877_v59 }
 0x461   : > { %4421 = vmatmul.mubr.f32.gmra.mrb[18].mxu1 %v1231_v1 }
 0x462   : > { %4863 = vmatpush3.bf16.msra.mxu1 %v7932_v55  ;;  %4423 = vmatprep.mubr.f32.mxu1 %v1232_v47  ;;  %v1199_v40 = vpop.xlane.xlu1 %1198 }
 0x463   : > { %4865 = vmatprep.subr.bf16.mxu1 %v7933_v48  ;;  %5343 = vrcp.f32 %v1199_v40 }
 0x465   : > { %v7102_v61 = vpop.eup %5333 }
 0x466   : > { %v5336_v31 = vpop.eup %5335  ;;  %4867 = vmatpush3.bf16.msra.mxu1 %v7933_v48  ;;  %2549 = vadd.xlane.f32.xlu1 %v7102_v61  ;;  %v1203_v46 = vpop.xlane.xlu1 %1202 }
 0x467   : > { %4869 = vmatprep.subr.bf16.mxu1 %v7934_v36  ;;  %5345 = vrcp.f32 %v1203_v46  ;;  %v1233_v11 = vmul.f32 %v5336_v31, %v6906_v26  ;;  %v5338_v13 = vpop.eup %5337  ;;  %v7936_v26 = vld [vmem:[#allocation26_spill] sm:$0xff] }
 0x468   : > { %v1205_v50 = vpop.xlane.xlu0 %1204  ;;  %v1236_v19 = vmul.f32 %v5338_v13, %v6887_v33 }
 0x469   : > { %v5340_v9 = vpop.eup %5339  ;;  %5347 = vrcp.f32 %v1205_v50  ;;  %4424 = vmatmul.mubr.f32.gmra.mrb[20].mxu1 %v1233_v11  ;;  %v5156_v11 = vld [vmem:[%s7667_s7 + $0x8] sm:$0xff]  }
 0x46a   : > { %4871 = vmatpush3.bf16.msra.mxu1 %v7934_v36  ;;  %4426 = vmatprep.mubr.f32.mxu1 %v1234_v34  ;;  %v1235_v2 = vmul.f32 %v5340_v9, %v6910_v57  ;;  %v5342_v5 = vpop.eup %5341  ;;  %v7937_v57 = vld [vmem:[#allocation52_spill] sm:$0xff]  ;;  %v5155_v36 = vld [vmem:[%s7667_s7] sm:$0xff]  }
 0x46b   : > { %4873 = vmatprep.subr.bf16.mxu1 %v7935_v45  ;;  %v1238_v53 = vmul.f32 %v5342_v5, %v6895_v3  ;;  %v7939_v3 = vld [vmem:[#allocation10_spill] sm:$0xff]  ;;  %4553 = vmatprep.subr.bf16.mxu0 %v5155_v36 }
 0x46c   : > { %v1209_v60 = vpop.xlane.xlu0 %1208  ;;  %4554 = vmatpush3.bf16.msra.mxu0 %v5155_v36 }
 0x46d   : > { %v5344_v20 = vpop.eup %5343  ;;  %4427 = vmatmul.mubr.f32.gmra.mrb[22].mxu1 %v1235_v2  ;;  %5349 = vrcp.f32 %v1209_v60  ;;  %4555 = vmatprep.subr.bf16.mxu0 %v5156_v11  ;;  %v5157_v2 = vld [vmem:[%s7667_s7 + $0x10] sm:$0xff]  }
 0x46e   : > { %4875 = vmatpush3.bf16.msra.mxu1 %v7935_v45  ;;  %4429 = vmatprep.mubr.f32.mxu1 %v1236_v19  ;;  %v1237_v59 = vmul.f32 %v5344_v20, %v6914_v32 }
 0x46f   : > { %4877 = vmatprep.subr.bf16.mxu1 %v7936_v26 }
 0x470   : > { %4556 = vmatpush3.bf16.msra.mxu0 %v5156_v11 }
 0x471   : > { %v5346_v21 = vpop.eup %5345  ;;  %4430 = vmatmul.mubr.f32.gmra.mrb[24].mxu1 %v1237_v59  ;;  %4557 = vmatprep.subr.bf16.mxu0 %v5157_v2 }
 0x472   : > { %4879 = vmatpush3.bf16.msra.mxu1 %v7936_v26  ;;  %4432 = vmatprep.mubr.f32.mxu1 %v1238_v53  ;;  %v1239_v25 = vmul.f32 %v5346_v21, %v7937_v57  ;;  %v7940_v57 = vld [vmem:[#allocation11_spill] sm:$0xff] }
 0x473   : > { %v5348_v33 = vpop.eup %5347  ;;  %4881 = vmatprep.subr.bf16.mxu1 %v7938_v18  ;;  %v1207_v43 = vpop.xlane.xlu1 %1206 }
 0x474   : > { %5351 = vrcp.f32 %v1207_v43  ;;  %v1240_v32 = vmul.f32 %v5348_v33, %v6922_v8  ;;  %4558 = vmatpush3.bf16.msra.mxu0 %v5157_v2  ;;  %v7941_v43 = vld [vmem:[#allocation16_spill] sm:$0xff] }
 0x475   : > { %4433 = vmatmul.mubr.f32.gmra.mrb[26].mxu1 %v1239_v25  ;;  %v7948_v2 = vld [vmem:[#allocation32_spill] sm:$0xff] }
 0x476   : > { %4883 = vmatpush3.bf16.msra.mxu1 %v7938_v18  ;;  %4435 = vmatprep.mubr.f32.mxu1 %v1240_v32 }
 0x477   : > { %4885 = vmatprep.subr.bf16.mxu1 %v7939_v3  ;;  %v2063_v52 = vpop.xlane.xlu0 %2062  ;;  %v1211_v55 = vpop.xlane.xlu1 %1210 }
 0x478   : > { %5353 = vrcp.f32 %v2063_v52  ;;  %v5350_v40 = vpop.eup %5349 }
 0x479   : > { %5355 = vrcp.f32 %v1211_v55  ;;  %v1242_v46 = vmul.f32 %v5350_v40, %v6927_v38 }
 0x47b   : > { %v2067_v1 = vpop.xlane.xlu0 %2066  ;;  %v2065_v47 = vpop.xlane.xlu1 %2064 }
 0x47c   : > { %5357 = vrcp.f32 %v2067_v1  ;;  %v7942_v1 = vld [vmem:[#allocation21_spill] sm:$0xff] }
 0x47d   : > { %5359 = vrcp.f32 %v2065_v47 }
 0x47e   : > { %v5352_v48 = vpop.eup %5351 }
 0x47f   : > { %v2071_v6 = vpop.xlane.xlu0 %2070  ;;  %v2069_v31 = vpop.xlane.xlu1 %2068  ;;  %v1241_v8 = vmul.f32 %v5352_v48, %v6934_v62  ;;  %v7943_v48 = vld [vmem:[#allocation22_spill] sm:$0xff] }
 0x480   : > { %5361 = vrcp.f32 %v2071_v6 }
 0x481   : > { %5363 = vrcp.f32 %v2069_v31  ;;  %4436 = vmatmul.mubr.f32.gmra.mrb[28].mxu1 %v1241_v8 }
 0x482   : > { %v5354_v13 = vpop.eup %5353  ;;  %4438 = vmatprep.mubr.f32.mxu1 %v1242_v46  ;;  %v7944_v46 = vld [vmem:[#allocation27_spill] sm:$0xff] }
 0x483   : > { %v5356_v50 = vpop.eup %5355  ;;  %v2075_v34 = vpop.xlane.xlu0 %2074  ;;  %v2110_v62 = vmul.f32 %v5354_v13, %v6941_v35 }
 0x484   : > { %v2073_v9 = vpop.xlane.xlu1 %2072  ;;  %5365 = vrcp.f32 %v2075_v34  ;;  %v1243_v38 = vmul.f32 %v5356_v50, %v6939_v17 }
 0x485   : > { %5367 = vrcp.f32 %v2073_v9 }
 0x486   : > { %v5358_v45 = vpop.eup %5357  ;;  %4439 = vmatmul.mubr.f32.gmra.mrb[30].mxu1 %v1243_v38 }
 0x487   : > { %v5360_v5 = vpop.eup %5359  ;;  %4473 = vmatprep.mubr.f32.mxu1 %v2110_v62  ;;  %v2079_v19 = vpop.xlane.xlu0 %2078  ;;  %v2112_v59 = vmul.f32 %v5358_v45, %v6949_v10  ;;  %v7947_v62 = vld [vmem:[#allocation56_spill] sm:$0xff] }
 0x488   : > { %v2077_v20 = vpop.xlane.xlu1 %2076  ;;  %5369 = vrcp.f32 %v2079_v19  ;;  %v2111_v35 = vmul.f32 %v5360_v5, %v6947_v58 }
 0x489   : > { %5371 = vrcp.f32 %v2077_v20 }
 0x48a   : > { %v5362_v17 = vpop.eup %5361  ;;  %4474 = vmatmul.mubr.f32.vlgmr.msra.gmra.mrb[16].mxu1 %v2111_v35 }
 0x48b   : > { %v5364_v26 = vpop.eup %5363  ;;  %4887 = vmatpush3.bf16.msra.mxu1 %v7939_v3  ;;  %4476 = vmatprep.mubr.f32.mxu1 %v2112_v59  ;;  %v2083_v60 = vpop.xlane.xlu0 %2082  ;;  %v2114_v21 = vmul.f32 %v5362_v17, %v6957_v44 }
 0x48c   : > { %v2081_v53 = vpop.xlane.xlu1 %2080  ;;  %4889 = vmatprep.subr.bf16.mxu1 %v7940_v57  ;;  %5373 = vrcp.f32 %v2083_v60  ;;  %v2113_v10 = vmul.f32 %v5364_v26, %v6955_v41  ;;  %v7950_v60 = vld [vmem:[#allocation61_spill] sm:$0xff] }
 0x48d   : > { %5375 = vrcp.f32 %v2081_v53 }
 0x48e   : > { %v5366_v58 = vpop.eup %5365  ;;  %4477 = vmatmul.mubr.f32.gmra.mrb[18].mxu1 %v2113_v10 }
 0x48f   : > { %v5368_v25 = vpop.eup %5367  ;;  %4891 = vmatpush3.bf16.msra.mxu1 %v7940_v57  ;;  %4479 = vmatprep.mubr.f32.mxu1 %v2114_v21  ;;  %v2116_v18 = vmul.f32 %v5366_v58, %v6964_v24 }
 0x490   : > { %v2085_v33 = vpop.xlane.xlu1 %2084  ;;  %4893 = vmatprep.subr.bf16.mxu1 %v7941_v43  ;;  %v2115_v44 = vmul.f32 %v5368_v25, %v6961_v42 }
 0x491   : > { %5377 = vrcp.f32 %v2085_v33 }
 0x492   : > { %v5370_v32 = vpop.eup %5369  ;;  %4480 = vmatmul.mubr.f32.gmra.mrb[20].mxu1 %v2115_v44 }
 0x493   : > { %v5372_v3 = vpop.eup %5371  ;;  %4895 = vmatpush3.bf16.msra.mxu1 %v7941_v43  ;;  %4482 = vmatprep.mubr.f32.mxu1 %v2116_v18  ;;  %v2087_v41 = vpop.xlane.xlu0 %2086  ;;  %v2118_v55 = vmul.f32 %v5370_v32, %v6971_v14 }
 0x494   : > { %v2089_v52 = vpop.xlane.xlu1 %2088  ;;  %4897 = vmatprep.subr.bf16.mxu1 %v7942_v1  ;;  %5379 = vrcp.f32 %v2087_v41  ;;  %v2117_v24 = vmul.f32 %v5372_v3, %v6969_v27 }
 0x495   : > { %5381 = vrcp.f32 %v2089_v52 }
 0x496   : > { %v5374_v47 = vpop.eup %5373  ;;  %4483 = vmatmul.mubr.f32.gmra.mrb[22].mxu1 %v2117_v24 }
 0x497   : > { %v5376_v40 = vpop.eup %5375  ;;  %4899 = vmatpush3.bf16.msra.mxu1 %v7942_v1  ;;  %4485 = vmatprep.mubr.f32.mxu1 %v2118_v55  ;;  %v2120_v42 = vmul.f32 %v5374_v47, %v6978_v29 }
 0x498   : > { %4901 = vmatprep.subr.bf16.mxu1 %v7943_v48  ;;  %v2093_v6 = vpop.xlane.xlu1 %2092  ;;  %v2119_v31 = vmul.f32 %v5376_v40, %v6975_v4  ;;  %v7945_v4 = vld [vmem:[#allocation28_spill] sm:$0xff] }
 0x499   : > { %5383 = vrcp.f32 %v2093_v6 }
 0x49a   : > { %4486 = vmatmul.mubr.f32.gmra.mrb[24].mxu1 %v2119_v31 }
 0x49b   : > { %v5378_v14 = vpop.eup %5377  ;;  %4903 = vmatpush3.bf16.msra.mxu1 %v7943_v48  ;;  %4488 = vmatprep.mubr.f32.mxu1 %v2120_v42  ;;  %v2091_v27 = vpop.xlane.xlu0 %2090 }
 0x49c   : > { %v2121_v8 = vmul.f32 %v5378_v14, %v6985_v28  ;;  %4905 = vmatprep.subr.bf16.mxu1 %v7944_v46  ;;  %5385 = vrcp.f32 %v2091_v27  ;;  %v7946_v28 = vld [vmem:[#allocation29_spill] sm:$0xff] }
 0x49e   : > { %v5380_v36 = vpop.eup %5379  ;;  %4489 = vmatmul.mubr.f32.gmra.mrb[26].mxu1 %v2121_v8 }
 0x49f   : > { %v5382_v29 = vpop.eup %5381  ;;  %4907 = vmatpush3.bf16.msra.mxu1 %v7944_v46  ;;  %v2122_v11 = vmul.f32 %v5380_v36, %v6992_v56 }
 0x4a0   : > { %4909 = vmatprep.subr.bf16.mxu1 %v7945_v4  ;;  %v2123_v13 = vmul.f32 %v5382_v29, %v6988_v12  ;;  %v7949_v12 = vld [vmem:[#allocation42_spill] sm:$0xff] }
 0x4a1   : > { %4491 = vmatprep.mubr.f32.mxu1 %v2122_v11 }
 0x4a2   : > { %4492 = vmatmul.mubr.f32.gmra.mrb[28].mxu1 %v2123_v13  ;;  %v2827_v13 = vld [vmem:[%s7669_s9 + $0x8] sm:$0xff] }
 0x4a3   : > { %4911 = vmatpush3.bf16.msra.mxu1 %v7945_v4  ;;  %v2520_v50 = vpop.xlane.xlu0 %2519  ;;  %v5384_v34 = vpop.eup %5383  ;;  %v2826_v4 = vld [vmem:[%s7669_s9] sm:$0xff] }
 0x4a4   : > { %4913 = vmatprep.subr.bf16.mxu1 %v7946_v28  ;;  %5387 = vrcp.f32 %v2520_v50  ;;  %v2125_v56 = vmul.f32 %v5384_v34, %v7948_v2  ;;  %v4916_v50 = vpack.c.bf16 %v2827_v13, %v2826_v4 }
 0x4a6   : > { %v5386_v9 = vpop.eup %5385 }
 0x4a7   : > { %4915 = vmatpush3.bf16.msra.mxu1 %v7946_v28  ;;  %v2124_v38 = vmul.f32 %v5386_v9, %v7947_v62  ;;  %v7206_v28 = vld [vmem:[%s7665_s5] ss:$0 sm:$0xff] }
 0x4a9   : > { %4494 = vmatprep.mubr.f32.mxu1 %v2124_v38 }
 0x4aa   : > { %4495 = vmatmul.mubr.f32.gmra.mrb[30].mxu1 %v2125_v56 }
 0x4ab   : > { %v2524_v19 = vpop.xlane.xlu0 %2523 }
 0x4ac   : > { %5389 = vrcp.f32 %v2524_v19  ;;  %v2829_v19 = vld [vmem:[%s7669_s9 + $0x18] sm:$0xff] }
 0x4ae   : > { %v5388_v45 = vpop.eup %5387 }
 0x4af   : > { %v2567_v5 = vmul.f32 %v5388_v45, %v7949_v12 }
 0x4b1   : > { %4529 = vmatprep.mubr.f32.mxu1 %v2567_v5  ;;  %v2828_v5 = vld [vmem:[%s7669_s9 + $0x10] sm:$0xff] }
 0x4b4   : > { %v2522_v20 = vpop.xlane.xlu1 %2521 }
 0x4b5   : > { %5391 = vrcp.f32 %v2522_v20 }
 0x4b6   : > { %v5390_v59 = vpop.eup %5389 }
 0x4b7   : > { %v2569_v53 = vmul.f32 %v5390_v59, %v7950_v60 }
 0x4b8   : > { %v2528_v17 = vpop.xlane.xlu0 %2527 }
 0x4b9   : > { %5393 = vrcp.f32 %v2528_v17  ;;  %v2830_v17 = vld [vmem:[%s7669_s9 + $0x20] sm:$0xff] }
 0x4bf   : > { %v5392_v35 = vpop.eup %5391 }
 0x4c0   : > { %v2568_v26 = vmul.f32 %v5392_v35, %v7032_v22  ;;  %v2532_v57 = vpop.xlane.xlu0 %2531  ;;  %v4920_v35 = vpack.c.bf16 %v2829_v19, %v2828_v5  ;;  %v2820_v5 = vld [vmem:[%s7668_s8 + $0x50] sm:$0xff]  ;;  %v2821_v19 = vld [vmem:[%s7668_s8 + $0x58] sm:$0xff] }
 0x4c2   : > { %4530 = vmatmul.mubr.f32.vlgmr.msra.gmra.mrb[16].mxu1 %v2568_v26  ;;  %v2831_v26 = vld [vmem:[%s7669_s9 + $0x28] sm:$0xff] }
 0x4c3   : > { %4532 = vmatprep.mubr.f32.mxu1 %v2569_v53  ;;  %v2526_v21 = vpop.xlane.xlu1 %2525  ;;  %v5394_v58 = vpop.eup %5393  ;;  %v4924_v53 = vpack.c.bf16 %v2831_v26, %v2830_v17  ;;  %v2825_v17 = vld [vmem:[%s7668_s8 + $0x78] sm:$0xff]  ;;  %v7952_v26 = vmov 0  }
 0x4c4   : > { %5395 = vrcp.f32 %v2526_v21  ;;  %v2571_v43 = vmul.f32 %v5394_v58, %v7038_v54  ;;  %v2833_v58 = vld [vmem:[%s7669_s9 + $0x38] sm:$0xff] }
 0x4c5   : > { %5397 = vrcp.f32 %v2532_v57 }
 0x4c8   : > { %v2536_v18 = vpop.xlane.xlu0 %2535 }
 0x4cb   : > { %v2530_v10 = vpop.xlane.xlu1 %2529 }
 0x4cc   : > { %5399 = vrcp.f32 %v2530_v10  ;;  %v2832_v10 = vld [vmem:[%s7669_s9 + $0x30] sm:$0xff] }
 0x4cd   : > { %5401 = vrcp.f32 %v2536_v18  ;;  %v4928_v18 = vpack.c.bf16 %v2833_v58, %v2832_v10 }
 0x4ce   : > { %v5396_v25 = vpop.eup %5395 }
 0x4cf   : > { %v2570_v33 = vmul.f32 %v5396_v25, %v7047_v49  ;;  %v5398_v44 = vpop.eup %5397 }
 0x4d0   : > { %v2540_v41 = vpop.xlane.xlu0 %2539  ;;  %v2573_v52 = vmul.f32 %v5398_v44, %v7043_v39 }
 0x4d1   : > { %4533 = vmatmul.mubr.f32.gmra.mrb[18].mxu1 %v2570_v33 }
 0x4d2   : > { %4535 = vmatprep.mubr.f32.mxu1 %v2571_v43  ;;  %v2834_v43 = vld [vmem:[%s7669_s9 + $0x40] sm:$0xff] }
 0x4d3   : > { %v2534_v22 = vpop.xlane.xlu1 %2533 }
 0x4d4   : > { %5403 = vrcp.f32 %v2534_v22  ;;  %v2835_v22 = vld [vmem:[%s7669_s9 + $0x48] sm:$0xff] }
 0x4d5   : > { %5405 = vrcp.f32 %v2540_v41 }
 0x4d6   : > { %v5400_v32 = vpop.eup %5399 }
 0x4d7   : > { %v2572_v3 = vmul.f32 %v5400_v32, %v7057_v0  ;;  %v5402_v49 = vpop.eup %5401  ;;  %v4932_v32 = vpack.c.bf16 %v2835_v22, %v2834_v43 }
 0x4d8   : > { %v2544_v24 = vpop.xlane.xlu0 %2543  ;;  %v2575_v47 = vmul.f32 %v5402_v49, %v7053_v23 }
 0x4d9   : > { %4536 = vmatmul.mubr.f32.gmra.mrb[20].mxu1 %v2572_v3 }
 0x4da   : > { %4538 = vmatprep.mubr.f32.mxu1 %v2573_v52  ;;  %v2836_v52 = vld [vmem:[%s7669_s9 + $0x50] sm:$0xff] }
 0x4db   : > { %v2538_v55 = vpop.xlane.xlu1 %2537 }
 0x4dc   : > { %5407 = vrcp.f32 %v2538_v55  ;;  %v2837_v55 = vld [vmem:[%s7669_s9 + $0x58] sm:$0xff] }
 0x4dd   : > { %5409 = vrcp.f32 %v2544_v24  ;;  %v2838_v24 = vld [vmem:[%s7669_s9 + $0x60] sm:$0xff] }
 0x4de   : > { %v5404_v1 = vpop.eup %5403 }
 0x4df   : > { %v2574_v54 = vmul.f32 %v5404_v1, %v7067_v37  ;;  %v5406_v0 = vpop.eup %5405 }
 0x4e0   : > { %v2548_v48 = vpop.xlane.xlu0 %2547  ;;  %v2577_v6 = vmul.f32 %v5406_v0, %v7063_v51 }
 0x4e1   : > { %4539 = vmatmul.mubr.f32.gmra.mrb[22].mxu1 %v2574_v54  ;;  %v4936_v54 = vpack.c.bf16 %v2837_v55, %v2836_v52 }
 0x4e2   : > { %4541 = vmatprep.mubr.f32.mxu1 %v2575_v47  ;;  %v2839_v47 = vld [vmem:[%s7669_s9 + $0x68] sm:$0xff] }
 0x4e3   : > { %v2542_v40 = vpop.xlane.xlu1 %2541  ;;  %v4940_v0 = vpack.c.bf16 %v2839_v47, %v2838_v24 }
 0x4e4   : > { %5411 = vrcp.f32 %v2542_v40 }
 0x4e5   : > { %5413 = vrcp.f32 %v2548_v48  ;;  %v2840_v48 = vld [vmem:[%s7669_s9 + $0x70] sm:$0xff] }
 0x4e6   : > { %v5408_v42 = vpop.eup %5407 }
 0x4e7   : > { %v2576_v39 = vmul.f32 %v5408_v42, %v7076_v7  ;;  %v5410_v37 = vpop.eup %5409 }
 0x4e8   : > { %v2579_v27 = vmul.f32 %v5410_v37, %v7073_v63  ;;  %v5158_v63 = vld [vmem:[%s7667_s7 + $0x18] sm:$0xff]  }
 0x4e9   : > { %4542 = vmatmul.mubr.f32.gmra.mrb[24].mxu1 %v2576_v39  ;;  %4559 = vmatprep.subr.bf16.mxu0 %v5158_v63 }
 0x4ea   : > { %4544 = vmatprep.mubr.f32.mxu1 %v2577_v6  ;;  %4560 = vmatpush3.bf16.msra.mxu0 %v5158_v63  ;;  %v2841_v6 = vld [vmem:[%s7669_s9 + $0x78] sm:$0xff] }
 0x4eb   : > { %v2546_v31 = vpop.xlane.xlu1 %2545 }
 0x4ec   : > { %5415 = vrcp.f32 %v2546_v31 }
 0x4ee   : > { %v5412_v14 = vpop.eup %5411 }
 0x4ef   : > { %v2578_v23 = vmul.f32 %v5412_v14, %v7085_v30  ;;  %v5414_v46 = vpop.eup %5413  ;;  %v5159_v30 = vld [vmem:[%s7667_s7 + $0x20] sm:$0xff]   ;;  %v4944_v14 = vpack.c.bf16 %v2841_v6, %v2840_v48 }
 0x4f0   : > { %v2581_v51 = vmul.f32 %v5414_v46, %v7082_v15  ;;  %4561 = vmatprep.subr.bf16.mxu0 %v5159_v30  ;;  %v5160_v15 = vld [vmem:[%s7667_s7 + $0x28] sm:$0xff]  }
 0x4f1   : > { %4545 = vmatmul.mubr.f32.gmra.mrb[26].mxu1 %v2578_v23  ;;  %4562 = vmatpush3.bf16.msra.mxu0 %v5159_v30 }
 0x4f2   : > { %4547 = vmatprep.mubr.f32.mxu1 %v2579_v27  ;;  %4563 = vmatprep.subr.bf16.mxu0 %v5160_v15 }
 0x4f3   : > { %v2550_v8 = vpop.xlane.xlu1 %2549 }
 0x4f4   : > { %5417 = vrcp.f32 %v2550_v8 }
 0x4f5   : > { %4564 = vmatpush3.bf16.msra.mxu0 %v5160_v15 }
 0x4f6   : > { %v5416_v7 = vpop.eup %5415 }
 0x4f7   : > { %v2580_v36 = vmul.f32 %v5416_v7, %v7093_v16  ;;  %v5161_v16 = vld [vmem:[%s7667_s7 + $0x30] sm:$0xff]  }
 0x4f8   : > { %4565 = vmatprep.subr.bf16.mxu0 %v5161_v16 }
 0x4f9   : > { %4548 = vmatmul.mubr.f32.gmra.mrb[28].mxu1 %v2580_v36  ;;  %4566 = vmatpush3.bf16.msra.mxu0 %v5161_v16  ;;  %v7951_v36 = vmov 0.0|0.0  }
 0x4fa   : > { %4550 = vmatprep.mubr.f32.mxu1 %v2581_v51 }
 0x4fe   : > { %v5418_v29 = vpop.eup %5417 }
 0x4ff   : > { %v2582_v11 = vmul.f32 %v5418_v29, %v7102_v61  ;;  %v5162_v61 = vld [vmem:[%s7667_s7 + $0x38] sm:$0xff]  }
 0x500   : > { %4567 = vmatprep.subr.bf16.mxu0 %v5162_v61 }
 0x501   : > { %4551 = vmatmul.mubr.f32.gmra.mrb[30].mxu1 %v2582_v11  ;;  %4568 = vmatpush3.bf16.msra.mxu0 %v5162_v61 }
 0x502   : > { %4917 = vmatprep.subr.bf16.mxu0 %v4916_v50 }
 0x595   : > { %v4531_v34 = vpop.f32.mrb[16].mxu1 }
 0x596   : > { %v2771_v9 = vadd.f32 %v4531_v34, %v7206_v28  ;;  %v2669_v62 = vpop.f32.mrb[17].mxu1  ;;  %v2811_v34 = vld [vmem:[%s7668_s8 + $0x8] sm:$0xff] }
 0x597   : > { %v2770_v38 = vadd.f32 %v7206_v28, %v2669_v62  ;;  %v2814_v62 = vld [vmem:[%s7668_s8 + $0x20] sm:$0xff] }
 0x599   : > { %v2786_v2 = vpack.c.bf16 %v2771_v9, %v2770_v38  ;;  %v2812_v9 = vld [vmem:[%s7668_s8 + $0x10] sm:$0xff]  ;;  %v2815_v38 = vld [vmem:[%s7668_s8 + $0x28] sm:$0xff] }
 0x59b   : > { %4569 = vmatprep.mubr.bf16.mxu0 %v2786_v2  ;;  %v2816_v2 = vld [vmem:[%s7668_s8 + $0x30] sm:$0xff] }
 0x5a4   : > { %v4534_v56 = vpop.f32.mrb[18].mxu1 }
 0x5a5   : > { %v2773_v45 = vadd.f32 %v4534_v56, %v7206_v28  ;;  %v2679_v12 = vpop.f32.mrb[19].mxu1  ;;  %v2817_v56 = vld [vmem:[%s7668_s8 + $0x38] sm:$0xff] }
 0x5a6   : > { %v2772_v20 = vadd.f32 %v7206_v28, %v2679_v12  ;;  %v2819_v12 = vld [vmem:[%s7668_s8 + $0x48] sm:$0xff] }
 0x5a8   : > { %v2787_v59 = vpack.c.bf16 %v2773_v45, %v2772_v20  ;;  %v2818_v45 = vld [vmem:[%s7668_s8 + $0x40] sm:$0xff] }
 0x5a9   : > { %v2822_v20 = vld [vmem:[%s7668_s8 + $0x60] sm:$0xff] }
 0x5aa   : > { %4570 = vmatmul.mubr.bf16.vlgmr.msra.gmra.mrb[20].mxu0 %v2787_v59  ;;  %v2823_v59 = vld [vmem:[%s7668_s8 + $0x68] sm:$0xff] }
 0x5ab   : > { %4919 = vmatpush3.bf16.msra.mxu0 %v4916_v50  ;;  %v2810_v50 = vld [vmem:[%s7668_s8] sm:$0xff] }
 0x5ac   : > { %v4537_v60 = vpop.f32.mrb[20].mxu1  ;;  %4921 = vmatprep.subr.bf16.mxu0 %v4920_v35  ;;  %3133 = vxpose.xlu0.b32.start [1/16] (narrow) %v2810_v50, 8 }
 0x5ad   : > { %v2775_v21 = vadd.f32 %v4537_v60, %v7206_v28  ;;  %v2689_v57 = vpop.f32.mrb[21].mxu1 }
 0x5ae   : > { %v2774_v25 = vadd.f32 %v7206_v28, %v2689_v57 }
 0x5af   : > { %4923 = vmatpush3.bf16.msra.mxu0 %v4920_v35  ;;  %v2824_v35 = vld [vmem:[%s7668_s8 + $0x70] sm:$0xff] }
 0x5b0   : > { %v2788_v33 = vpack.c.bf16 %v2775_v21, %v2774_v25  ;;  %4925 = vmatprep.subr.bf16.mxu0 %v4924_v53  ;;  %3134 = vxpose.xlu0.b32.cont [2/16] (narrow) %v2811_v34, 8 }
 0x5b2   : > { %4573 = vmatprep.mubr.bf16.mxu0 %v2788_v33 }
 0x5b3   : > { %4927 = vmatpush3.bf16.msra.mxu0 %v4924_v53 }
 0x5b4   : > { %v4540_v44 = vpop.f32.mrb[22].mxu1  ;;  %4929 = vmatprep.subr.bf16.mxu0 %v4928_v18  ;;  %3135 = vxpose.xlu0.b32.cont [3/16] (narrow) %v2812_v9, 8 }
 0x5b5   : > { %v2777_v3 = vadd.f32 %v4540_v44, %v7206_v28  ;;  %v2699_v41 = vpop.f32.mrb[23].mxu1 }
 0x5b6   : > { %v2776_v49 = vadd.f32 %v7206_v28, %v2699_v41 }
 0x5b7   : > { %4931 = vmatpush3.bf16.msra.mxu0 %v4928_v18 }
 0x5b8   : > { %v2789_v1 = vpack.c.bf16 %v2777_v3, %v2776_v49  ;;  %4933 = vmatprep.subr.bf16.mxu0 %v4932_v32 }
 0x5ba   : > { %4574 = vmatmul.mubr.bf16.gmra.mrb[24].mxu0 %v2789_v1 }
 0x5bb   : > { %4935 = vmatpush3.bf16.msra.mxu0 %v4932_v32 }
 0x5bc   : > { %v4543_v40 = vpop.f32.mrb[24].mxu1  ;;  %4937 = vmatprep.subr.bf16.mxu0 %v4936_v54 }
 0x5bd   : > { %v2779_v42 = vadd.f32 %v4543_v40, %v7206_v28  ;;  %v2709_v39 = vpop.f32.mrb[25].mxu1 }
 0x5be   : > { %v2778_v31 = vadd.f32 %v7206_v28, %v2709_v39 }
 0x5bf   : > { %4939 = vmatpush3.bf16.msra.mxu0 %v4936_v54 }
 0x5c0   : > { %v2790_v37 = vpack.c.bf16 %v2779_v42, %v2778_v31  ;;  %4941 = vmatprep.subr.bf16.mxu0 %v4940_v0  ;;  %v7953_v42 = vmov 0.0  }
 0x5c2   : > { %4577 = vmatprep.mubr.bf16.mxu0 %v2790_v37 }
 0x5c3   : > { %4943 = vmatpush3.bf16.msra.mxu0 %v4940_v0 }
 0x5c4   : > { %v4546_v23 = vpop.f32.mrb[26].mxu1  ;;  %4945 = vmatprep.subr.bf16.mxu0 %v4944_v14 }
 0x5c5   : > { %v2781_v27 = vadd.f32 %v4546_v23, %v7206_v28  ;;  %v2719_v8 = vpop.f32.mrb[27].mxu1 }
 0x5c6   : > { %v2780_v46 = vadd.f32 %v7206_v28, %v2719_v8 }
 0x5c7   : > { %4947 = vmatpush3.bf16.msra.mxu0 %v4944_v14 }
 0x5c8   : > { %v2791_v7 = vpack.c.bf16 %v2781_v27, %v2780_v46  ;;  %4948 = vmatprep.subr.bf16.mxu0 %v7951_v36 }
 0x5ca   : > { %4578 = vmatmul.mubr.bf16.gmra.mrb[28].mxu0 %v2791_v7 }
 0x5cc   : > { %v4549_v51 = vpop.f32.mrb[28].mxu1 }
 0x5cd   : > { %v2783_v29 = vadd.f32 %v4549_v51, %v7206_v28  ;;  %v2729_v11 = vpop.f32.mrb[29].mxu1 }
 0x5ce   : > { %v2782_v63 = vadd.f32 %v7206_v28, %v2729_v11 }
 0x5d0   : > { %v2792_v30 = vpack.c.bf16 %v2783_v29, %v2782_v63 }
 0x5d2   : > { %4581 = vmatprep.mubr.bf16.mxu0 %v2792_v30 }
 0x5d4   : > { %v4552_v15 = vpop.f32.mrb[30].mxu1 }
 0x5d5   : > { %v2785_v16 = vadd.f32 %v4552_v15, %v7206_v28  ;;  %v2739_v61 = vpop.f32.mrb[31].mxu1 }
 0x5d6   : > { %v2784_v4 = vadd.f32 %v7206_v28, %v2739_v61  ;;  %v2813_v28 = vld [vmem:[%s7668_s8 + $0x18] sm:$0xff]  ;;  %v7955_v61 = vld [vmem:[#allocation5_spill] sm:$0xff] }
 0x5d7   : > { %3136 = vxpose.xlu0.b32.cont [4/16] (narrow) %v2813_v28, 8 }
 0x5d8   : > { %v2793_v13 = vpack.c.bf16 %v2785_v16, %v2784_v4 }
 0x5da   : > { %4582 = vmatmul.mubr.bf16.gmra.mrb[32].mxu0 %v2793_v13 }
 0x5db   : > { %3137 = vxpose.xlu0.b32.cont [5/16] (narrow) %v2814_v62, 8 }
 0x5df   : > { %3138 = vxpose.xlu0.b32.cont [6/16] (narrow) %v2815_v38, 8 }
 0x5e3   : > { %3139 = vxpose.xlu0.b32.cont [7/16] (narrow) %v2816_v2, 8 }
 0x5e7   : > { %3140 = vxpose.xlu0.b32.cont [8/16] (narrow) %v2817_v56, 8 }
 0x5eb   : > { %3141 = vxpose.xlu0.b32.cont [9/16] (narrow) %v2818_v45, 8 }
 0x5ef   : > { %3142 = vxpose.xlu0.b32.cont [10/16] (narrow) %v2819_v12, 8 }
 0x5f3   : > { %3143 = vxpose.xlu0.b32.cont [11/16] (narrow) %v2820_v5, 8 }
 0x5f7   : > { %3144 = vxpose.xlu0.b32.cont [12/16] (narrow) %v2821_v19, 8 }
 0x5fb   : > { %3145 = vxpose.xlu0.b32.cont [13/16] (narrow) %v2822_v20, 8 }
 0x5ff   : > { %3146 = vxpose.xlu0.b32.cont [14/16] (narrow) %v2823_v59, 8 }
 0x603   : > { %3147 = vxpose.xlu0.b32.cont [15/16] (narrow) %v2824_v35, 8 }
 0x607   : > { %3148 = vxpose.xlu0.b32.end [16/16] (narrow) %v2825_v17, 8 }
 0x630   : > { %5146 = vset.pattern.permute.xlu0 %v7952_v26 }
 0x64b   : > { %v3149_v39 = vpop.trf.xlu0 }
 0x67d   : > { %v4571_v60 = vpop.f32.mrb[20].mxu0 }
 0x67e   : > { %v2925_v53 = vpop.f32.mrb[21].mxu0 }
 0x67f   : > { %v4572_v21 = vpop.f32.mrb[22].mxu0  ;;  %4617 = vmatprep.mubr.f32.mxu0 %v2925_v53 }
 0x680   : > { %v4952_v57 = vpack.c.bf16 %v4572_v21, %v4571_v60  ;;  %v2928_v10 = vpop.f32.mrb[23].mxu0 }
 0x681   : > { %v4949_v58 = vpack.c.bf16 %v2928_v10, %v2925_v53  ;;  %4618 = vmatmul.mubr.f32.vlgmr.msra.gmra.mrb[18].mxu0 %v2928_v10 }
 0x682   : > { %4620 = vmatprep.mubr.f32.mxu0 %v4571_v60 }
 0x683   : > { %4950 = vmatpush3.bf16.xpose.msra.mxu0 %v4949_v58  ;;  %4973 = vmatprep.subr.bf16.mxu1 %v4949_v58 }
 0x684   : > { %4975 = vmatpush3.bf16.msra.mxu1 %v4949_v58  ;;  %4951 = vmatprep.subr.bf16.mxu0 %v7951_v36 }
 0x685   : > { %4621 = vmatmul.mubr.f32.gmra.mrb[36].mxu0 %v4572_v21  ;;  %4977 = vmatprep.subr.bf16.mxu1 %v4952_v57 }
 0x688   : > { %4979 = vmatpush3.bf16.msra.mxu1 %v4952_v57 }
 0x68b   : > { %4953 = vmatpush3.bf16.xpose.msra.mxu0 %v4952_v57 }
 0x68c   : > { %4954 = vmatprep.subr.bf16.mxu0 %v7951_v36 }
 0x68d   : > { %v4575_v25 = vpop.f32.mrb[24].mxu0 }
 0x68e   : > { %v2941_v33 = vpop.f32.mrb[25].mxu0 }
 0x68f   : > { %v4576_v18 = vpop.f32.mrb[26].mxu0  ;;  %4623 = vmatprep.mubr.f32.mxu0 %v2941_v33 }
 0x690   : > { %v4958_v43 = vpack.c.bf16 %v4576_v18, %v4575_v25  ;;  %v2944_v22 = vpop.f32.mrb[27].mxu0 }
 0x691   : > { %v4955_v44 = vpack.c.bf16 %v2944_v22, %v2941_v33  ;;  %4624 = vmatmul.mubr.f32.gmra.mrb[38].mxu0 %v2944_v22 }
 0x692   : > { %4626 = vmatprep.mubr.f32.mxu0 %v4575_v25 }
 0x693   : > { %4956 = vmatpush3.bf16.xpose.msra.mxu0 %v4955_v44  ;;  %4981 = vmatprep.subr.bf16.mxu1 %v4955_v44 }
 0x694   : > { %4983 = vmatpush3.bf16.msra.mxu1 %v4955_v44  ;;  %4957 = vmatprep.subr.bf16.mxu0 %v7951_v36 }
 0x695   : > { %4627 = vmatmul.mubr.f32.gmra.mrb[40].mxu0 %v4576_v18  ;;  %4985 = vmatprep.subr.bf16.mxu1 %v4958_v43 }
 0x698   : > { %4987 = vmatpush3.bf16.msra.mxu1 %v4958_v43 }
 0x69b   : > { %4959 = vmatpush3.bf16.xpose.msra.mxu0 %v4958_v43 }
 0x69c   : > { %4960 = vmatprep.subr.bf16.mxu0 %v7951_v36 }
 0x69d   : > { %v4579_v32 = vpop.f32.mrb[28].mxu0 }
 0x69e   : > { %v2957_v3 = vpop.f32.mrb[29].mxu0 }
 0x69f   : > { %v4580_v41 = vpop.f32.mrb[30].mxu0  ;;  %4629 = vmatprep.mubr.f32.mxu0 %v2957_v3 }
 0x6a0   : > { %v4964_v52 = vpack.c.bf16 %v4580_v41, %v4579_v32  ;;  %v2960_v55 = vpop.f32.mrb[31].mxu0 }
 0x6a1   : > { %v4961_v49 = vpack.c.bf16 %v2960_v55, %v2957_v3  ;;  %4630 = vmatmul.mubr.f32.gmra.mrb[42].mxu0 %v2960_v55 }
 0x6a2   : > { %4632 = vmatprep.mubr.f32.mxu0 %v4579_v32 }
 0x6a3   : > { %4962 = vmatpush3.bf16.xpose.msra.mxu0 %v4961_v49  ;;  %4989 = vmatprep.subr.bf16.mxu1 %v4961_v49 }
 0x6a4   : > { %4991 = vmatpush3.bf16.msra.mxu1 %v4961_v49  ;;  %4963 = vmatprep.subr.bf16.mxu0 %v7951_v36 }
 0x6a5   : > { %4633 = vmatmul.mubr.f32.gmra.mrb[44].mxu0 %v4580_v41  ;;  %4993 = vmatprep.subr.bf16.mxu1 %v4964_v52 }
 0x6a8   : > { %4995 = vmatpush3.bf16.msra.mxu1 %v4964_v52 }
 0x6ab   : > { %4965 = vmatpush3.bf16.xpose.msra.mxu0 %v4964_v52 }
 0x6ac   : > { %4966 = vmatprep.subr.bf16.mxu0 %v7951_v36 }
 0x6ad   : > { %v4583_v1 = vpop.f32.mrb[32].mxu0 }
 0x6ae   : > { %v2973_v54 = vpop.f32.mrb[33].mxu0 }
 0x6af   : > { %v4584_v24 = vpop.f32.mrb[34].mxu0  ;;  %4635 = vmatprep.mubr.f32.mxu0 %v2973_v54 }
 0x6b0   : > { %v4970_v47 = vpack.c.bf16 %v4584_v24, %v4583_v1  ;;  %v2976_v40 = vpop.f32.mrb[35].mxu0 }
 0x6b1   : > { %v4967_v0 = vpack.c.bf16 %v2976_v40, %v2973_v54  ;;  %4636 = vmatmul.mubr.f32.gmra.mrb[46].mxu0 %v2976_v40 }
 0x6b2   : > { %4638 = vmatprep.mubr.f32.mxu0 %v4583_v1 }
 0x6b3   : > { %4968 = vmatpush3.bf16.xpose.msra.mxu0 %v4967_v0  ;;  %4997 = vmatprep.subr.bf16.mxu1 %v4967_v0 }
 0x6b4   : > { %4999 = vmatpush3.bf16.msra.mxu1 %v4967_v0  ;;  %4969 = vmatprep.subr.bf16.mxu0 %v7951_v36 }
 0x6b5   : > { %4639 = vmatmul.mubr.f32.gmra.mrb[48].mxu0 %v4584_v24  ;;  %5001 = vmatprep.subr.bf16.mxu1 %v4970_v47 }
 0x6b6   : > { %4673 = vmatprep.mubr.msk.f32.mxu0 %vm7954_vm15, %v7953_v42 }
 0x6b8   : > { %5003 = vmatpush3.bf16.msra.mxu1 %v4970_v47 }
 0x6bb   : > { %4971 = vmatpush3.bf16.xpose.msra.mxu0 %v4970_v47 }
 0x6c2   : > { %4674 = vmatmul.mubr.f32.vlgmr.msra.gmra.mrb[50].mxu0 %v3149_v39 }
 0x754   : > { %v4619_v48 = vpop.f32.mrb[18].mxu0 }
 0x755   : > { %3242 = vperm.xlu1 %5145, %v4619_v48   ;;  %v3054_v6 = vpop.f32.mrb[19].mxu0 }
 0x758   : > { %v4622_v31 = vpop.f32.mrb[36].mxu0 }
 0x759   : > { %3237 = vperm.xlu1 %5145, %v3054_v6   ;;  %v3064_v37 = vpop.f32.mrb[37].mxu0 }
 0x75d   : > { %3252 = vperm.xlu1 %5145, %v4622_v31  }
 0x761   : > { %3247 = vperm.xlu1 %5145, %v3064_v37  }
 0x764   : > { %v4625_v14 = vpop.f32.mrb[38].mxu0 }
 0x765   : > { %3262 = vperm.xlu1 %5145, %v4625_v14   ;;  %v3074_v23 = vpop.f32.mrb[39].mxu0 }
 0x768   : > { %v4628_v27 = vpop.f32.mrb[40].mxu0 }
 0x769   : > { %3257 = vperm.xlu1 %5145, %v3074_v23   ;;  %v3084_v8 = vpop.f32.mrb[41].mxu0 }
 0x76d   : > { %3272 = vperm.xlu1 %5145, %v4628_v27  }
 0x771   : > { %3267 = vperm.xlu1 %5145, %v3084_v8  }
 0x774   : > { %v4631_v46 = vpop.f32.mrb[42].mxu0 }
 0x775   : > { %3282 = vperm.xlu1 %5145, %v4631_v46   ;;  %v3094_v7 = vpop.f32.mrb[43].mxu0 }
 0x778   : > { %v4634_v36 = vpop.f32.mrb[44].mxu0 }
 0x779   : > { %3277 = vperm.xlu1 %5145, %v3094_v7   ;;  %v3104_v51 = vpop.f32.mrb[45].mxu0 }
 0x77d   : > { %3292 = vperm.xlu1 %5145, %v4634_v36  }
 0x781   : > { %3287 = vperm.xlu1 %5145, %v3104_v51  }
 0x784   : > { %v4637_v29 = vpop.f32.mrb[46].mxu0 }
 0x785   : > { %3302 = vperm.xlu1 %5145, %v4637_v29   ;;  %v3114_v11 = vpop.f32.mrb[47].mxu0 }
 0x788   : > { %v4640_v63 = vpop.f32.mrb[48].mxu0 }
 0x789   : > { %3297 = vperm.xlu1 %5145, %v3114_v11   ;;  %v3124_v30 = vpop.f32.mrb[49].mxu0 }
 0x78d   : > { %3307 = vperm.xlu1 %5145, %v3124_v30  }
 0x791   : > { %3312 = vperm.xlu1 %5145, %v4640_v63  }
 0x795   : > { %v3231_v15 = vpop.f32.mrb[50].mxu0 }
 0x796   : > { %v4675_v16 = vpop.f32.mrb[51].mxu0  ;;  %v7326_v4 = vrot.slane %v3231_v15, %v7955_v61 }
 0x7d4   : > { %v3243_v13 = vpop.permute.xlu1 %3242 }
 0x7d5   : > { %v3320_v50 = vadd.f32 %v7326_v4, %v3243_v13 }
 0x7d7   : > { %v3336_v34 = vmul.f32 0.2, %v3320_v50 }
 0x7d8   : > { %v3238_v9 = vpop.permute.xlu1 %3237 }
 0x7d9   : > { %v3352_v28 = vmax.f32 %v3320_v50, %v3336_v34  ;;  %v3319_v62 = vadd.f32 %v7326_v4, %v3238_v9 }
 0x7db   : > { %v3335_v38 = vmul.f32 0.2, %v3319_v62  ;;  %v7332_v56 = vsel %vm6170_vm5, %v3352_v28, -1e+30 }
 0x7dc   : > { %v3253_v45 = vpop.permute.xlu1 %3252  ;;  %3385 = vmax.xlane.f32.xlu0 %v7332_v56 }
 0x7dd   : > { %v3351_v12 = vmax.f32 %v3319_v62, %v3335_v38  ;;  %v3322_v5 = vadd.f32 %v7326_v4, %v3253_v45 }
 0x7df   : > { %v3338_v19 = vmul.f32 0.2, %v3322_v5  ;;  %v7338_v59 = vsel %vm6183_vm6, %v3351_v12, -1e+30 }
 0x7e0   : > { %v3248_v35 = vpop.permute.xlu1 %3247  ;;  %3383 = vmax.xlane.f32.xlu1 %v7338_v59 }
 0x7e1   : > { %v3354_v17 = vmax.f32 %v3322_v5, %v3338_v19  ;;  %v3321_v26 = vadd.f32 %v7326_v4, %v3248_v35 }
 0x7e3   : > { %v3337_v60 = vmul.f32 0.2, %v3321_v26  ;;  %v7344_v21 = vsel %vm6209_vm8, %v3354_v17, -1e+30 }
 0x7e4   : > { %v3263_v57 = vpop.permute.xlu1 %3262  ;;  %3389 = vmax.xlane.f32.xlu1 %v7344_v21 }
 0x7e5   : > { %v3353_v10 = vmax.f32 %v3321_v26, %v3337_v60  ;;  %v3324_v58 = vadd.f32 %v7326_v4, %v3263_v57 }
 0x7e7   : > { %v3340_v25 = vmul.f32 0.2, %v3324_v58  ;;  %v7350_v18 = vsel %vm6305_vm0, %v3353_v10, -1e+30 }
 0x7e8   : > { %v3258_v43 = vpop.permute.xlu1 %3257  ;;  %3387 = vmax.xlane.f32.xlu1 %v7350_v18 }
 0x7e9   : > { %v3356_v22 = vmax.f32 %v3324_v58, %v3340_v25  ;;  %v3323_v44 = vadd.f32 %v7326_v4, %v3258_v43 }
 0x7eb   : > { %v3339_v32 = vmul.f32 0.2, %v3323_v44  ;;  %v7356_v41 = vsel %vm6237_vm11, %v3356_v22, -1e+30 }
 0x7ec   : > { %v3273_v52 = vpop.permute.xlu1 %3272  ;;  %3393 = vmax.xlane.f32.xlu1 %v7356_v41 }
 0x7ed   : > { %v3355_v55 = vmax.f32 %v3323_v44, %v3339_v32  ;;  %v3326_v49 = vadd.f32 %v7326_v4, %v3273_v52 }
 0x7ef   : > { %v3342_v1 = vmul.f32 0.2, %v3326_v49  ;;  %v7362_v24 = vsel %vm6247_vm12, %v3355_v55, -1e+30 }
 0x7f0   : > { %v3268_v47 = vpop.permute.xlu1 %3267  ;;  %3391 = vmax.xlane.f32.xlu1 %v7362_v24 }
 0x7f1   : > { %v3358_v40 = vmax.f32 %v3326_v49, %v3342_v1  ;;  %v3325_v0 = vadd.f32 %v7326_v4, %v3268_v47  ;;  %v7971_v1 = vld [vmem:[#allocation60_spill] sm:$0xff] }
 0x7f3   : > { %v3341_v42 = vmul.f32 0.2, %v3325_v0  ;;  %v7368_v48 = vsel %vm6262_vm14, %v3358_v40, -1e+30 }
 0x7f4   : > { %v3283_v6 = vpop.permute.xlu1 %3282  ;;  %3397 = vmax.xlane.f32.xlu1 %v7368_v48 }
 0x7f5   : > { %v3357_v31 = vmax.f32 %v3325_v0, %v3341_v42  ;;  %v3328_v37 = vadd.f32 %v7326_v4, %v3283_v6 }
 0x7f7   : > { %v3344_v14 = vmul.f32 0.2, %v3328_v37  ;;  %v7374_v27 = vsel %vm6347_vm7, %v3357_v31, -1e+30 }
 0x7f8   : > { %v3278_v8 = vpop.permute.xlu1 %3277  ;;  %3395 = vmax.xlane.f32.xlu1 %v7374_v27 }
 0x7f9   : > { %v3360_v46 = vmax.f32 %v3328_v37, %v3344_v14  ;;  %v3327_v7 = vadd.f32 %v7326_v4, %v3278_v8 }
 0x7fb   : > { %v3343_v36 = vmul.f32 0.2, %v3327_v7  ;;  %v7380_v29 = vsel %vm6332_vm4, %v3360_v46, -1e+30 }
 0x7fc   : > { %v3293_v11 = vpop.permute.xlu1 %3292  ;;  %3401 = vmax.xlane.f32.xlu1 %v7380_v29 }
 0x7fd   : > { %v3359_v63 = vmax.f32 %v3327_v7, %v3343_v36  ;;  %v3330_v30 = vadd.f32 %v7326_v4, %v3293_v11 }
 0x7ff   : > { %v7386_v16 = vsel %vm6372_vm13, %v3359_v63, -1e+30  ;;  %v3346_v50 = vmul.f32 0.2, %v3330_v30 }
 0x800   : > { %v3288_v61 = vpop.permute.xlu1 %3287  ;;  %3399 = vmax.xlane.f32.xlu1 %v7386_v16 }
 0x801   : > { %v3329_v13 = vadd.f32 %v7326_v4, %v3288_v61  ;;  %v3362_v38 = vmax.f32 %v3330_v30, %v3346_v50 }
 0x803   : > { %v3345_v34 = vmul.f32 0.2, %v3329_v13  ;;  %v7399_v26 = vsel %vm7871_vm9, %v3362_v38, -1e+30 }
 0x804   : > { %v3303_v9 = vpop.permute.xlu1 %3302 }
 0x805   : > { %v3361_v28 = vmax.f32 %v3329_v13, %v3345_v34  ;;  %v3332_v62 = vadd.f32 %v7326_v4, %v3303_v9 }
 0x807   : > { %v3348_v2 = vmul.f32 0.2, %v3332_v62  ;;  %v7393_v12 = vsel %vm6400_vm3, %v3361_v28, -1e+30 }
 0x808   : > { %v3298_v5 = vpop.permute.xlu1 %3297  ;;  %3403 = vmax.xlane.f32.xlu1 %v7393_v12 }
 0x809   : > { %v3331_v19 = vadd.f32 %v7326_v4, %v3298_v5  ;;  %v3364_v20 = vmax.f32 %v3332_v62, %v3348_v2 }
 0x80b   : > { %v3347_v35 = vmul.f32 0.2, %v3331_v19  ;;  %v7409_v43 = vsel %vm6415_vm10, %v3364_v20, -1e+30 }
 0x80c   : > { %v3308_v60 = vpop.permute.xlu1 %3307  ;;  %3405 = vmax.xlane.f32.xlu1 %v7399_v26 }
 0x80d   : > { %v3363_v53 = vmax.f32 %v3331_v19, %v3347_v35  ;;  %v3333_v57 = vadd.f32 %v7326_v4, %v3308_v60 }
 0x80f   : > { %v3349_v10 = vmul.f32 0.2, %v3333_v57  ;;  %v7405_v25 = vsel %vm6434_vm2, %v3363_v53, -1e+30  ;;  %vm7972_vm2 = vnez %v7971_v1 }
 0x810   : > { %v3313_v22 = vpop.permute.xlu1 %3312  ;;  %3407 = vmax.xlane.f32.xlu0 %v7405_v25  ;;  %3409 = vmax.xlane.f32.xlu1 %v7409_v43 }
 0x811   : > { %v3365_v44 = vmax.f32 %v3333_v57, %v3349_v10  ;;  %v3334_v32 = vadd.f32 %v7326_v4, %v3313_v22 }
 0x813   : > { %v3350_v3 = vmul.f32 0.2, %v3334_v32  ;;  %v7416_v55 = vsel %vm6467_vm1, %v3365_v44, -1e+30 }
 0x814   : > { %3411 = vmax.xlane.f32.xlu0 %v7416_v55 }
 0x815   : > { %v3366_v49 = vmax.f32 %v3334_v32, %v3350_v3 }
 0x817   : > { %v7421_v54 = vsel %vm7972_vm2, %v3366_v49, -1e+30 }
 0x818   : > { %3413 = vmax.xlane.f32.xlu1 %v7421_v54 }
 0x869   : > { %v3386_v47 = vpop.xlane.xlu0 %3385 }
 0x86a   : > { %v3416_v40 = vsub.f32 %v7332_v56, %v3386_v47 }
 0x86c   : > { %v3433_v0 = vmul.f32 1.442695, %v3416_v40 }
 0x86d   : > { %v3384_v42 = vpop.xlane.xlu1 %3383 }
 0x86e   : > { %5419 = vpow2.f32 %v3433_v0  ;;  %v3415_v4 = vsub.f32 %v7338_v59, %v3384_v42 }
 0x870   : > { %v3431_v39 = vmul.f32 1.442695, %v3415_v4 }
 0x871   : > { %v3390_v6 = vpop.xlane.xlu1 %3389 }
 0x872   : > { %5421 = vpow2.f32 %v3431_v39  ;;  %v3418_v31 = vsub.f32 %v7344_v21, %v3390_v6 }
 0x874   : > { %v3437_v37 = vmul.f32 1.442695, %v3418_v31 }
 0x875   : > { %v3388_v14 = vpop.xlane.xlu1 %3387 }
 0x876   : > { %5423 = vpow2.f32 %v3437_v37  ;;  %v3417_v23 = vsub.f32 %v7350_v18, %v3388_v14 }
 0x878   : > { %v7428_v8 = vpop.eup %5419  ;;  %v3435_v46 = vmul.f32 1.442695, %v3417_v23 }
 0x879   : > { %3465 = vadd.xlane.f32.xlu1 %v7428_v8  ;;  %v3394_v56 = vpop.xlane.xlu1 %3393 }
 0x87a   : > { %5425 = vpow2.f32 %v3435_v46  ;;  %v3420_v7 = vsub.f32 %v7356_v41, %v3394_v56 }
 0x87c   : > { %v7432_v59 = vpop.eup %5421  ;;  %v3441_v36 = vmul.f32 1.442695, %v3420_v7 }
 0x87d   : > { %3463 = vadd.xlane.f32.xlu0 %v7432_v59  ;;  %v3392_v21 = vpop.xlane.xlu1 %3391 }
 0x87e   : > { %5427 = vpow2.f32 %v3441_v36  ;;  %v3419_v51 = vsub.f32 %v7362_v24, %v3392_v21 }
 0x880   : > { %v7436_v11 = vpop.eup %5423  ;;  %v3439_v18 = vmul.f32 1.442695, %v3419_v51 }
 0x881   : > { %3469 = vadd.xlane.f32.xlu1 %v7436_v11  ;;  %v3398_v63 = vpop.xlane.xlu1 %3397 }
 0x882   : > { %5429 = vpow2.f32 %v3439_v18  ;;  %v3422_v30 = vsub.f32 %v7368_v48, %v3398_v63 }
 0x884   : > { %v7440_v15 = vpop.eup %5425  ;;  %v3445_v41 = vmul.f32 1.442695, %v3422_v30 }
 0x885   : > { %3467 = vadd.xlane.f32.xlu0 %v7440_v15  ;;  %v3396_v61 = vpop.xlane.xlu1 %3395 }
 0x886   : > { %5431 = vpow2.f32 %v3445_v41  ;;  %v3421_v13 = vsub.f32 %v7374_v27, %v3396_v61 }
 0x888   : > { %v7444_v50 = vpop.eup %5427  ;;  %v3443_v24 = vmul.f32 1.442695, %v3421_v13 }
 0x889   : > { %3473 = vadd.xlane.f32.xlu1 %v7444_v50  ;;  %v3402_v34 = vpop.xlane.xlu1 %3401 }
 0x88a   : > { %5433 = vpow2.f32 %v3443_v24  ;;  %v3424_v9 = vsub.f32 %v7380_v29, %v3402_v34 }
 0x88c   : > { %v7448_v28 = vpop.eup %5429  ;;  %v3449_v48 = vmul.f32 1.442695, %v3424_v9 }
 0x88d   : > { %3471 = vadd.xlane.f32.xlu0 %v7448_v28  ;;  %v3400_v62 = vpop.xlane.xlu1 %3399 }
 0x88e   : > { %5435 = vpow2.f32 %v3449_v48  ;;  %v3423_v38 = vsub.f32 %v7386_v16, %v3400_v62 }
 0x890   : > { %v7452_v2 = vpop.eup %5431  ;;  %v3447_v27 = vmul.f32 1.442695, %v3423_v38 }
 0x891   : > { %3477 = vadd.xlane.f32.xlu1 %v7452_v2 }
 0x892   : > { %5437 = vpow2.f32 %v3447_v27 }
 0x894   : > { %v7455_v45 = vpop.eup %5433 }
 0x895   : > { %3475 = vadd.xlane.f32.xlu0 %v7455_v45  ;;  %v3404_v29 = vpop.xlane.xlu1 %3403 }
 0x896   : > { %v3425_v5 = vsub.f32 %v7393_v12, %v3404_v29 }
 0x898   : > { %v7459_v19 = vpop.eup %5435  ;;  %v3451_v20 = vmul.f32 1.442695, %v3425_v5 }
 0x899   : > { %3481 = vadd.xlane.f32.xlu1 %v7459_v19  ;;  %v3406_v35 = vpop.xlane.xlu1 %3405 }
 0x89a   : > { %5439 = vpow2.f32 %v3451_v20  ;;  %v3426_v16 = vsub.f32 %v7399_v26, %v3406_v35 }
 0x89c   : > { %v7463_v17 = vpop.eup %5437  ;;  %v3453_v60 = vmul.f32 1.442695, %v3426_v16 }
 0x89d   : > { %v3408_v53 = vpop.xlane.xlu0 %3407  ;;  %3479 = vadd.xlane.f32.xlu0 %v7463_v17  ;;  %v3410_v57 = vpop.xlane.xlu1 %3409 }
 0x89e   : > { %5441 = vpow2.f32 %v3453_v60  ;;  %v3427_v10 = vsub.f32 %v7405_v25, %v3408_v53  ;;  %v3428_v12 = vsub.f32 %v7409_v43, %v3410_v57 }
 0x8a0   : > { %v3455_v58 = vmul.f32 1.442695, %v3427_v10  ;;  %v3457_v33 = vmul.f32 1.442695, %v3428_v12  ;;  %v3928_v10 = vld [vmem:[%s7670_s10] ss:$0 sm:$0xff] }
 0x8a1   : > { %v3412_v22 = vpop.xlane.xlu0 %3411 }
 0x8a2   : > { %5443 = vpow2.f32 %v3455_v58  ;;  %v3429_v44 = vsub.f32 %v7416_v55, %v3412_v22 }
 0x8a3   : > { %5445 = vpow2.f32 %v3457_v33 }
 0x8a4   : > { %v7469_v26 = vpop.eup %5439  ;;  %v3459_v32 = vmul.f32 1.442695, %v3429_v44 }
 0x8a5   : > { %3483 = vadd.xlane.f32.xlu0 %v7469_v26  ;;  %v3414_v3 = vpop.xlane.xlu1 %3413 }
 0x8a6   : > { %5447 = vpow2.f32 %v3459_v32  ;;  %v3430_v52 = vsub.f32 %v7421_v54, %v3414_v3 }
 0x8a8   : > { %v7473_v49 = vpop.eup %5441  ;;  %v3461_v25 = vmul.f32 1.442695, %v3430_v52 }
 0x8a9   : > { %3485 = vadd.xlane.f32.xlu1 %v7473_v49 }
 0x8aa   : > { %5449 = vpow2.f32 %v3461_v25 }
 0x8ac   : > { %v7476_v43 = vpop.eup %5443 }
 0x8ad   : > { %v7478_v1 = vpop.eup %5445  ;;  %3487 = vadd.xlane.f32.xlu0 %v7476_v43 }
 0x8ae   : > { %3489 = vadd.xlane.f32.xlu1 %v7478_v1 }
 0x8b0   : > { %v7482_v55 = vpop.eup %5447 }
 0x8b1   : > { %3491 = vadd.xlane.f32.xlu0 %v7482_v55 }
 0x8b4   : > { %v7485_v47 = vpop.eup %5449 }
 0x8b5   : > { %3493 = vadd.xlane.f32.xlu1 %v7485_v47 }
 0x906   : > { %v3466_v54 = vpop.xlane.xlu1 %3465 }
 0x907   : > { %5451 = vrcp.f32 %v3466_v54 }
 0x90a   : > { %v3464_v40 = vpop.xlane.xlu0 %3463 }
 0x90b   : > { %5453 = vrcp.f32 %v3464_v40 }
 0x90e   : > { %v3470_v0 = vpop.xlane.xlu1 %3469 }
 0x90f   : > { %5455 = vrcp.f32 %v3470_v0 }
 0x911   : > { %v5452_v4 = vpop.eup %5451 }
 0x912   : > { %v3468_v42 = vpop.xlane.xlu0 %3467  ;;  %v3512_v31 = vmul.f32 %v5452_v4, %v7428_v8 }
 0x913   : > { %5457 = vrcp.f32 %v3468_v42 }
 0x915   : > { %v5454_v39 = vpop.eup %5453 }
 0x916   : > { %v3511_v6 = vmul.f32 %v5454_v39, %v7432_v59  ;;  %v3474_v37 = vpop.xlane.xlu1 %3473 }
 0x917   : > { %5459 = vrcp.f32 %v3474_v37 }
 0x918   : > { %4708 = vmatprep.mubr.f32.mxu1 %v3511_v6 }
 0x919   : > { %4709 = vmatmul.mubr.f32.vlgmr.msra.gmra.mrb[32].mxu1 %v3512_v31  ;;  %v5456_v23 = vpop.eup %5455 }
 0x91a   : > { %v3472_v14 = vpop.xlane.xlu0 %3471  ;;  %v3514_v36 = vmul.f32 %v5456_v23, %v7436_v11 }
 0x91b   : > { %5461 = vrcp.f32 %v3472_v14 }
 0x91d   : > { %v5458_v46 = vpop.eup %5457 }
 0x91e   : > { %v3513_v56 = vmul.f32 %v5458_v46, %v7440_v15  ;;  %v3478_v7 = vpop.xlane.xlu1 %3477 }
 0x91f   : > { %5463 = vrcp.f32 %v3478_v7 }
 0x920   : > { %4711 = vmatprep.mubr.f32.mxu1 %v3513_v56 }
 0x921   : > { %4712 = vmatmul.mubr.f32.gmra.mrb[34].mxu1 %v3514_v36  ;;  %v5460_v59 = vpop.eup %5459 }
 0x922   : > { %v3476_v21 = vpop.xlane.xlu0 %3475  ;;  %v3516_v63 = vmul.f32 %v5460_v59, %v7444_v50 }
 0x923   : > { %5465 = vrcp.f32 %v3476_v21 }
 0x925   : > { %v5462_v8 = vpop.eup %5461 }
 0x926   : > { %v3515_v51 = vmul.f32 %v5462_v8, %v7448_v28  ;;  %v3482_v18 = vpop.xlane.xlu1 %3481 }
 0x927   : > { %5467 = vrcp.f32 %v3482_v18 }
 0x928   : > { %4714 = vmatprep.mubr.f32.mxu1 %v3515_v51 }
 0x929   : > { %4715 = vmatmul.mubr.f32.gmra.mrb[36].mxu1 %v3516_v63  ;;  %v5464_v15 = vpop.eup %5463 }
 0x92a   : > { %v3480_v30 = vpop.xlane.xlu0 %3479  ;;  %v3518_v61 = vmul.f32 %v5464_v15, %v7452_v2 }
 0x92b   : > { %5469 = vrcp.f32 %v3480_v30 }
 0x92d   : > { %v5466_v41 = vpop.eup %5465 }
 0x92e   : > { %v3517_v11 = vmul.f32 %v5466_v41, %v7455_v45 }
 0x930   : > { %4717 = vmatprep.mubr.f32.mxu1 %v3517_v11 }
 0x931   : > { %4718 = vmatmul.mubr.f32.gmra.mrb[38].mxu1 %v3518_v61  ;;  %v5468_v24 = vpop.eup %5467 }
 0x932   : > { %v3484_v13 = vpop.xlane.xlu0 %3483  ;;  %v3520_v28 = vmul.f32 %v5468_v24, %v7459_v19 }
 0x933   : > { %5471 = vrcp.f32 %v3484_v13 }
 0x935   : > { %v5470_v34 = vpop.eup %5469 }
 0x936   : > { %v3486_v9 = vpop.xlane.xlu1 %3485  ;;  %v3519_v50 = vmul.f32 %v5470_v34, %v7463_v17 }
 0x937   : > { %5473 = vrcp.f32 %v3486_v9 }
 0x938   : > { %4720 = vmatprep.mubr.f32.mxu1 %v3519_v50 }
 0x939   : > { %4721 = vmatmul.mubr.f32.gmra.mrb[40].mxu1 %v3520_v28 }
 0x93a   : > { %v3488_v48 = vpop.xlane.xlu0 %3487 }
 0x93b   : > { %5475 = vrcp.f32 %v3488_v48  ;;  %v3490_v62 = vpop.xlane.xlu1 %3489 }
 0x93c   : > { %5477 = vrcp.f32 %v3490_v62 }
 0x93d   : > { %v5472_v38 = vpop.eup %5471 }
 0x93e   : > { %v3492_v2 = vpop.xlane.xlu0 %3491  ;;  %v3521_v27 = vmul.f32 %v5472_v38, %v7469_v26 }
 0x93f   : > { %5479 = vrcp.f32 %v3492_v2 }
 0x940   : > { %4723 = vmatprep.mubr.f32.mxu1 %v3521_v27 }
 0x941   : > { %v5474_v45 = vpop.eup %5473 }
 0x942   : > { %v3494_v29 = vpop.xlane.xlu1 %3493  ;;  %v3522_v5 = vmul.f32 %v5474_v45, %v7473_v49 }
 0x943   : > { %5481 = vrcp.f32 %v3494_v29 }
 0x944   : > { %4724 = vmatmul.mubr.f32.gmra.mrb[42].mxu1 %v3522_v5 }
 0x945   : > { %v5476_v20 = vpop.eup %5475 }
 0x946   : > { %v5478_v19 = vpop.eup %5477  ;;  %v3523_v35 = vmul.f32 %v5476_v20, %v7476_v43 }
 0x947   : > { %v3524_v16 = vmul.f32 %v5478_v19, %v7478_v1 }
 0x948   : > { %4726 = vmatprep.mubr.f32.mxu1 %v3523_v35 }
 0x949   : > { %v5480_v17 = vpop.eup %5479  ;;  %4727 = vmatmul.mubr.f32.gmra.mrb[44].mxu1 %v3524_v16 }
 0x94a   : > { %v3525_v60 = vmul.f32 %v5480_v17, %v7482_v55 }
 0x94c   : > { %4729 = vmatprep.mubr.f32.mxu1 %v3525_v60 }
 0x94d   : > { %v5482_v53 = vpop.eup %5481 }
 0x94e   : > { %v3526_v57 = vmul.f32 %v5482_v53, %v7485_v47 }
 0x950   : > { %4730 = vmatmul.mubr.f32.gmra.mrb[46].mxu1 %v3526_v57 }
 0x9ec   : > { %v4710_v12 = vpop.f32.mrb[32].mxu1 }
 0x9ed   : > { %v7507_v58 = vadd.f32 %v4710_v12, %v3928_v10  ;;  %v3599_v33 = vpop.f32.mrb[33].mxu1 }
 0x9ee   : > { %v7509_v22 = vadd.f32 %v3928_v10, %v3599_v33 }
 0x9ef   : > { %v3679_v44 = vmul.f32 %v7507_v58, %v7507_v58 }
 0x9f0   : > { %v3678_v26 = vmul.f32 %v7509_v22, %v7509_v22 }
 0x9f1   : > { %3696 = vadd.xlane.f32.xlu1 %v3679_v44 }
 0x9f2   : > { %3694 = vadd.xlane.f32.xlu0 %v3678_v26 }
 0x9f4   : > { %v4713_v32 = vpop.f32.mrb[34].mxu1 }
 0x9f5   : > { %v7515_v3 = vadd.f32 %v4713_v32, %v3928_v10  ;;  %v3609_v52 = vpop.f32.mrb[35].mxu1 }
 0x9f6   : > { %v7517_v49 = vadd.f32 %v3928_v10, %v3609_v52 }
 0x9f7   : > { %v3681_v25 = vmul.f32 %v7515_v3, %v7515_v3 }
 0x9f8   : > { %v3680_v43 = vmul.f32 %v7517_v49, %v7517_v49 }
 0x9f9   : > { %3700 = vadd.xlane.f32.xlu1 %v3681_v25 }
 0x9fa   : > { %3698 = vadd.xlane.f32.xlu0 %v3680_v43 }
 0x9fc   : > { %v4716_v1 = vpop.f32.mrb[36].mxu1 }
 0x9fd   : > { %v7523_v55 = vadd.f32 %v4716_v1, %v3928_v10  ;;  %v3619_v47 = vpop.f32.mrb[37].mxu1 }
 0x9fe   : > { %v7525_v54 = vadd.f32 %v3928_v10, %v3619_v47 }
 0x9ff   : > { %v3683_v40 = vmul.f32 %v7523_v55, %v7523_v55 }
 0xa00   : > { %v3682_v0 = vmul.f32 %v7525_v54, %v7525_v54 }
 0xa01   : > { %3704 = vadd.xlane.f32.xlu1 %v3683_v40 }
 0xa02   : > { %3702 = vadd.xlane.f32.xlu0 %v3682_v0 }
 0xa04   : > { %v4719_v42 = vpop.f32.mrb[38].mxu1 }
 0xa05   : > { %v7531_v4 = vadd.f32 %v4719_v42, %v3928_v10  ;;  %v3629_v39 = vpop.f32.mrb[39].mxu1 }
 0xa06   : > { %v7533_v6 = vadd.f32 %v3928_v10, %v3629_v39 }
 0xa07   : > { %v3685_v31 = vmul.f32 %v7531_v4, %v7531_v4 }
 0xa08   : > { %v3684_v37 = vmul.f32 %v7533_v6, %v7533_v6 }
 0xa09   : > { %3708 = vadd.xlane.f32.xlu1 %v3685_v31 }
 0xa0a   : > { %3706 = vadd.xlane.f32.xlu0 %v3684_v37 }
 0xa0c   : > { %v4722_v14 = vpop.f32.mrb[40].mxu1 }
 0xa0d   : > { %v7539_v23 = vadd.f32 %v4722_v14, %v3928_v10  ;;  %v3639_v46 = vpop.f32.mrb[41].mxu1 }
 0xa0e   : > { %v7541_v56 = vadd.f32 %v3928_v10, %v3639_v46 }
 0xa0f   : > { %v3687_v7 = vmul.f32 %v7539_v23, %v7539_v23 }
 0xa10   : > { %v3686_v36 = vmul.f32 %v7541_v56, %v7541_v56 }
 0xa11   : > { %3712 = vadd.xlane.f32.xlu1 %v3687_v7 }
 0xa12   : > { %3710 = vadd.xlane.f32.xlu0 %v3686_v36 }
 0xa17   : > { %v4725_v21 = vpop.f32.mrb[42].mxu1 }
 0xa18   : > { %v7547_v59 = vadd.f32 %v4725_v21, %v3928_v10  ;;  %v3649_v8 = vpop.f32.mrb[43].mxu1 }
 0xa19   : > { %v7549_v51 = vadd.f32 %v3928_v10, %v3649_v8 }
 0xa1a   : > { %v3689_v18 = vmul.f32 %v7547_v59, %v7547_v59 }
 0xa1b   : > { %v3688_v63 = vmul.f32 %v7549_v51, %v7549_v51 }
 0xa1c   : > { %3716 = vadd.xlane.f32.xlu1 %v3689_v18  ;;  %v4728_v30 = vpop.f32.mrb[44].mxu1 }
 0xa1d   : > { %v7555_v15 = vadd.f32 %v4728_v30, %v3928_v10  ;;  %3714 = vadd.xlane.f32.xlu0 %v3688_v63  ;;  %v3659_v41 = vpop.f32.mrb[45].mxu1 }
 0xa1e   : > { %v7557_v11 = vadd.f32 %v3928_v10, %v3659_v41 }
 0xa1f   : > { %v3691_v61 = vmul.f32 %v7555_v15, %v7555_v15 }
 0xa20   : > { %v3690_v13 = vmul.f32 %v7557_v11, %v7557_v11 }
 0xa21   : > { %3720 = vadd.xlane.f32.xlu1 %v3691_v61 }
 0xa22   : > { %3718 = vadd.xlane.f32.xlu0 %v3690_v13 }
 0xa23   : > { %v4731_v24 = vpop.f32.mrb[46].mxu1 }
 0xa24   : > { %v7563_v34 = vadd.f32 %v4731_v24, %v3928_v10  ;;  %v3669_v9 = vpop.f32.mrb[47].mxu1 }
 0xa25   : > { %v7565_v50 = vadd.f32 %v3928_v10, %v3669_v9 }
 0xa26   : > { %v3693_v28 = vmul.f32 %v7563_v34, %v7563_v34 }
 0xa27   : > { %v3692_v48 = vmul.f32 %v7565_v50, %v7565_v50 }
 0xa28   : > { %3724 = vadd.xlane.f32.xlu1 %v3693_v28 }
 0xa29   : > { %3722 = vadd.xlane.f32.xlu0 %v3692_v48 }
 0xa7e   : > { %v3697_v62 = vpop.xlane.xlu1 %3696 }
 0xa7f   : > { %v3727_v38 = vmax.f32 %v3697_v62, 1e-24  ;;  %v3695_v2 = vpop.xlane.xlu0 %3694 }
 0xa80   : > { %v3726_v27 = vmax.f32 %v3695_v2, 1e-24 }
 0xa81   : > { %5483 = vrsqrt.f32 %v3727_v38 }
 0xa82   : > { %5485 = vrsqrt.f32 %v3726_v27 }
 0xa86   : > { %v3701_v45 = vpop.xlane.xlu1 %3700 }
 0xa87   : > { %v3729_v29 = vmax.f32 %v3701_v45, 1e-24  ;;  %v3699_v5 = vpop.xlane.xlu0 %3698 }
 0xa88   : > { %v3728_v20 = vmax.f32 %v3699_v5, 1e-24 }
 0xa89   : > { %5487 = vrsqrt.f32 %v3729_v29 }
 0xa8a   : > { %5489 = vrsqrt.f32 %v3728_v20 }
 0xa8b   : > { %v5484_v19 = vpop.eup %5483 }
 0xa8c   : > { %v5486_v35 = vpop.eup %5485  ;;  %v3759_v16 = vmul.f32 %v5484_v19, %v7507_v58 }
 0xa8d   : > { %v3758_v17 = vmul.f32 %v5486_v35, %v7509_v22 }
 0xa8e   : > { %v3775_v60 = vmax.f32 %v3759_v16, 0.0  ;;  %v3705_v53 = vpop.xlane.xlu1 %3704 }
 0xa8f   : > { %v3774_v57 = vmax.f32 %v3758_v17, 0.0  ;;  %v3731_v10 = vmax.f32 %v3705_v53, 1e-24  ;;  %v3703_v12 = vpop.xlane.xlu0 %3702 }
 0xa90   : > { %3791 = vst [vmem:[%s7576_s30 + $0x8] sm:$0xff] %v3775_v60  ;;  %v3730_v33 = vmax.f32 %v3703_v12, 1e-24 }
 0xa91   : > { %3790 = vst [vmem:[%s7576_s30] sm:$0xff] %v3774_v57  ;;  %5491 = vrsqrt.f32 %v3731_v10 }
 0xa92   : > { %5493 = vrsqrt.f32 %v3730_v33 }
 0xa93   : > { %v5488_v44 = vpop.eup %5487 }
 0xa94   : > { %v5490_v58 = vpop.eup %5489  ;;  %v3761_v22 = vmul.f32 %v5488_v44, %v7515_v3 }
 0xa95   : > { %v3760_v26 = vmul.f32 %v5490_v58, %v7517_v49 }
 0xa96   : > { %v3777_v32 = vmax.f32 %v3761_v22, 0.0  ;;  %v3709_v52 = vpop.xlane.xlu1 %3708 }
 0xa97   : > { %v3776_v25 = vmax.f32 %v3760_v26, 0.0  ;;  %v3733_v43 = vmax.f32 %v3709_v52, 1e-24  ;;  %v3707_v1 = vpop.xlane.xlu0 %3706 }
 0xa98   : > { %3793 = vst [vmem:[%s7576_s30 + $0x18] sm:$0xff] %v3777_v32  ;;  %v3732_v47 = vmax.f32 %v3707_v1, 1e-24 }
 0xa99   : > { %3792 = vst [vmem:[%s7576_s30 + $0x10] sm:$0xff] %v3776_v25  ;;  %5495 = vrsqrt.f32 %v3733_v43 }
 0xa9a   : > { %5497 = vrsqrt.f32 %v3732_v47 }
 0xa9b   : > { %v5492_v40 = vpop.eup %5491 }
 0xa9c   : > { %v5494_v0 = vpop.eup %5493  ;;  %v3763_v42 = vmul.f32 %v5492_v40, %v7523_v55 }
 0xa9d   : > { %v3762_v3 = vmul.f32 %v5494_v0, %v7525_v54 }
 0xa9e   : > { %v3779_v39 = vmax.f32 %v3763_v42, 0.0  ;;  %v3713_v49 = vpop.xlane.xlu1 %3712 }
 0xa9f   : > { %v3778_v31 = vmax.f32 %v3762_v3, 0.0  ;;  %v3735_v37 = vmax.f32 %v3713_v49, 1e-24  ;;  %v3711_v14 = vpop.xlane.xlu0 %3710 }
 0xaa0   : > { %3795 = vst [vmem:[%s7576_s30 + $0x28] sm:$0xff] %v3779_v39  ;;  %v3734_v46 = vmax.f32 %v3711_v14, 1e-24 }
 0xaa1   : > { %3794 = vst [vmem:[%s7576_s30 + $0x20] sm:$0xff] %v3778_v31  ;;  %5499 = vrsqrt.f32 %v3735_v37 }
 0xaa2   : > { %5501 = vrsqrt.f32 %v3734_v46 }
 0xaa3   : > { %v5496_v7 = vpop.eup %5495 }
 0xaa4   : > { %v5498_v36 = vpop.eup %5497  ;;  %v3765_v21 = vmul.f32 %v5496_v7, %v7531_v4 }
 0xaa5   : > { %v3764_v55 = vmul.f32 %v5498_v36, %v7533_v6 }
 0xaa6   : > { %v3781_v8 = vmax.f32 %v3765_v21, 0.0 }
 0xaa7   : > { %v3780_v54 = vmax.f32 %v3764_v55, 0.0 }
 0xaa8   : > { %3797 = vst [vmem:[%s7576_s30 + $0x38] sm:$0xff] %v3781_v8 }
 0xaa9   : > { %3796 = vst [vmem:[%s7576_s30 + $0x30] sm:$0xff] %v3780_v54  ;;  %v3717_v18 = vpop.xlane.xlu1 %3716 }
 0xaaa   : > { %v3737_v63 = vmax.f32 %v3717_v18, 1e-24  ;;  %v3715_v30 = vpop.xlane.xlu0 %3714 }
 0xaab   : > { %v5500_v41 = vpop.eup %5499  ;;  %v3736_v61 = vmax.f32 %v3715_v30, 1e-24 }
 0xaac   : > { %v5502_v13 = vpop.eup %5501  ;;  %v3767_v24 = vmul.f32 %v5500_v41, %v7539_v23  ;;  %5503 = vrsqrt.f32 %v3737_v63 }
 0xaad   : > { %v3766_v9 = vmul.f32 %v5502_v13, %v7541_v56  ;;  %5505 = vrsqrt.f32 %v3736_v61 }
 0xaae   : > { %v3783_v4 = vmax.f32 %v3767_v24, 0.0  ;;  %v3721_v6 = vpop.xlane.xlu1 %3720 }
 0xaaf   : > { %v3782_v28 = vmax.f32 %v3766_v9, 0.0  ;;  %v3739_v48 = vmax.f32 %v3721_v6, 1e-24  ;;  %v3719_v62 = vpop.xlane.xlu0 %3718 }
 0xab0   : > { %3799 = vst [vmem:[%s7576_s30 + $0x48] sm:$0xff] %v3783_v4  ;;  %v3738_v38 = vmax.f32 %v3719_v62, 1e-24 }
 0xab1   : > { %3798 = vst [vmem:[%s7576_s30 + $0x40] sm:$0xff] %v3782_v28  ;;  %5507 = vrsqrt.f32 %v3739_v48 }
 0xab2   : > { %5509 = vrsqrt.f32 %v3738_v38 }
 0xab5   : > { %v3725_v2 = vpop.xlane.xlu1 %3724 }
 0xab6   : > { %v5504_v27 = vpop.eup %5503  ;;  %v3741_v45 = vmax.f32 %v3725_v2, 1e-24  ;;  %v3723_v23 = vpop.xlane.xlu0 %3722 }
 0xab7   : > { %v5506_v29 = vpop.eup %5505  ;;  %v3769_v56 = vmul.f32 %v5504_v27, %v7547_v59  ;;  %v3740_v5 = vmax.f32 %v3723_v23, 1e-24 }
 0xab8   : > { %v3768_v20 = vmul.f32 %v5506_v29, %v7549_v51  ;;  %5511 = vrsqrt.f32 %v3741_v45 }
 0xab9   : > { %v3785_v19 = vmax.f32 %v3769_v56, 0.0  ;;  %5513 = vrsqrt.f32 %v3740_v5 }
 0xaba   : > { %v3784_v35 = vmax.f32 %v3768_v20, 0.0 }
 0xabb   : > { %v5508_v16 = vpop.eup %5507  ;;  %3801 = vst [vmem:[%s7576_s30 + $0x58] sm:$0xff] %v3785_v19 }
 0xabc   : > { %v5510_v17 = vpop.eup %5509  ;;  %3800 = vst [vmem:[%s7576_s30 + $0x50] sm:$0xff] %v3784_v35  ;;  %v3771_v60 = vmul.f32 %v5508_v16, %v7555_v15 }
 0xabd   : > { %v3770_v53 = vmul.f32 %v5510_v17, %v7557_v11 }
 0xabe   : > { %v3787_v59 = vmax.f32 %v3771_v60, 0.0 }
 0xabf   : > { %v3786_v57 = vmax.f32 %v3770_v53, 0.0 }
 0xac0   : > { %3803 = vst [vmem:[%s7576_s30 + $0x68] sm:$0xff] %v3787_v59 }
 0xac1   : > { %3802 = vst [vmem:[%s7576_s30 + $0x60] sm:$0xff] %v3786_v57 }
 0xac2   : > { %v5512_v51 = vpop.eup %5511 }
 0xac3   : > { %v5514_v10 = vpop.eup %5513  ;;  %v3773_v12 = vmul.f32 %v5512_v51, %v7563_v34 }
 0xac4   : > { %v3772_v33 = vmul.f32 %v5514_v10, %v7565_v50 }
 0xac5   : > { %v3789_v44 = vmax.f32 %v3773_v12, 0.0 }
 0xac6   : > { %v3788_v15 = vmax.f32 %v3772_v33, 0.0 }
 0xac7   : > { %3805 = vst [vmem:[%s7576_s30 + $0x78] sm:$0xff] %v3789_v44 }
 0xac8   : > { %3804 = vst [vmem:[%s7576_s30 + $0x70] sm:$0xff] %v3788_v15 }
 0xac9   : > { %5528 = shalt.err (!%p5525_p3)
}
 0xaca   : > { %s5529_s25 = scalar_lea.hbm %s7611_s16, 2048  ;;  %s5533_s13 = scalar_lea.hbm %s7671_s11, 4096 }
 0xacb   : > { %p5530_p4 = scmp.ne.s32.totalorder %s7611_s16, %s5529_s25  ;;  %p5534_p9 = scmp.lt.u32.totalorder %s7611_s16, %s7671_s11 }
 0xacc   : > { %p5535_p10 = scmp.lt.u32.totalorder %s5533_s13, %s5529_s25  ;;  %p5537_p12 = scmp.lt.u32.totalorder %s5529_s25, %s7611_s16 }
 0xacd   : > { %p5531_p7 = pnand %p5530_p4, %p5687_p5 }
 0xace   : > { %p5536_p11 = por %p5535_p10, %p5534_p9 }
 0xacf   : > { %p5532_p8 = pneg %p5531_p7 }
 0xad0   : > { %p5538_p13 = por %p5537_p12, %p5536_p11 }
 0xad2   : > { %p5539_p0 = pnand %p5538_p13, %p5532_p8 }
 0xad4   : > { %5542 = shalt.err (!%p5539_p0)
}
 0xad5   : > { %s5587_s24 = smov 128   ;;  %s5588_s22 = smov 8  }
 0xad6   : > { %5053 = dma.vmem_to_hbm [thread:$0]  (%p5687_p5), %s7613_s29, 2048, %s7611_s16, %s7619_s21, %s5587_s24, %s5587_s24, %s5588_s22  }
 0xad7 PF: > { %p5059_p1 = scmp.ge.s32.totalorder %s5577_s20, 2  ;;  %s3835_s15 = sand.u32 1, %s5565_s17  }
 0xad8   : > { %s3836_s25 = scalar_lea.sflag [#allocation3], %s3835_s15 }
 0xad9   : > { %p5056_p2 = pnand %p5059_p1, %p5691_p6 }
 0xadb   : > { %5560 = dma.done.wait (!%p5056_p2), %s3836_s25, 2048  }
 0xadc   : > { %5562 = vsyncadd (!%p5056_p2), %s3836_s25, 4294965248  ;;  %p21_p3 = scmp.ge.s32.totalorder %s5674_s23, 4   ;;  %s7973_s17 = smov %s5569_s18 }
 0xadd   : > { %s7974_s18 = smov %s5573_s19  ;;  %s7975_s19 = smov %s5685_s26 }
 0xade   : > { %s7976_s20 = smov %s5674_s23  ;;  %23 = sbr.rel (!%p21_p3) target bundleno = 5 (0x5), region = 102 }
 0xae5   :  { %3841 = vsyncpa [#allocation3], 1 }
 0xae6   :  { %3843 = vsyncpa [#allocation3 + $0x1], 1 }

</bundles_post_ra>
